<compile_context>
chip_gen: v6e
topology: v6e:2x2x1
jax: 0.10.0
libtpu: 0.0.40
codegen_flags: <defaults>
</compile_context>

<pallas_src>
import jax
import jax.numpy as jnp
from jax.experimental import pallas as pl
from jax.experimental.pallas import tpu as pltpu


# ---------------------------------------------------------------------------
# Fully fused kernel: conv1 + ReLU + conv2 + ReLU + NCHW-flatten + fc1 + ReLU
# + fc2.  'same' zero padding is realised by the zeroed halo of the shared
# im2col scratch; each 3x3 conv is a single (Nb*H*W, 9*C1) @ (9*C1, Cout) MXU
# matmul (bf16 inputs, f32 accumulation, f32 VPU epilogue).
# ---------------------------------------------------------------------------
def mlp_fused_kernel(x_ref, w1_ref, b1_ref, w2_ref, b2_ref,
                     wf1_ref, bf1_ref, wf2_ref, bf2_ref, o_ref,
                     cols_ref, h1_ref, h2_ref, flat_ref):
    # x_ref    : (Nb, H, W, C1)     bf16  NHWC embedding (one batch block / program)
    # w1_ref   : (9*C1, C1)         bf16  conv1 weight, im2col rows = (kh, kw, cin)
    # b1_ref   : (1, C1)            f32
    # w2_ref   : (9*C1, C2)         bf16
    # b2_ref   : (1, C2)            f32
    # wf1_ref  : (H*W*C2, HID)      bf16  fc1 weight, rows in (h, w, c) flatten order
    # bf1_ref  : (1, HID)           f32
    # wf2_ref  : (HID, OUT)         bf16
    # bf2_ref  : (1, OUT)           f32
    # o_ref    : (1, Nb, OUT)       f32
    # cols_ref : (Nb, H, W, 9*C1)   bf16  scratch: shared im2col buffer (zero halo)
    # h1_ref   : (Nb, H, W, C1)     bf16  scratch: conv1 activations
    # h2_ref   : (Nb, H*W, C2)      bf16  scratch: conv2 activations
    # flat_ref : (Nb, H*W*C2)       bf16  scratch: flattened features feeding fc1
    Nb, H, W, C1 = x_ref.shape
    C2 = w2_ref.shape[-1]
    K = H * W
    taps = [(oh, ow) for oh in (-1, 0, 1) for ow in (-1, 0, 1)]

    # Zero every step (not program_id-gated): scratch is per-TensorCore under a
    # "parallel" grid dim, so a pid==0 gate would leave the second core's halo
    # uninitialised.  In bf16 this is ~9 vregs of stores — negligible.
    cols_ref[...] = jnp.zeros(cols_ref.shape, cols_ref.dtype)

    def im2col(src_ref):
        # Interior of every tap slab is fully rewritten; the halo is never
        # written, so it stays zero == 'same' padding for both convs.
        for t, (oh, ow) in enumerate(taps):
            dh, sh, hl = max(0, -oh), max(0, oh), H - abs(oh)
            dw, sw, wl = max(0, -ow), max(0, ow), W - abs(ow)
            cols_ref[:, dh:dh + hl, dw:dw + wl, t * C1:(t + 1) * C1] = (
                src_ref[:, sh:sh + hl, sw:sw + wl, :])
        return cols_ref[...].reshape(Nb * K, 9 * C1)

    # conv1 + ReLU  (bf16 MXU inputs, f32 accumulate, f32 epilogue on the VPU)
    h1 = jnp.dot(im2col(x_ref), w1_ref[...], preferred_element_type=jnp.float32)
    h1 = jnp.maximum(h1 + b1_ref[...], 0.0)
    h1_ref[...] = h1.reshape(Nb, H, W, C1).astype(jnp.bfloat16)

    # conv2 + ReLU (reuses the same im2col scratch; halo still zero)
    h2 = jnp.dot(im2col(h1_ref), w2_ref[...], preferred_element_type=jnp.float32)
    h2 = jnp.maximum(h2 + b2_ref[...], 0.0)
    h2_ref[...] = h2.reshape(Nb, K, C2).astype(jnp.bfloat16)

    # In-kernel flatten: (Nb, K, C2) -> (Nb, K*C2) as K small lane-offset copies
    # (fc1 rows were permuted at init to this (h, w, c) order), replacing the old
    # h2 HBM round trip + XLA reshape + second kernel launch.
    for k in range(K):
        flat_ref[:, k * C2:(k + 1) * C2] = h2_ref[:, k, :]

    # fc1 + ReLU + fc2.  Output lane width == output_size (4) -> the final store
    # is lane-masked; negligible at this size.
    h3 = jnp.dot(flat_ref[...], wf1_ref[...], preferred_element_type=jnp.float32)
    h3 = jnp.maximum(h3 + bf1_ref[...], 0.0)
    out = jnp.dot(h3.astype(jnp.bfloat16), wf2_ref[...],
                  preferred_element_type=jnp.float32) + bf2_ref[...]
    o_ref[...] = out[None]


def mlp_fused(xe, w1, b1, w2, b2, wf1, bf1, wf2, bf2, *, batch_block=None):
    B, H, W, C1 = xe.shape
    C2 = w2.shape[-1]
    HID = wf1.shape[-1]
    OUT = wf2.shape[-1]
    K = H * W
    # Default: two "parallel" grid steps when B is even (keeps both v7x
    # TensorCores busy); single whole-batch program otherwise.  On single-TC
    # v5e/v6e, batch_block=B (one program, larger MXU row fill) is preferable.
    if batch_block is None:
        batch_block = B // 2 if (B >= 2 and B % 2 == 0) else B
    nb = batch_block
    assert B % nb == 0, "batch_block must divide the batch size"
    g = B // nb

    out3 = pl.pallas_call(
        mlp_fused_kernel,
        out_shape=jax.ShapeDtypeStruct((g, nb, OUT), jnp.float32),
        grid_spec=pltpu.PrefetchScalarGridSpec(
            num_scalar_prefetch=0,
            grid=(g,),                                    # batch blocks
            in_specs=[
                pl.BlockSpec((nb, H, W, C1), lambda b: (b, 0, 0, 0)),
                pl.BlockSpec((9 * C1, C1), lambda b: (0, 0)),   # resident weights
                pl.BlockSpec((1, C1), lambda b: (0, 0)),
                pl.BlockSpec((9 * C1, C2), lambda b: (0, 0)),
                pl.BlockSpec((1, C2), lambda b: (0, 0)),
                pl.BlockSpec((K * C2, HID), lambda b: (0, 0)),
                pl.BlockSpec((1, HID), lambda b: (0, 0)),
                pl.BlockSpec((HID, OUT), lambda b: (0, 0)),
                pl.BlockSpec((1, OUT), lambda b: (0, 0)),
            ],
            out_specs=pl.BlockSpec((1, nb, OUT), lambda b: (b, 0, 0)),
            scratch_shapes=[
                pltpu.VMEM((nb, H, W, 9 * C1), jnp.bfloat16),   # im2col cols
                pltpu.VMEM((nb, H, W, C1), jnp.bfloat16),       # conv1 act
                pltpu.VMEM((nb, K, C2), jnp.bfloat16),          # conv2 act
                pltpu.VMEM((nb, K * C2), jnp.bfloat16),         # flattened feats
            ],
        ),
        compiler_params=pltpu.CompilerParams(
            dimension_semantics=("parallel",)),
    )(xe, w1, b1, w2, b2, wf1, bf1, wf2, bf2)
    return out3.reshape(B, OUT)


# ---------------------------------------------------------------------------
# Parameters: PyTorch-shaped init + one-time layout/dtype prep for the kernel.
# ---------------------------------------------------------------------------
def init_params(key, input_size, output_size):
    ks = jax.random.split(key, 9)
    s = 0.1
    return dict(
        emb=jax.random.normal(ks[0], (4, 16), jnp.float32) * s,
        w1=jax.random.normal(ks[1], (32, 32, 3, 3), jnp.float32) * s,   # OIHW
        b1=jax.random.normal(ks[2], (32,), jnp.float32) * s,
        w2=jax.random.normal(ks[3], (64, 32, 3, 3), jnp.float32) * s,   # OIHW
        b2=jax.random.normal(ks[4], (64,), jnp.float32) * s,
        fw1=jax.random.normal(ks[5], (128, input_size * 64), jnp.float32) * s,  # (out,in)
        fb1=jax.random.normal(ks[6], (128,), jnp.float32) * s,
        fw2=jax.random.normal(ks[7], (output_size, 128), jnp.float32) * s,
        fb2=jax.random.normal(ks[8], (output_size,), jnp.float32) * s,
    )


def prepare_params(params, H, W):
    """One-time weight prep (hoisted out of the forward):
    - conv OIHW -> im2col rows (kh, kw, cin), cast bf16
    - fc1: fold the PyTorch NCHW flatten (c,h,w) into the row order (h,w,c)
      [row = k*C2 + c, matching the in-kernel flatten], transpose to (in,out), bf16
    - fc2 transposed to (in,out), bf16; biases shaped (1, N) f32; embedding bf16."""
    C1, C2, HID = 32, 64, 128
    w1 = jnp.transpose(params['w1'], (2, 3, 1, 0)).reshape(9 * C1, C1)
    w2 = jnp.transpose(params['w2'], (2, 3, 1, 0)).reshape(9 * C1, C2)
    wf1 = jnp.transpose(params['fw1'].reshape(HID, C2, H, W),
                        (2, 3, 1, 0)).reshape(H * W * C2, HID)
    wf2 = params['fw2'].T
    return dict(
        emb=params['emb'].astype(jnp.bfloat16),
        w1=w1.astype(jnp.bfloat16), b1=params['b1'].reshape(1, C1),
        w2=w2.astype(jnp.bfloat16), b2=params['b2'].reshape(1, C2),
        wf1=wf1.astype(jnp.bfloat16), bf1=params['fb1'].reshape(1, HID),
        wf2=wf2.astype(jnp.bfloat16), bf2=params['fb2'].reshape(1, -1),
    )


@jax.jit
def mlp_forward(state, goal, p):
    # NHWC bf16 embedding built directly: channels [state emb 0..15 | goal 16..31],
    # identical to PyTorch's stack->permute->reshape order, with no transposes.
    # TODO(synk): the 4x16 embedding gather stays an XLA op; a Pallas DMA-gather
    # is not worth it at this table size.
    xe = jnp.concatenate(
        [jnp.take(p['emb'], state.astype(jnp.int32), axis=0),
         jnp.take(p['emb'], goal.astype(jnp.int32), axis=0)], axis=-1)  # (B,H,W,32) bf16
    return mlp_fused(xe, p['w1'], p['b1'], p['w2'], p['b2'],
                     p['wf1'], p['bf1'], p['wf2'], p['bf2'])


def reference_forward(state, goal, params):
    # Pure-JAX f32 reference mirroring the PyTorch forward exactly.
    B, H, W = state.shape
    x = jnp.stack([state, goal], axis=1).astype(jnp.int32)
    e = jnp.take(params['emb'], x, axis=0)
    e = jnp.transpose(e, (0, 1, 4, 2, 3)).reshape(B, 32, H, W).astype(jnp.float32)

    def conv(x, w, b):
        y = jax.lax.conv_general_dilated(
            x, w, window_strides=(1, 1), padding='SAME',
            dimension_numbers=('NCHW', 'OIHW', 'NCHW'))
        return jax.nn.relu(y + b[None, :, None, None])

    h1 = conv(e, params['w1'], params['b1'])
    h2 = conv(h1, params['w2'], params['b2'])
    f = h2.reshape(B, -1)
    h3 = jax.nn.relu(f @ params['fw1'].T + params['fb1'])
    return h3 @ params['fw2'].T + params['fb2']


if __name__ == "__main__":
    key = jax.random.PRNGKey(0)
    B, H, W = 2, 8, 8                 # maze grid; input_size = H*W
    input_size = H * W
    output_size = 4
    k1, k2, k3 = jax.random.split(key, 3)
    state = jax.random.randint(k1, (B, H, W), 0, 4, dtype=jnp.int32)
    goal = jax.random.randint(k2, (B, H, W), 0, 4, dtype=jnp.int32)
    params = init_params(k3, input_size, output_size)
    prepped = prepare_params(params, H, W)   # one-time layout/dtype prep

    out = jax.block_until_ready(mlp_forward(state, goal, prepped))
    ref = reference_forward(state, goal, params)
    assert out.shape == (B, output_size)
    # bf16 MXU inputs / bf16 activation storage (f32 accumulation) vs pure-f32 ref.
    assert jnp.allclose(out, ref, rtol=2e-2, atol=2e-2), \
        float(jnp.max(jnp.abs(out - ref)))
    print("KERNEL_OK")
</pallas_src>

<mosaic_0001>
module attributes {stable_mosaic.version = 11 : i64} {
  func.func @mlp_fused_kernel(%arg0: i32, %arg1: memref<1x8x8x32xbf16, #tpu.memory_space<vmem>>, %arg2: memref<288x32xbf16, #tpu.memory_space<vmem>>, %arg3: memref<1x32xf32, #tpu.memory_space<vmem>>, %arg4: memref<288x64xbf16, #tpu.memory_space<vmem>>, %arg5: memref<1x64xf32, #tpu.memory_space<vmem>>, %arg6: memref<4096x128xbf16, #tpu.memory_space<vmem>>, %arg7: memref<1x128xf32, #tpu.memory_space<vmem>>, %arg8: memref<128x4xbf16, #tpu.memory_space<vmem>>, %arg9: memref<1x4xf32, #tpu.memory_space<vmem>>, %arg10: memref<1x1x4xf32, #tpu.memory_space<vmem>>, %arg11: memref<1x8x8x288xbf16, #tpu.memory_space<vmem>>, %arg12: memref<1x8x8x32xbf16, #tpu.memory_space<vmem>>, %arg13: memref<1x64x64xbf16, #tpu.memory_space<vmem>>, %arg14: memref<1x4096xbf16, #tpu.memory_space<vmem>>) attributes {dimension_semantics = [#tpu.dimension_semantics<parallel>], iteration_bounds = array<i64: 2>, scalar_prefetch = 0 : i64, scratch_operands = 4 : i64, tpu.core_type = #tpu.core_type<tc>, window_params = [{transform_indices = @transform_0, window_bounds = array<i64: 1, 8, 8, 32>}, {pipeline_mode = #tpu.pipeline_mode<synchronous>, transform_indices = @transform_1, window_bounds = array<i64: 288, 32>}, {pipeline_mode = #tpu.pipeline_mode<synchronous>, transform_indices = @transform_2, window_bounds = array<i64: 1, 32>}, {pipeline_mode = #tpu.pipeline_mode<synchronous>, transform_indices = @transform_3, window_bounds = array<i64: 288, 64>}, {pipeline_mode = #tpu.pipeline_mode<synchronous>, transform_indices = @transform_4, window_bounds = array<i64: 1, 64>}, {pipeline_mode = #tpu.pipeline_mode<synchronous>, transform_indices = @transform_5, window_bounds = array<i64: 4096, 128>}, {pipeline_mode = #tpu.pipeline_mode<synchronous>, transform_indices = @transform_6, window_bounds = array<i64: 1, 128>}, {pipeline_mode = #tpu.pipeline_mode<synchronous>, transform_indices = @transform_7, window_bounds = array<i64: 128, 4>}, {pipeline_mode = #tpu.pipeline_mode<synchronous>, transform_indices = @transform_8, window_bounds = array<i64: 1, 4>}, {transform_indices = @transform_9, window_bounds = array<i64: 1, 1, 4>}]} {
    %cst = arith.constant 0.000000e+00 : bf16
    %0 = vector.broadcast %cst : bf16 to vector<1x8x8x288xbf16>
    %c0 = arith.constant 0 : index
    %c0_0 = arith.constant 0 : index
    %c0_1 = arith.constant 0 : index
    %c0_2 = arith.constant 0 : index
    %1 = vector.load %arg11[%c0, %c0_0, %c0_1, %c0_2] : memref<1x8x8x288xbf16, #tpu.memory_space<vmem>>, vector<1x8x8x288xbf16>
    tpu.vector_store %arg11[%c0, %c0_0, %c0_1, %c0_2], %0 {strides = array<i32>} : memref<1x8x8x288xbf16, #tpu.memory_space<vmem>>, vector<1x8x8x288xbf16>,
    %c0_3 = arith.constant 0 : index
    %c0_4 = arith.constant 0 : index
    %c0_5 = arith.constant 0 : index
    %c0_6 = arith.constant 0 : index
    %2 = vector.load %arg1[%c0_3, %c0_4, %c0_5, %c0_6] : memref<1x8x8x32xbf16, #tpu.memory_space<vmem>>, vector<1x7x7x32xbf16>
    %c0_7 = arith.constant 0 : index
    %c1 = arith.constant 1 : index
    %c1_8 = arith.constant 1 : index
    %c0_9 = arith.constant 0 : index
    %3 = vector.load %arg11[%c0_7, %c1, %c1_8, %c0_9] : memref<1x8x8x288xbf16, #tpu.memory_space<vmem>>, vector<1x7x7x32xbf16>
    tpu.vector_store %arg11[%c0_7, %c1, %c1_8, %c0_9], %2 {strides = array<i32>} : memref<1x8x8x288xbf16, #tpu.memory_space<vmem>>, vector<1x7x7x32xbf16>,
    %c0_10 = arith.constant 0 : index
    %c0_11 = arith.constant 0 : index
    %c0_12 = arith.constant 0 : index
    %c0_13 = arith.constant 0 : index
    %4 = vector.load %arg1[%c0_10, %c0_11, %c0_12, %c0_13] : memref<1x8x8x32xbf16, #tpu.memory_space<vmem>>, vector<1x7x8x32xbf16>
    %c0_14 = arith.constant 0 : index
    %c1_15 = arith.constant 1 : index
    %c0_16 = arith.constant 0 : index
    %c32 = arith.constant 32 : index
    %5 = vector.load %arg11[%c0_14, %c1_15, %c0_16, %c32] : memref<1x8x8x288xbf16, #tpu.memory_space<vmem>>, vector<1x7x8x32xbf16>
    tpu.vector_store %arg11[%c0_14, %c1_15, %c0_16, %c32], %4 {strides = array<i32>} : memref<1x8x8x288xbf16, #tpu.memory_space<vmem>>, vector<1x7x8x32xbf16>,
    %c0_17 = arith.constant 0 : index
    %c0_18 = arith.constant 0 : index
    %c1_19 = arith.constant 1 : index
    %c0_20 = arith.constant 0 : index
    %6 = vector.load %arg1[%c0_17, %c0_18, %c1_19, %c0_20] : memref<1x8x8x32xbf16, #tpu.memory_space<vmem>>, vector<1x7x7x32xbf16>
    %c0_21 = arith.constant 0 : index
    %c1_22 = arith.constant 1 : index
    %c0_23 = arith.constant 0 : index
    %c64 = arith.constant 64 : index
    %7 = vector.load %arg11[%c0_21, %c1_22, %c0_23, %c64] : memref<1x8x8x288xbf16, #tpu.memory_space<vmem>>, vector<1x7x7x32xbf16>
    tpu.vector_store %arg11[%c0_21, %c1_22, %c0_23, %c64], %6 {strides = array<i32>} : memref<1x8x8x288xbf16, #tpu.memory_space<vmem>>, vector<1x7x7x32xbf16>,
    %c0_24 = arith.constant 0 : index
    %c0_25 = arith.constant 0 : index
    %c0_26 = arith.constant 0 : index
    %c0_27 = arith.constant 0 : index
    %8 = vector.load %arg1[%c0_24, %c0_25, %c0_26, %c0_27] : memref<1x8x8x32xbf16, #tpu.memory_space<vmem>>, vector<1x8x7x32xbf16>
    %c0_28 = arith.constant 0 : index
    %c0_29 = arith.constant 0 : index
    %c1_30 = arith.constant 1 : index
    %c96 = arith.constant 96 : index
    %9 = vector.load %arg11[%c0_28, %c0_29, %c1_30, %c96] : memref<1x8x8x288xbf16, #tpu.memory_space<vmem>>, vector<1x8x7x32xbf16>
    tpu.vector_store %arg11[%c0_28, %c0_29, %c1_30, %c96], %8 {strides = array<i32>} : memref<1x8x8x288xbf16, #tpu.memory_space<vmem>>, vector<1x8x7x32xbf16>,
    %c0_31 = arith.constant 0 : index
    %c0_32 = arith.constant 0 : index
    %c0_33 = arith.constant 0 : index
    %c0_34 = arith.constant 0 : index
    %10 = vector.load %arg1[%c0_31, %c0_32, %c0_33, %c0_34] : memref<1x8x8x32xbf16, #tpu.memory_space<vmem>>, vector<1x8x8x32xbf16>
    %c0_35 = arith.constant 0 : index
    %c0_36 = arith.constant 0 : index
    %c0_37 = arith.constant 0 : index
    %c128 = arith.constant 128 : index
    %11 = vector.load %arg11[%c0_35, %c0_36, %c0_37, %c128] : memref<1x8x8x288xbf16, #tpu.memory_space<vmem>>, vector<1x8x8x32xbf16>
    tpu.vector_store %arg11[%c0_35, %c0_36, %c0_37, %c128], %10 {strides = array<i32>} : memref<1x8x8x288xbf16, #tpu.memory_space<vmem>>, vector<1x8x8x32xbf16>,
    %c0_38 = arith.constant 0 : index
    %c0_39 = arith.constant 0 : index
    %c1_40 = arith.constant 1 : index
    %c0_41 = arith.constant 0 : index
    %12 = vector.load %arg1[%c0_38, %c0_39, %c1_40, %c0_41] : memref<1x8x8x32xbf16, #tpu.memory_space<vmem>>, vector<1x8x7x32xbf16>
    %c0_42 = arith.constant 0 : index
    %c0_43 = arith.constant 0 : index
    %c0_44 = arith.constant 0 : index
    %c160 = arith.constant 160 : index
    %13 = vector.load %arg11[%c0_42, %c0_43, %c0_44, %c160] : memref<1x8x8x288xbf16, #tpu.memory_space<vmem>>, vector<1x8x7x32xbf16>
    tpu.vector_store %arg11[%c0_42, %c0_43, %c0_44, %c160], %12 {strides = array<i32>} : memref<1x8x8x288xbf16, #tpu.memory_space<vmem>>, vector<1x8x7x32xbf16>,
    %c0_45 = arith.constant 0 : index
    %c1_46 = arith.constant 1 : index
    %c0_47 = arith.constant 0 : index
    %c0_48 = arith.constant 0 : index
    %14 = vector.load %arg1[%c0_45, %c1_46, %c0_47, %c0_48] : memref<1x8x8x32xbf16, #tpu.memory_space<vmem>>, vector<1x7x7x32xbf16>
    %c0_49 = arith.constant 0 : index
    %c0_50 = arith.constant 0 : index
    %c1_51 = arith.constant 1 : index
    %c192 = arith.constant 192 : index
    %15 = vector.load %arg11[%c0_49, %c0_50, %c1_51, %c192] : memref<1x8x8x288xbf16, #tpu.memory_space<vmem>>, vector<1x7x7x32xbf16>
    tpu.vector_store %arg11[%c0_49, %c0_50, %c1_51, %c192], %14 {strides = array<i32>} : memref<1x8x8x288xbf16, #tpu.memory_space<vmem>>, vector<1x7x7x32xbf16>,
    %c0_52 = arith.constant 0 : index
    %c1_53 = arith.constant 1 : index
    %c0_54 = arith.constant 0 : index
    %c0_55 = arith.constant 0 : index
    %16 = vector.load %arg1[%c0_52, %c1_53, %c0_54, %c0_55] : memref<1x8x8x32xbf16, #tpu.memory_space<vmem>>, vector<1x7x8x32xbf16>
    %c0_56 = arith.constant 0 : index
    %c0_57 = arith.constant 0 : index
    %c0_58 = arith.constant 0 : index
    %c224 = arith.constant 224 : index
    %17 = vector.load %arg11[%c0_56, %c0_57, %c0_58, %c224] : memref<1x8x8x288xbf16, #tpu.memory_space<vmem>>, vector<1x7x8x32xbf16>
    tpu.vector_store %arg11[%c0_56, %c0_57, %c0_58, %c224], %16 {strides = array<i32>} : memref<1x8x8x288xbf16, #tpu.memory_space<vmem>>, vector<1x7x8x32xbf16>,
    %c0_59 = arith.constant 0 : index
    %c1_60 = arith.constant 1 : index
    %c1_61 = arith.constant 1 : index
    %c0_62 = arith.constant 0 : index
    %18 = vector.load %arg1[%c0_59, %c1_60, %c1_61, %c0_62] : memref<1x8x8x32xbf16, #tpu.memory_space<vmem>>, vector<1x7x7x32xbf16>
    %c0_63 = arith.constant 0 : index
    %c0_64 = arith.constant 0 : index
    %c0_65 = arith.constant 0 : index
    %c256 = arith.constant 256 : index
    %19 = vector.load %arg11[%c0_63, %c0_64, %c0_65, %c256] : memref<1x8x8x288xbf16, #tpu.memory_space<vmem>>, vector<1x7x7x32xbf16>
    tpu.vector_store %arg11[%c0_63, %c0_64, %c0_65, %c256], %18 {strides = array<i32>} : memref<1x8x8x288xbf16, #tpu.memory_space<vmem>>, vector<1x7x7x32xbf16>,
    %c0_66 = arith.constant 0 : index
    %c0_67 = arith.constant 0 : index
    %c0_68 = arith.constant 0 : index
    %c0_69 = arith.constant 0 : index
    %20 = vector.load %arg11[%c0_66, %c0_67, %c0_68, %c0_69] : memref<1x8x8x288xbf16, #tpu.memory_space<vmem>>, vector<1x8x8x288xbf16>
    %21 = vector.shape_cast %20 : vector<1x8x8x288xbf16> to vector<64x288xbf16>
    %c0_70 = arith.constant 0 : index
    %c0_71 = arith.constant 0 : index
    %22 = vector.load %arg2[%c0_70, %c0_71] : memref<288x32xbf16, #tpu.memory_space<vmem>>, vector<288x32xbf16>
    %cst_72 = arith.constant dense<0.000000e+00> : vector<64x32xf32>
    %23 = tpu.matmul %21, %22, %cst_72 {dimension_numbers = #tpu.dot_dimension_numbers<[1], [0], [0], [1], [0, 0, 1, 1], [], []>} : vector<64x288xbf16>, vector<288x32xbf16>, vector<64x32xf32> -> vector<64x32xf32>
    %c0_73 = arith.constant 0 : index
    %c0_74 = arith.constant 0 : index
    %24 = vector.load %arg3[%c0_73, %c0_74] : memref<1x32xf32, #tpu.memory_space<vmem>>, vector<1x32xf32>
    %25 = vector.broadcast %24 : vector<1x32xf32> to vector<64x32xf32>
    %26 = arith.addf %23, %25 : vector<64x32xf32>
    %cst_75 = arith.constant 0.000000e+00 : f32
    %27 = vector.broadcast %cst_75 : f32 to vector<64x32xf32>
    %28 = arith.maximumf %26, %27 : vector<64x32xf32>
    %29 = vector.shape_cast %28 : vector<64x32xf32> to vector<1x8x8x32xf32>
    %30 = arith.truncf %29 : vector<1x8x8x32xf32> to vector<1x8x8x32xbf16>
    %c0_76 = arith.constant 0 : index
    %c0_77 = arith.constant 0 : index
    %c0_78 = arith.constant 0 : index
    %c0_79 = arith.constant 0 : index
    %31 = vector.load %arg12[%c0_76, %c0_77, %c0_78, %c0_79] : memref<1x8x8x32xbf16, #tpu.memory_space<vmem>>, vector<1x8x8x32xbf16>
    tpu.vector_store %arg12[%c0_76, %c0_77, %c0_78, %c0_79], %30 {strides = array<i32>} : memref<1x8x8x32xbf16, #tpu.memory_space<vmem>>, vector<1x8x8x32xbf16>,
    %c0_80 = arith.constant 0 : index
    %c0_81 = arith.constant 0 : index
    %c0_82 = arith.constant 0 : index
    %c0_83 = arith.constant 0 : index
    %32 = vector.load %arg12[%c0_80, %c0_81, %c0_82, %c0_83] : memref<1x8x8x32xbf16, #tpu.memory_space<vmem>>, vector<1x7x7x32xbf16>
    %c0_84 = arith.constant 0 : index
    %c1_85 = arith.constant 1 : index
    %c1_86 = arith.constant 1 : index
    %c0_87 = arith.constant 0 : index
    %33 = vector.load %arg11[%c0_84, %c1_85, %c1_86, %c0_87] : memref<1x8x8x288xbf16, #tpu.memory_space<vmem>>, vector<1x7x7x32xbf16>
    tpu.vector_store %arg11[%c0_84, %c1_85, %c1_86, %c0_87], %32 {strides = array<i32>} : memref<1x8x8x288xbf16, #tpu.memory_space<vmem>>, vector<1x7x7x32xbf16>,
    %c0_88 = arith.constant 0 : index
    %c0_89 = arith.constant 0 : index
    %c0_90 = arith.constant 0 : index
    %c0_91 = arith.constant 0 : index
    %34 = vector.load %arg12[%c0_88, %c0_89, %c0_90, %c0_91] : memref<1x8x8x32xbf16, #tpu.memory_space<vmem>>, vector<1x7x8x32xbf16>
    %c0_92 = arith.constant 0 : index
    %c1_93 = arith.constant 1 : index
    %c0_94 = arith.constant 0 : index
    %c32_95 = arith.constant 32 : index
    %35 = vector.load %arg11[%c0_92, %c1_93, %c0_94, %c32_95] : memref<1x8x8x288xbf16, #tpu.memory_space<vmem>>, vector<1x7x8x32xbf16>
    tpu.vector_store %arg11[%c0_92, %c1_93, %c0_94, %c32_95], %34 {strides = array<i32>} : memref<1x8x8x288xbf16, #tpu.memory_space<vmem>>, vector<1x7x8x32xbf16>,
    %c0_96 = arith.constant 0 : index
    %c0_97 = arith.constant 0 : index
    %c1_98 = arith.constant 1 : index
    %c0_99 = arith.constant 0 : index
    %36 = vector.load %arg12[%c0_96, %c0_97, %c1_98, %c0_99] : memref<1x8x8x32xbf16, #tpu.memory_space<vmem>>, vector<1x7x7x32xbf16>
    %c0_100 = arith.constant 0 : index
    %c1_101 = arith.constant 1 : index
    %c0_102 = arith.constant 0 : index
    %c64_103 = arith.constant 64 : index
    %37 = vector.load %arg11[%c0_100, %c1_101, %c0_102, %c64_103] : memref<1x8x8x288xbf16, #tpu.memory_space<vmem>>, vector<1x7x7x32xbf16>
    tpu.vector_store %arg11[%c0_100, %c1_101, %c0_102, %c64_103], %36 {strides = array<i32>} : memref<1x8x8x288xbf16, #tpu.memory_space<vmem>>, vector<1x7x7x32xbf16>,
    %c0_104 = arith.constant 0 : index
    %c0_105 = arith.constant 0 : index
    %c0_106 = arith.constant 0 : index
    %c0_107 = arith.constant 0 : index
    %38 = vector.load %arg12[%c0_104, %c0_105, %c0_106, %c0_107] : memref<1x8x8x32xbf16, #tpu.memory_space<vmem>>, vector<1x8x7x32xbf16>
    %c0_108 = arith.constant 0 : index
    %c0_109 = arith.constant 0 : index
    %c1_110 = arith.constant 1 : index
    %c96_111 = arith.constant 96 : index
    %39 = vector.load %arg11[%c0_108, %c0_109, %c1_110, %c96_111] : memref<1x8x8x288xbf16, #tpu.memory_space<vmem>>, vector<1x8x7x32xbf16>
    tpu.vector_store %arg11[%c0_108, %c0_109, %c1_110, %c96_111], %38 {strides = array<i32>} : memref<1x8x8x288xbf16, #tpu.memory_space<vmem>>, vector<1x8x7x32xbf16>,
    %c0_112 = arith.constant 0 : index
    %c0_113 = arith.constant 0 : index
    %c0_114 = arith.constant 0 : index
    %c0_115 = arith.constant 0 : index
    %40 = vector.load %arg12[%c0_112, %c0_113, %c0_114, %c0_115] : memref<1x8x8x32xbf16, #tpu.memory_space<vmem>>, vector<1x8x8x32xbf16>
    %c0_116 = arith.constant 0 : index
    %c0_117 = arith.constant 0 : index
    %c0_118 = arith.constant 0 : index
    %c128_119 = arith.constant 128 : index
    %41 = vector.load %arg11[%c0_116, %c0_117, %c0_118, %c128_119] : memref<1x8x8x288xbf16, #tpu.memory_space<vmem>>, vector<1x8x8x32xbf16>
    tpu.vector_store %arg11[%c0_116, %c0_117, %c0_118, %c128_119], %40 {strides = array<i32>} : memref<1x8x8x288xbf16, #tpu.memory_space<vmem>>, vector<1x8x8x32xbf16>,
    %c0_120 = arith.constant 0 : index
    %c0_121 = arith.constant 0 : index
    %c1_122 = arith.constant 1 : index
    %c0_123 = arith.constant 0 : index
    %42 = vector.load %arg12[%c0_120, %c0_121, %c1_122, %c0_123] : memref<1x8x8x32xbf16, #tpu.memory_space<vmem>>, vector<1x8x7x32xbf16>
    %c0_124 = arith.constant 0 : index
    %c0_125 = arith.constant 0 : index
    %c0_126 = arith.constant 0 : index
    %c160_127 = arith.constant 160 : index
    %43 = vector.load %arg11[%c0_124, %c0_125, %c0_126, %c160_127] : memref<1x8x8x288xbf16, #tpu.memory_space<vmem>>, vector<1x8x7x32xbf16>
    tpu.vector_store %arg11[%c0_124, %c0_125, %c0_126, %c160_127], %42 {strides = array<i32>} : memref<1x8x8x288xbf16, #tpu.memory_space<vmem>>, vector<1x8x7x32xbf16>,
    %c0_128 = arith.constant 0 : index
    %c1_129 = arith.constant 1 : index
    %c0_130 = arith.constant 0 : index
    %c0_131 = arith.constant 0 : index
    %44 = vector.load %arg12[%c0_128, %c1_129, %c0_130, %c0_131] : memref<1x8x8x32xbf16, #tpu.memory_space<vmem>>, vector<1x7x7x32xbf16>
    %c0_132 = arith.constant 0 : index
    %c0_133 = arith.constant 0 : index
    %c1_134 = arith.constant 1 : index
    %c192_135 = arith.constant 192 : index
    %45 = vector.load %arg11[%c0_132, %c0_133, %c1_134, %c192_135] : memref<1x8x8x288xbf16, #tpu.memory_space<vmem>>, vector<1x7x7x32xbf16>
    tpu.vector_store %arg11[%c0_132, %c0_133, %c1_134, %c192_135], %44 {strides = array<i32>} : memref<1x8x8x288xbf16, #tpu.memory_space<vmem>>, vector<1x7x7x32xbf16>,
    %c0_136 = arith.constant 0 : index
    %c1_137 = arith.constant 1 : index
    %c0_138 = arith.constant 0 : index
    %c0_139 = arith.constant 0 : index
    %46 = vector.load %arg12[%c0_136, %c1_137, %c0_138, %c0_139] : memref<1x8x8x32xbf16, #tpu.memory_space<vmem>>, vector<1x7x8x32xbf16>
    %c0_140 = arith.constant 0 : index
    %c0_141 = arith.constant 0 : index
    %c0_142 = arith.constant 0 : index
    %c224_143 = arith.constant 224 : index
    %47 = vector.load %arg11[%c0_140, %c0_141, %c0_142, %c224_143] : memref<1x8x8x288xbf16, #tpu.memory_space<vmem>>, vector<1x7x8x32xbf16>
    tpu.vector_store %arg11[%c0_140, %c0_141, %c0_142, %c224_143], %46 {strides = array<i32>} : memref<1x8x8x288xbf16, #tpu.memory_space<vmem>>, vector<1x7x8x32xbf16>,
    %c0_144 = arith.constant 0 : index
    %c1_145 = arith.constant 1 : index
    %c1_146 = arith.constant 1 : index
    %c0_147 = arith.constant 0 : index
    %48 = vector.load %arg12[%c0_144, %c1_145, %c1_146, %c0_147] : memref<1x8x8x32xbf16, #tpu.memory_space<vmem>>, vector<1x7x7x32xbf16>
    %c0_148 = arith.constant 0 : index
    %c0_149 = arith.constant 0 : index
    %c0_150 = arith.constant 0 : index
    %c256_151 = arith.constant 256 : index
    %49 = vector.load %arg11[%c0_148, %c0_149, %c0_150, %c256_151] : memref<1x8x8x288xbf16, #tpu.memory_space<vmem>>, vector<1x7x7x32xbf16>
    tpu.vector_store %arg11[%c0_148, %c0_149, %c0_150, %c256_151], %48 {strides = array<i32>} : memref<1x8x8x288xbf16, #tpu.memory_space<vmem>>, vector<1x7x7x32xbf16>,
    %c0_152 = arith.constant 0 : index
    %c0_153 = arith.constant 0 : index
    %c0_154 = arith.constant 0 : index
    %c0_155 = arith.constant 0 : index
    %50 = vector.load %arg11[%c0_152, %c0_153, %c0_154, %c0_155] : memref<1x8x8x288xbf16, #tpu.memory_space<vmem>>, vector<1x8x8x288xbf16>
    %51 = vector.shape_cast %50 : vector<1x8x8x288xbf16> to vector<64x288xbf16>
    %c0_156 = arith.constant 0 : index
    %c0_157 = arith.constant 0 : index
    %52 = vector.load %arg4[%c0_156, %c0_157] : memref<288x64xbf16, #tpu.memory_space<vmem>>, vector<288x64xbf16>
    %cst_158 = arith.constant dense<0.000000e+00> : vector<64x64xf32>
    %53 = tpu.matmul %51, %52, %cst_158 {dimension_numbers = #tpu.dot_dimension_numbers<[1], [0], [0], [1], [0, 0, 1, 1], [], []>} : vector<64x288xbf16>, vector<288x64xbf16>, vector<64x64xf32> -> vector<64x64xf32>
    %c0_159 = arith.constant 0 : index
    %c0_160 = arith.constant 0 : index
    %54 = vector.load %arg5[%c0_159, %c0_160] : memref<1x64xf32, #tpu.memory_space<vmem>>, vector<1x64xf32>
    %55 = vector.broadcast %54 : vector<1x64xf32> to vector<64x64xf32>
    %56 = arith.addf %53, %55 : vector<64x64xf32>
    %cst_161 = arith.constant 0.000000e+00 : f32
    %57 = vector.broadcast %cst_161 : f32 to vector<64x64xf32>
    %58 = arith.maximumf %56, %57 : vector<64x64xf32>
    %59 = vector.shape_cast %58 : vector<64x64xf32> to vector<1x64x64xf32>
    %60 = arith.truncf %59 : vector<1x64x64xf32> to vector<1x64x64xbf16>
    %c0_162 = arith.constant 0 : index
    %c0_163 = arith.constant 0 : index
    %c0_164 = arith.constant 0 : index
    %61 = vector.load %arg13[%c0_162, %c0_163, %c0_164] : memref<1x64x64xbf16, #tpu.memory_space<vmem>>, vector<1x64x64xbf16>
    tpu.vector_store %arg13[%c0_162, %c0_163, %c0_164], %60 {strides = array<i32>} : memref<1x64x64xbf16, #tpu.memory_space<vmem>>, vector<1x64x64xbf16>,
    %c0_165 = arith.constant 0 : index
    %c0_166 = arith.constant 0 : index
    %c0_167 = arith.constant 0 : index
    %62 = vector.load %arg13[%c0_165, %c0_166, %c0_167] : memref<1x64x64xbf16, #tpu.memory_space<vmem>>, vector<1x1x64xbf16>
    %63 = vector.shape_cast %62 : vector<1x1x64xbf16> to vector<1x64xbf16>
    %c0_168 = arith.constant 0 : index
    %c0_169 = arith.constant 0 : index
    %64 = vector.load %arg14[%c0_168, %c0_169] : memref<1x4096xbf16, #tpu.memory_space<vmem>>, vector<1x64xbf16>
    tpu.vector_store %arg14[%c0_168, %c0_169], %63 {strides = array<i32>} : memref<1x4096xbf16, #tpu.memory_space<vmem>>, vector<1x64xbf16>,
    %c0_170 = arith.constant 0 : index
    %c1_171 = arith.constant 1 : index
    %c0_172 = arith.constant 0 : index
    %65 = vector.load %arg13[%c0_170, %c1_171, %c0_172] : memref<1x64x64xbf16, #tpu.memory_space<vmem>>, vector<1x1x64xbf16>
    %66 = vector.shape_cast %65 : vector<1x1x64xbf16> to vector<1x64xbf16>
    %c0_173 = arith.constant 0 : index
    %c64_174 = arith.constant 64 : index
    %67 = vector.load %arg14[%c0_173, %c64_174] : memref<1x4096xbf16, #tpu.memory_space<vmem>>, vector<1x64xbf16>
    tpu.vector_store %arg14[%c0_173, %c64_174], %66 {strides = array<i32>} : memref<1x4096xbf16, #tpu.memory_space<vmem>>, vector<1x64xbf16>,
    %c0_175 = arith.constant 0 : index
    %c2 = arith.constant 2 : index
    %c0_176 = arith.constant 0 : index
    %68 = vector.load %arg13[%c0_175, %c2, %c0_176] : memref<1x64x64xbf16, #tpu.memory_space<vmem>>, vector<1x1x64xbf16>
    %69 = vector.shape_cast %68 : vector<1x1x64xbf16> to vector<1x64xbf16>
    %c0_177 = arith.constant 0 : index
    %c128_178 = arith.constant 128 : index
    %70 = vector.load %arg14[%c0_177, %c128_178] : memref<1x4096xbf16, #tpu.memory_space<vmem>>, vector<1x64xbf16>
    tpu.vector_store %arg14[%c0_177, %c128_178], %69 {strides = array<i32>} : memref<1x4096xbf16, #tpu.memory_space<vmem>>, vector<1x64xbf16>,
    %c0_179 = arith.constant 0 : index
    %c3 = arith.constant 3 : index
    %c0_180 = arith.constant 0 : index
    %71 = vector.load %arg13[%c0_179, %c3, %c0_180] : memref<1x64x64xbf16, #tpu.memory_space<vmem>>, vector<1x1x64xbf16>
    %72 = vector.shape_cast %71 : vector<1x1x64xbf16> to vector<1x64xbf16>
    %c0_181 = arith.constant 0 : index
    %c192_182 = arith.constant 192 : index
    %73 = vector.load %arg14[%c0_181, %c192_182] : memref<1x4096xbf16, #tpu.memory_space<vmem>>, vector<1x64xbf16>
    tpu.vector_store %arg14[%c0_181, %c192_182], %72 {strides = array<i32>} : memref<1x4096xbf16, #tpu.memory_space<vmem>>, vector<1x64xbf16>,
    %c0_183 = arith.constant 0 : index
    %c4 = arith.constant 4 : index
    %c0_184 = arith.constant 0 : index
    %74 = vector.load %arg13[%c0_183, %c4, %c0_184] : memref<1x64x64xbf16, #tpu.memory_space<vmem>>, vector<1x1x64xbf16>
    %75 = vector.shape_cast %74 : vector<1x1x64xbf16> to vector<1x64xbf16>
    %c0_185 = arith.constant 0 : index
    %c256_186 = arith.constant 256 : index
    %76 = vector.load %arg14[%c0_185, %c256_186] : memref<1x4096xbf16, #tpu.memory_space<vmem>>, vector<1x64xbf16>
    tpu.vector_store %arg14[%c0_185, %c256_186], %75 {strides = array<i32>} : memref<1x4096xbf16, #tpu.memory_space<vmem>>, vector<1x64xbf16>,
    %c0_187 = arith.constant 0 : index
    %c5 = arith.constant 5 : index
    %c0_188 = arith.constant 0 : index
    %77 = vector.load %arg13[%c0_187, %c5, %c0_188] : memref<1x64x64xbf16, #tpu.memory_space<vmem>>, vector<1x1x64xbf16>
    %78 = vector.shape_cast %77 : vector<1x1x64xbf16> to vector<1x64xbf16>
    %c0_189 = arith.constant 0 : index
    %c320 = arith.constant 320 : index
    %79 = vector.load %arg14[%c0_189, %c320] : memref<1x4096xbf16, #tpu.memory_space<vmem>>, vector<1x64xbf16>
    tpu.vector_store %arg14[%c0_189, %c320], %78 {strides = array<i32>} : memref<1x4096xbf16, #tpu.memory_space<vmem>>, vector<1x64xbf16>,
    %c0_190 = arith.constant 0 : index
    %c6 = arith.constant 6 : index
    %c0_191 = arith.constant 0 : index
    %80 = vector.load %arg13[%c0_190, %c6, %c0_191] : memref<1x64x64xbf16, #tpu.memory_space<vmem>>, vector<1x1x64xbf16>
    %81 = vector.shape_cast %80 : vector<1x1x64xbf16> to vector<1x64xbf16>
    %c0_192 = arith.constant 0 : index
    %c384 = arith.constant 384 : index
    %82 = vector.load %arg14[%c0_192, %c384] : memref<1x4096xbf16, #tpu.memory_space<vmem>>, vector<1x64xbf16>
    tpu.vector_store %arg14[%c0_192, %c384], %81 {strides = array<i32>} : memref<1x4096xbf16, #tpu.memory_space<vmem>>, vector<1x64xbf16>,
    %c0_193 = arith.constant 0 : index
    %c7 = arith.constant 7 : index
    %c0_194 = arith.constant 0 : index
    %83 = vector.load %arg13[%c0_193, %c7, %c0_194] : memref<1x64x64xbf16, #tpu.memory_space<vmem>>, vector<1x1x64xbf16>
    %84 = vector.shape_cast %83 : vector<1x1x64xbf16> to vector<1x64xbf16>
    %c0_195 = arith.constant 0 : index
    %c448 = arith.constant 448 : index
    %85 = vector.load %arg14[%c0_195, %c448] : memref<1x4096xbf16, #tpu.memory_space<vmem>>, vector<1x64xbf16>
    tpu.vector_store %arg14[%c0_195, %c448], %84 {strides = array<i32>} : memref<1x4096xbf16, #tpu.memory_space<vmem>>, vector<1x64xbf16>,
    %c0_196 = arith.constant 0 : index
    %c8 = arith.constant 8 : index
    %c0_197 = arith.constant 0 : index
    %86 = vector.load %arg13[%c0_196, %c8, %c0_197] : memref<1x64x64xbf16, #tpu.memory_space<vmem>>, vector<1x1x64xbf16>
    %87 = vector.shape_cast %86 : vector<1x1x64xbf16> to vector<1x64xbf16>
    %c0_198 = arith.constant 0 : index
    %c512 = arith.constant 512 : index
    %88 = vector.load %arg14[%c0_198, %c512] : memref<1x4096xbf16, #tpu.memory_space<vmem>>, vector<1x64xbf16>
    tpu.vector_store %arg14[%c0_198, %c512], %87 {strides = array<i32>} : memref<1x4096xbf16, #tpu.memory_space<vmem>>, vector<1x64xbf16>,
    %c0_199 = arith.constant 0 : index
    %c9 = arith.constant 9 : index
    %c0_200 = arith.constant 0 : index
    %89 = vector.load %arg13[%c0_199, %c9, %c0_200] : memref<1x64x64xbf16, #tpu.memory_space<vmem>>, vector<1x1x64xbf16>
    %90 = vector.shape_cast %89 : vector<1x1x64xbf16> to vector<1x64xbf16>
    %c0_201 = arith.constant 0 : index
    %c576 = arith.constant 576 : index
    %91 = vector.load %arg14[%c0_201, %c576] : memref<1x4096xbf16, #tpu.memory_space<vmem>>, vector<1x64xbf16>
    tpu.vector_store %arg14[%c0_201, %c576], %90 {strides = array<i32>} : memref<1x4096xbf16, #tpu.memory_space<vmem>>, vector<1x64xbf16>,
    %c0_202 = arith.constant 0 : index
    %c10 = arith.constant 10 : index
    %c0_203 = arith.constant 0 : index
    %92 = vector.load %arg13[%c0_202, %c10, %c0_203] : memref<1x64x64xbf16, #tpu.memory_space<vmem>>, vector<1x1x64xbf16>
    %93 = vector.shape_cast %92 : vector<1x1x64xbf16> to vector<1x64xbf16>
    %c0_204 = arith.constant 0 : index
    %c640 = arith.constant 640 : index
    %94 = vector.load %arg14[%c0_204, %c640] : memref<1x4096xbf16, #tpu.memory_space<vmem>>, vector<1x64xbf16>
    tpu.vector_store %arg14[%c0_204, %c640], %93 {strides = array<i32>} : memref<1x4096xbf16, #tpu.memory_space<vmem>>, vector<1x64xbf16>,
    %c0_205 = arith.constant 0 : index
    %c11 = arith.constant 11 : index
    %c0_206 = arith.constant 0 : index
    %95 = vector.load %arg13[%c0_205, %c11, %c0_206] : memref<1x64x64xbf16, #tpu.memory_space<vmem>>, vector<1x1x64xbf16>
    %96 = vector.shape_cast %95 : vector<1x1x64xbf16> to vector<1x64xbf16>
    %c0_207 = arith.constant 0 : index
    %c704 = arith.constant 704 : index
    %97 = vector.load %arg14[%c0_207, %c704] : memref<1x4096xbf16, #tpu.memory_space<vmem>>, vector<1x64xbf16>
    tpu.vector_store %arg14[%c0_207, %c704], %96 {strides = array<i32>} : memref<1x4096xbf16, #tpu.memory_space<vmem>>, vector<1x64xbf16>,
    %c0_208 = arith.constant 0 : index
    %c12 = arith.constant 12 : index
    %c0_209 = arith.constant 0 : index
    %98 = vector.load %arg13[%c0_208, %c12, %c0_209] : memref<1x64x64xbf16, #tpu.memory_space<vmem>>, vector<1x1x64xbf16>
    %99 = vector.shape_cast %98 : vector<1x1x64xbf16> to vector<1x64xbf16>
    %c0_210 = arith.constant 0 : index
    %c768 = arith.constant 768 : index
    %100 = vector.load %arg14[%c0_210, %c768] : memref<1x4096xbf16, #tpu.memory_space<vmem>>, vector<1x64xbf16>
    tpu.vector_store %arg14[%c0_210, %c768], %99 {strides = array<i32>} : memref<1x4096xbf16, #tpu.memory_space<vmem>>, vector<1x64xbf16>,
    %c0_211 = arith.constant 0 : index
    %c13 = arith.constant 13 : index
    %c0_212 = arith.constant 0 : index
    %101 = vector.load %arg13[%c0_211, %c13, %c0_212] : memref<1x64x64xbf16, #tpu.memory_space<vmem>>, vector<1x1x64xbf16>
    %102 = vector.shape_cast %101 : vector<1x1x64xbf16> to vector<1x64xbf16>
    %c0_213 = arith.constant 0 : index
    %c832 = arith.constant 832 : index
    %103 = vector.load %arg14[%c0_213, %c832] : memref<1x4096xbf16, #tpu.memory_space<vmem>>, vector<1x64xbf16>
    tpu.vector_store %arg14[%c0_213, %c832], %102 {strides = array<i32>} : memref<1x4096xbf16, #tpu.memory_space<vmem>>, vector<1x64xbf16>,
    %c0_214 = arith.constant 0 : index
    %c14 = arith.constant 14 : index
    %c0_215 = arith.constant 0 : index
    %104 = vector.load %arg13[%c0_214, %c14, %c0_215] : memref<1x64x64xbf16, #tpu.memory_space<vmem>>, vector<1x1x64xbf16>
    %105 = vector.shape_cast %104 : vector<1x1x64xbf16> to vector<1x64xbf16>
    %c0_216 = arith.constant 0 : index
    %c896 = arith.constant 896 : index
    %106 = vector.load %arg14[%c0_216, %c896] : memref<1x4096xbf16, #tpu.memory_space<vmem>>, vector<1x64xbf16>
    tpu.vector_store %arg14[%c0_216, %c896], %105 {strides = array<i32>} : memref<1x4096xbf16, #tpu.memory_space<vmem>>, vector<1x64xbf16>,
    %c0_217 = arith.constant 0 : index
    %c15 = arith.constant 15 : index
    %c0_218 = arith.constant 0 : index
    %107 = vector.load %arg13[%c0_217, %c15, %c0_218] : memref<1x64x64xbf16, #tpu.memory_space<vmem>>, vector<1x1x64xbf16>
    %108 = vector.shape_cast %107 : vector<1x1x64xbf16> to vector<1x64xbf16>
    %c0_219 = arith.constant 0 : index
    %c960 = arith.constant 960 : index
    %109 = vector.load %arg14[%c0_219, %c960] : memref<1x4096xbf16, #tpu.memory_space<vmem>>, vector<1x64xbf16>
    tpu.vector_store %arg14[%c0_219, %c960], %108 {strides = array<i32>} : memref<1x4096xbf16, #tpu.memory_space<vmem>>, vector<1x64xbf16>,
    %c0_220 = arith.constant 0 : index
    %c16 = arith.constant 16 : index
    %c0_221 = arith.constant 0 : index
    %110 = vector.load %arg13[%c0_220, %c16, %c0_221] : memref<1x64x64xbf16, #tpu.memory_space<vmem>>, vector<1x1x64xbf16>
    %111 = vector.shape_cast %110 : vector<1x1x64xbf16> to vector<1x64xbf16>
    %c0_222 = arith.constant 0 : index
    %c1024 = arith.constant 1024 : index
    %112 = vector.load %arg14[%c0_222, %c1024] : memref<1x4096xbf16, #tpu.memory_space<vmem>>, vector<1x64xbf16>
    tpu.vector_store %arg14[%c0_222, %c1024], %111 {strides = array<i32>} : memref<1x4096xbf16, #tpu.memory_space<vmem>>, vector<1x64xbf16>,
    %c0_223 = arith.constant 0 : index
    %c17 = arith.constant 17 : index
    %c0_224 = arith.constant 0 : index
    %113 = vector.load %arg13[%c0_223, %c17, %c0_224] : memref<1x64x64xbf16, #tpu.memory_space<vmem>>, vector<1x1x64xbf16>
    %114 = vector.shape_cast %113 : vector<1x1x64xbf16> to vector<1x64xbf16>
    %c0_225 = arith.constant 0 : index
    %c1088 = arith.constant 1088 : index
    %115 = vector.load %arg14[%c0_225, %c1088] : memref<1x4096xbf16, #tpu.memory_space<vmem>>, vector<1x64xbf16>
    tpu.vector_store %arg14[%c0_225, %c1088], %114 {strides = array<i32>} : memref<1x4096xbf16, #tpu.memory_space<vmem>>, vector<1x64xbf16>,
    %c0_226 = arith.constant 0 : index
    %c18 = arith.constant 18 : index
    %c0_227 = arith.constant 0 : index
    %116 = vector.load %arg13[%c0_226, %c18, %c0_227] : memref<1x64x64xbf16, #tpu.memory_space<vmem>>, vector<1x1x64xbf16>
    %117 = vector.shape_cast %116 : vector<1x1x64xbf16> to vector<1x64xbf16>
    %c0_228 = arith.constant 0 : index
    %c1152 = arith.constant 1152 : index
    %118 = vector.load %arg14[%c0_228, %c1152] : memref<1x4096xbf16, #tpu.memory_space<vmem>>, vector<1x64xbf16>
    tpu.vector_store %arg14[%c0_228, %c1152], %117 {strides = array<i32>} : memref<1x4096xbf16, #tpu.memory_space<vmem>>, vector<1x64xbf16>,
    %c0_229 = arith.constant 0 : index
    %c19 = arith.constant 19 : index
    %c0_230 = arith.constant 0 : index
    %119 = vector.load %arg13[%c0_229, %c19, %c0_230] : memref<1x64x64xbf16, #tpu.memory_space<vmem>>, vector<1x1x64xbf16>
    %120 = vector.shape_cast %119 : vector<1x1x64xbf16> to vector<1x64xbf16>
    %c0_231 = arith.constant 0 : index
    %c1216 = arith.constant 1216 : index
    %121 = vector.load %arg14[%c0_231, %c1216] : memref<1x4096xbf16, #tpu.memory_space<vmem>>, vector<1x64xbf16>
    tpu.vector_store %arg14[%c0_231, %c1216], %120 {strides = array<i32>} : memref<1x4096xbf16, #tpu.memory_space<vmem>>, vector<1x64xbf16>,
    %c0_232 = arith.constant 0 : index
    %c20 = arith.constant 20 : index
    %c0_233 = arith.constant 0 : index
    %122 = vector.load %arg13[%c0_232, %c20, %c0_233] : memref<1x64x64xbf16, #tpu.memory_space<vmem>>, vector<1x1x64xbf16>
    %123 = vector.shape_cast %122 : vector<1x1x64xbf16> to vector<1x64xbf16>
    %c0_234 = arith.constant 0 : index
    %c1280 = arith.constant 1280 : index
    %124 = vector.load %arg14[%c0_234, %c1280] : memref<1x4096xbf16, #tpu.memory_space<vmem>>, vector<1x64xbf16>
    tpu.vector_store %arg14[%c0_234, %c1280], %123 {strides = array<i32>} : memref<1x4096xbf16, #tpu.memory_space<vmem>>, vector<1x64xbf16>,
    %c0_235 = arith.constant 0 : index
    %c21 = arith.constant 21 : index
    %c0_236 = arith.constant 0 : index
    %125 = vector.load %arg13[%c0_235, %c21, %c0_236] : memref<1x64x64xbf16, #tpu.memory_space<vmem>>, vector<1x1x64xbf16>
    %126 = vector.shape_cast %125 : vector<1x1x64xbf16> to vector<1x64xbf16>
    %c0_237 = arith.constant 0 : index
    %c1344 = arith.constant 1344 : index
    %127 = vector.load %arg14[%c0_237, %c1344] : memref<1x4096xbf16, #tpu.memory_space<vmem>>, vector<1x64xbf16>
    tpu.vector_store %arg14[%c0_237, %c1344], %126 {strides = array<i32>} : memref<1x4096xbf16, #tpu.memory_space<vmem>>, vector<1x64xbf16>,
    %c0_238 = arith.constant 0 : index
    %c22 = arith.constant 22 : index
    %c0_239 = arith.constant 0 : index
    %128 = vector.load %arg13[%c0_238, %c22, %c0_239] : memref<1x64x64xbf16, #tpu.memory_space<vmem>>, vector<1x1x64xbf16>
    %129 = vector.shape_cast %128 : vector<1x1x64xbf16> to vector<1x64xbf16>
    %c0_240 = arith.constant 0 : index
    %c1408 = arith.constant 1408 : index
    %130 = vector.load %arg14[%c0_240, %c1408] : memref<1x4096xbf16, #tpu.memory_space<vmem>>, vector<1x64xbf16>
    tpu.vector_store %arg14[%c0_240, %c1408], %129 {strides = array<i32>} : memref<1x4096xbf16, #tpu.memory_space<vmem>>, vector<1x64xbf16>,
    %c0_241 = arith.constant 0 : index
    %c23 = arith.constant 23 : index
    %c0_242 = arith.constant 0 : index
    %131 = vector.load %arg13[%c0_241, %c23, %c0_242] : memref<1x64x64xbf16, #tpu.memory_space<vmem>>, vector<1x1x64xbf16>
    %132 = vector.shape_cast %131 : vector<1x1x64xbf16> to vector<1x64xbf16>
    %c0_243 = arith.constant 0 : index
    %c1472 = arith.constant 1472 : index
    %133 = vector.load %arg14[%c0_243, %c1472] : memref<1x4096xbf16, #tpu.memory_space<vmem>>, vector<1x64xbf16>
    tpu.vector_store %arg14[%c0_243, %c1472], %132 {strides = array<i32>} : memref<1x4096xbf16, #tpu.memory_space<vmem>>, vector<1x64xbf16>,
    %c0_244 = arith.constant 0 : index
    %c24 = arith.constant 24 : index
    %c0_245 = arith.constant 0 : index
    %134 = vector.load %arg13[%c0_244, %c24, %c0_245] : memref<1x64x64xbf16, #tpu.memory_space<vmem>>, vector<1x1x64xbf16>
    %135 = vector.shape_cast %134 : vector<1x1x64xbf16> to vector<1x64xbf16>
    %c0_246 = arith.constant 0 : index
    %c1536 = arith.constant 1536 : index
    %136 = vector.load %arg14[%c0_246, %c1536] : memref<1x4096xbf16, #tpu.memory_space<vmem>>, vector<1x64xbf16>
    tpu.vector_store %arg14[%c0_246, %c1536], %135 {strides = array<i32>} : memref<1x4096xbf16, #tpu.memory_space<vmem>>, vector<1x64xbf16>,
    %c0_247 = arith.constant 0 : index
    %c25 = arith.constant 25 : index
    %c0_248 = arith.constant 0 : index
    %137 = vector.load %arg13[%c0_247, %c25, %c0_248] : memref<1x64x64xbf16, #tpu.memory_space<vmem>>, vector<1x1x64xbf16>
    %138 = vector.shape_cast %137 : vector<1x1x64xbf16> to vector<1x64xbf16>
    %c0_249 = arith.constant 0 : index
    %c1600 = arith.constant 1600 : index
    %139 = vector.load %arg14[%c0_249, %c1600] : memref<1x4096xbf16, #tpu.memory_space<vmem>>, vector<1x64xbf16>
    tpu.vector_store %arg14[%c0_249, %c1600], %138 {strides = array<i32>} : memref<1x4096xbf16, #tpu.memory_space<vmem>>, vector<1x64xbf16>,
    %c0_250 = arith.constant 0 : index
    %c26 = arith.constant 26 : index
    %c0_251 = arith.constant 0 : index
    %140 = vector.load %arg13[%c0_250, %c26, %c0_251] : memref<1x64x64xbf16, #tpu.memory_space<vmem>>, vector<1x1x64xbf16>
    %141 = vector.shape_cast %140 : vector<1x1x64xbf16> to vector<1x64xbf16>
    %c0_252 = arith.constant 0 : index
    %c1664 = arith.constant 1664 : index
    %142 = vector.load %arg14[%c0_252, %c1664] : memref<1x4096xbf16, #tpu.memory_space<vmem>>, vector<1x64xbf16>
    tpu.vector_store %arg14[%c0_252, %c1664], %141 {strides = array<i32>} : memref<1x4096xbf16, #tpu.memory_space<vmem>>, vector<1x64xbf16>,
    %c0_253 = arith.constant 0 : index
    %c27 = arith.constant 27 : index
    %c0_254 = arith.constant 0 : index
    %143 = vector.load %arg13[%c0_253, %c27, %c0_254] : memref<1x64x64xbf16, #tpu.memory_space<vmem>>, vector<1x1x64xbf16>
    %144 = vector.shape_cast %143 : vector<1x1x64xbf16> to vector<1x64xbf16>
    %c0_255 = arith.constant 0 : index
    %c1728 = arith.constant 1728 : index
    %145 = vector.load %arg14[%c0_255, %c1728] : memref<1x4096xbf16, #tpu.memory_space<vmem>>, vector<1x64xbf16>
    tpu.vector_store %arg14[%c0_255, %c1728], %144 {strides = array<i32>} : memref<1x4096xbf16, #tpu.memory_space<vmem>>, vector<1x64xbf16>,
    %c0_256 = arith.constant 0 : index
    %c28 = arith.constant 28 : index
    %c0_257 = arith.constant 0 : index
    %146 = vector.load %arg13[%c0_256, %c28, %c0_257] : memref<1x64x64xbf16, #tpu.memory_space<vmem>>, vector<1x1x64xbf16>
    %147 = vector.shape_cast %146 : vector<1x1x64xbf16> to vector<1x64xbf16>
    %c0_258 = arith.constant 0 : index
    %c1792 = arith.constant 1792 : index
    %148 = vector.load %arg14[%c0_258, %c1792] : memref<1x4096xbf16, #tpu.memory_space<vmem>>, vector<1x64xbf16>
    tpu.vector_store %arg14[%c0_258, %c1792], %147 {strides = array<i32>} : memref<1x4096xbf16, #tpu.memory_space<vmem>>, vector<1x64xbf16>,
    %c0_259 = arith.constant 0 : index
    %c29 = arith.constant 29 : index
    %c0_260 = arith.constant 0 : index
    %149 = vector.load %arg13[%c0_259, %c29, %c0_260] : memref<1x64x64xbf16, #tpu.memory_space<vmem>>, vector<1x1x64xbf16>
    %150 = vector.shape_cast %149 : vector<1x1x64xbf16> to vector<1x64xbf16>
    %c0_261 = arith.constant 0 : index
    %c1856 = arith.constant 1856 : index
    %151 = vector.load %arg14[%c0_261, %c1856] : memref<1x4096xbf16, #tpu.memory_space<vmem>>, vector<1x64xbf16>
    tpu.vector_store %arg14[%c0_261, %c1856], %150 {strides = array<i32>} : memref<1x4096xbf16, #tpu.memory_space<vmem>>, vector<1x64xbf16>,
    %c0_262 = arith.constant 0 : index
    %c30 = arith.constant 30 : index
    %c0_263 = arith.constant 0 : index
    %152 = vector.load %arg13[%c0_262, %c30, %c0_263] : memref<1x64x64xbf16, #tpu.memory_space<vmem>>, vector<1x1x64xbf16>
    %153 = vector.shape_cast %152 : vector<1x1x64xbf16> to vector<1x64xbf16>
    %c0_264 = arith.constant 0 : index
    %c1920 = arith.constant 1920 : index
    %154 = vector.load %arg14[%c0_264, %c1920] : memref<1x4096xbf16, #tpu.memory_space<vmem>>, vector<1x64xbf16>
    tpu.vector_store %arg14[%c0_264, %c1920], %153 {strides = array<i32>} : memref<1x4096xbf16, #tpu.memory_space<vmem>>, vector<1x64xbf16>,
    %c0_265 = arith.constant 0 : index
    %c31 = arith.constant 31 : index
    %c0_266 = arith.constant 0 : index
    %155 = vector.load %arg13[%c0_265, %c31, %c0_266] : memref<1x64x64xbf16, #tpu.memory_space<vmem>>, vector<1x1x64xbf16>
    %156 = vector.shape_cast %155 : vector<1x1x64xbf16> to vector<1x64xbf16>
    %c0_267 = arith.constant 0 : index
    %c1984 = arith.constant 1984 : index
    %157 = vector.load %arg14[%c0_267, %c1984] : memref<1x4096xbf16, #tpu.memory_space<vmem>>, vector<1x64xbf16>
    tpu.vector_store %arg14[%c0_267, %c1984], %156 {strides = array<i32>} : memref<1x4096xbf16, #tpu.memory_space<vmem>>, vector<1x64xbf16>,
    %c0_268 = arith.constant 0 : index
    %c32_269 = arith.constant 32 : index
    %c0_270 = arith.constant 0 : index
    %158 = vector.load %arg13[%c0_268, %c32_269, %c0_270] : memref<1x64x64xbf16, #tpu.memory_space<vmem>>, vector<1x1x64xbf16>
    %159 = vector.shape_cast %158 : vector<1x1x64xbf16> to vector<1x64xbf16>
    %c0_271 = arith.constant 0 : index
    %c2048 = arith.constant 2048 : index
    %160 = vector.load %arg14[%c0_271, %c2048] : memref<1x4096xbf16, #tpu.memory_space<vmem>>, vector<1x64xbf16>
    tpu.vector_store %arg14[%c0_271, %c2048], %159 {strides = array<i32>} : memref<1x4096xbf16, #tpu.memory_space<vmem>>, vector<1x64xbf16>,
    %c0_272 = arith.constant 0 : index
    %c33 = arith.constant 33 : index
    %c0_273 = arith.constant 0 : index
    %161 = vector.load %arg13[%c0_272, %c33, %c0_273] : memref<1x64x64xbf16, #tpu.memory_space<vmem>>, vector<1x1x64xbf16>
    %162 = vector.shape_cast %161 : vector<1x1x64xbf16> to vector<1x64xbf16>
    %c0_274 = arith.constant 0 : index
    %c2112 = arith.constant 2112 : index
    %163 = vector.load %arg14[%c0_274, %c2112] : memref<1x4096xbf16, #tpu.memory_space<vmem>>, vector<1x64xbf16>
    tpu.vector_store %arg14[%c0_274, %c2112], %162 {strides = array<i32>} : memref<1x4096xbf16, #tpu.memory_space<vmem>>, vector<1x64xbf16>,
    %c0_275 = arith.constant 0 : index
    %c34 = arith.constant 34 : index
    %c0_276 = arith.constant 0 : index
    %164 = vector.load %arg13[%c0_275, %c34, %c0_276] : memref<1x64x64xbf16, #tpu.memory_space<vmem>>, vector<1x1x64xbf16>
    %165 = vector.shape_cast %164 : vector<1x1x64xbf16> to vector<1x64xbf16>
    %c0_277 = arith.constant 0 : index
    %c2176 = arith.constant 2176 : index
    %166 = vector.load %arg14[%c0_277, %c2176] : memref<1x4096xbf16, #tpu.memory_space<vmem>>, vector<1x64xbf16>
    tpu.vector_store %arg14[%c0_277, %c2176], %165 {strides = array<i32>} : memref<1x4096xbf16, #tpu.memory_space<vmem>>, vector<1x64xbf16>,
    %c0_278 = arith.constant 0 : index
    %c35 = arith.constant 35 : index
    %c0_279 = arith.constant 0 : index
    %167 = vector.load %arg13[%c0_278, %c35, %c0_279] : memref<1x64x64xbf16, #tpu.memory_space<vmem>>, vector<1x1x64xbf16>
    %168 = vector.shape_cast %167 : vector<1x1x64xbf16> to vector<1x64xbf16>
    %c0_280 = arith.constant 0 : index
    %c2240 = arith.constant 2240 : index
    %169 = vector.load %arg14[%c0_280, %c2240] : memref<1x4096xbf16, #tpu.memory_space<vmem>>, vector<1x64xbf16>
    tpu.vector_store %arg14[%c0_280, %c2240], %168 {strides = array<i32>} : memref<1x4096xbf16, #tpu.memory_space<vmem>>, vector<1x64xbf16>,
    %c0_281 = arith.constant 0 : index
    %c36 = arith.constant 36 : index
    %c0_282 = arith.constant 0 : index
    %170 = vector.load %arg13[%c0_281, %c36, %c0_282] : memref<1x64x64xbf16, #tpu.memory_space<vmem>>, vector<1x1x64xbf16>
    %171 = vector.shape_cast %170 : vector<1x1x64xbf16> to vector<1x64xbf16>
    %c0_283 = arith.constant 0 : index
    %c2304 = arith.constant 2304 : index
    %172 = vector.load %arg14[%c0_283, %c2304] : memref<1x4096xbf16, #tpu.memory_space<vmem>>, vector<1x64xbf16>
    tpu.vector_store %arg14[%c0_283, %c2304], %171 {strides = array<i32>} : memref<1x4096xbf16, #tpu.memory_space<vmem>>, vector<1x64xbf16>,
    %c0_284 = arith.constant 0 : index
    %c37 = arith.constant 37 : index
    %c0_285 = arith.constant 0 : index
    %173 = vector.load %arg13[%c0_284, %c37, %c0_285] : memref<1x64x64xbf16, #tpu.memory_space<vmem>>, vector<1x1x64xbf16>
    %174 = vector.shape_cast %173 : vector<1x1x64xbf16> to vector<1x64xbf16>
    %c0_286 = arith.constant 0 : index
    %c2368 = arith.constant 2368 : index
    %175 = vector.load %arg14[%c0_286, %c2368] : memref<1x4096xbf16, #tpu.memory_space<vmem>>, vector<1x64xbf16>
    tpu.vector_store %arg14[%c0_286, %c2368], %174 {strides = array<i32>} : memref<1x4096xbf16, #tpu.memory_space<vmem>>, vector<1x64xbf16>,
    %c0_287 = arith.constant 0 : index
    %c38 = arith.constant 38 : index
    %c0_288 = arith.constant 0 : index
    %176 = vector.load %arg13[%c0_287, %c38, %c0_288] : memref<1x64x64xbf16, #tpu.memory_space<vmem>>, vector<1x1x64xbf16>
    %177 = vector.shape_cast %176 : vector<1x1x64xbf16> to vector<1x64xbf16>
    %c0_289 = arith.constant 0 : index
    %c2432 = arith.constant 2432 : index
    %178 = vector.load %arg14[%c0_289, %c2432] : memref<1x4096xbf16, #tpu.memory_space<vmem>>, vector<1x64xbf16>
    tpu.vector_store %arg14[%c0_289, %c2432], %177 {strides = array<i32>} : memref<1x4096xbf16, #tpu.memory_space<vmem>>, vector<1x64xbf16>,
    %c0_290 = arith.constant 0 : index
    %c39 = arith.constant 39 : index
    %c0_291 = arith.constant 0 : index
    %179 = vector.load %arg13[%c0_290, %c39, %c0_291] : memref<1x64x64xbf16, #tpu.memory_space<vmem>>, vector<1x1x64xbf16>
    %180 = vector.shape_cast %179 : vector<1x1x64xbf16> to vector<1x64xbf16>
    %c0_292 = arith.constant 0 : index
    %c2496 = arith.constant 2496 : index
    %181 = vector.load %arg14[%c0_292, %c2496] : memref<1x4096xbf16, #tpu.memory_space<vmem>>, vector<1x64xbf16>
    tpu.vector_store %arg14[%c0_292, %c2496], %180 {strides = array<i32>} : memref<1x4096xbf16, #tpu.memory_space<vmem>>, vector<1x64xbf16>,
    %c0_293 = arith.constant 0 : index
    %c40 = arith.constant 40 : index
    %c0_294 = arith.constant 0 : index
    %182 = vector.load %arg13[%c0_293, %c40, %c0_294] : memref<1x64x64xbf16, #tpu.memory_space<vmem>>, vector<1x1x64xbf16>
    %183 = vector.shape_cast %182 : vector<1x1x64xbf16> to vector<1x64xbf16>
    %c0_295 = arith.constant 0 : index
    %c2560 = arith.constant 2560 : index
    %184 = vector.load %arg14[%c0_295, %c2560] : memref<1x4096xbf16, #tpu.memory_space<vmem>>, vector<1x64xbf16>
    tpu.vector_store %arg14[%c0_295, %c2560], %183 {strides = array<i32>} : memref<1x4096xbf16, #tpu.memory_space<vmem>>, vector<1x64xbf16>,
    %c0_296 = arith.constant 0 : index
    %c41 = arith.constant 41 : index
    %c0_297 = arith.constant 0 : index
    %185 = vector.load %arg13[%c0_296, %c41, %c0_297] : memref<1x64x64xbf16, #tpu.memory_space<vmem>>, vector<1x1x64xbf16>
    %186 = vector.shape_cast %185 : vector<1x1x64xbf16> to vector<1x64xbf16>
    %c0_298 = arith.constant 0 : index
    %c2624 = arith.constant 2624 : index
    %187 = vector.load %arg14[%c0_298, %c2624] : memref<1x4096xbf16, #tpu.memory_space<vmem>>, vector<1x64xbf16>
    tpu.vector_store %arg14[%c0_298, %c2624], %186 {strides = array<i32>} : memref<1x4096xbf16, #tpu.memory_space<vmem>>, vector<1x64xbf16>,
    %c0_299 = arith.constant 0 : index
    %c42 = arith.constant 42 : index
    %c0_300 = arith.constant 0 : index
    %188 = vector.load %arg13[%c0_299, %c42, %c0_300] : memref<1x64x64xbf16, #tpu.memory_space<vmem>>, vector<1x1x64xbf16>
    %189 = vector.shape_cast %188 : vector<1x1x64xbf16> to vector<1x64xbf16>
    %c0_301 = arith.constant 0 : index
    %c2688 = arith.constant 2688 : index
    %190 = vector.load %arg14[%c0_301, %c2688] : memref<1x4096xbf16, #tpu.memory_space<vmem>>, vector<1x64xbf16>
    tpu.vector_store %arg14[%c0_301, %c2688], %189 {strides = array<i32>} : memref<1x4096xbf16, #tpu.memory_space<vmem>>, vector<1x64xbf16>,
    %c0_302 = arith.constant 0 : index
    %c43 = arith.constant 43 : index
    %c0_303 = arith.constant 0 : index
    %191 = vector.load %arg13[%c0_302, %c43, %c0_303] : memref<1x64x64xbf16, #tpu.memory_space<vmem>>, vector<1x1x64xbf16>
    %192 = vector.shape_cast %191 : vector<1x1x64xbf16> to vector<1x64xbf16>
    %c0_304 = arith.constant 0 : index
    %c2752 = arith.constant 2752 : index
    %193 = vector.load %arg14[%c0_304, %c2752] : memref<1x4096xbf16, #tpu.memory_space<vmem>>, vector<1x64xbf16>
    tpu.vector_store %arg14[%c0_304, %c2752], %192 {strides = array<i32>} : memref<1x4096xbf16, #tpu.memory_space<vmem>>, vector<1x64xbf16>,
    %c0_305 = arith.constant 0 : index
    %c44 = arith.constant 44 : index
    %c0_306 = arith.constant 0 : index
    %194 = vector.load %arg13[%c0_305, %c44, %c0_306] : memref<1x64x64xbf16, #tpu.memory_space<vmem>>, vector<1x1x64xbf16>
    %195 = vector.shape_cast %194 : vector<1x1x64xbf16> to vector<1x64xbf16>
    %c0_307 = arith.constant 0 : index
    %c2816 = arith.constant 2816 : index
    %196 = vector.load %arg14[%c0_307, %c2816] : memref<1x4096xbf16, #tpu.memory_space<vmem>>, vector<1x64xbf16>
    tpu.vector_store %arg14[%c0_307, %c2816], %195 {strides = array<i32>} : memref<1x4096xbf16, #tpu.memory_space<vmem>>, vector<1x64xbf16>,
    %c0_308 = arith.constant 0 : index
    %c45 = arith.constant 45 : index
    %c0_309 = arith.constant 0 : index
    %197 = vector.load %arg13[%c0_308, %c45, %c0_309] : memref<1x64x64xbf16, #tpu.memory_space<vmem>>, vector<1x1x64xbf16>
    %198 = vector.shape_cast %197 : vector<1x1x64xbf16> to vector<1x64xbf16>
    %c0_310 = arith.constant 0 : index
    %c2880 = arith.constant 2880 : index
    %199 = vector.load %arg14[%c0_310, %c2880] : memref<1x4096xbf16, #tpu.memory_space<vmem>>, vector<1x64xbf16>
    tpu.vector_store %arg14[%c0_310, %c2880], %198 {strides = array<i32>} : memref<1x4096xbf16, #tpu.memory_space<vmem>>, vector<1x64xbf16>,
    %c0_311 = arith.constant 0 : index
    %c46 = arith.constant 46 : index
    %c0_312 = arith.constant 0 : index
    %200 = vector.load %arg13[%c0_311, %c46, %c0_312] : memref<1x64x64xbf16, #tpu.memory_space<vmem>>, vector<1x1x64xbf16>
    %201 = vector.shape_cast %200 : vector<1x1x64xbf16> to vector<1x64xbf16>
    %c0_313 = arith.constant 0 : index
    %c2944 = arith.constant 2944 : index
    %202 = vector.load %arg14[%c0_313, %c2944] : memref<1x4096xbf16, #tpu.memory_space<vmem>>, vector<1x64xbf16>
    tpu.vector_store %arg14[%c0_313, %c2944], %201 {strides = array<i32>} : memref<1x4096xbf16, #tpu.memory_space<vmem>>, vector<1x64xbf16>,
    %c0_314 = arith.constant 0 : index
    %c47 = arith.constant 47 : index
    %c0_315 = arith.constant 0 : index
    %203 = vector.load %arg13[%c0_314, %c47, %c0_315] : memref<1x64x64xbf16, #tpu.memory_space<vmem>>, vector<1x1x64xbf16>
    %204 = vector.shape_cast %203 : vector<1x1x64xbf16> to vector<1x64xbf16>
    %c0_316 = arith.constant 0 : index
    %c3008 = arith.constant 3008 : index
    %205 = vector.load %arg14[%c0_316, %c3008] : memref<1x4096xbf16, #tpu.memory_space<vmem>>, vector<1x64xbf16>
    tpu.vector_store %arg14[%c0_316, %c3008], %204 {strides = array<i32>} : memref<1x4096xbf16, #tpu.memory_space<vmem>>, vector<1x64xbf16>,
    %c0_317 = arith.constant 0 : index
    %c48 = arith.constant 48 : index
    %c0_318 = arith.constant 0 : index
    %206 = vector.load %arg13[%c0_317, %c48, %c0_318] : memref<1x64x64xbf16, #tpu.memory_space<vmem>>, vector<1x1x64xbf16>
    %207 = vector.shape_cast %206 : vector<1x1x64xbf16> to vector<1x64xbf16>
    %c0_319 = arith.constant 0 : index
    %c3072 = arith.constant 3072 : index
    %208 = vector.load %arg14[%c0_319, %c3072] : memref<1x4096xbf16, #tpu.memory_space<vmem>>, vector<1x64xbf16>
    tpu.vector_store %arg14[%c0_319, %c3072], %207 {strides = array<i32>} : memref<1x4096xbf16, #tpu.memory_space<vmem>>, vector<1x64xbf16>,
    %c0_320 = arith.constant 0 : index
    %c49 = arith.constant 49 : index
    %c0_321 = arith.constant 0 : index
    %209 = vector.load %arg13[%c0_320, %c49, %c0_321] : memref<1x64x64xbf16, #tpu.memory_space<vmem>>, vector<1x1x64xbf16>
    %210 = vector.shape_cast %209 : vector<1x1x64xbf16> to vector<1x64xbf16>
    %c0_322 = arith.constant 0 : index
    %c3136 = arith.constant 3136 : index
    %211 = vector.load %arg14[%c0_322, %c3136] : memref<1x4096xbf16, #tpu.memory_space<vmem>>, vector<1x64xbf16>
    tpu.vector_store %arg14[%c0_322, %c3136], %210 {strides = array<i32>} : memref<1x4096xbf16, #tpu.memory_space<vmem>>, vector<1x64xbf16>,
    %c0_323 = arith.constant 0 : index
    %c50 = arith.constant 50 : index
    %c0_324 = arith.constant 0 : index
    %212 = vector.load %arg13[%c0_323, %c50, %c0_324] : memref<1x64x64xbf16, #tpu.memory_space<vmem>>, vector<1x1x64xbf16>
    %213 = vector.shape_cast %212 : vector<1x1x64xbf16> to vector<1x64xbf16>
    %c0_325 = arith.constant 0 : index
    %c3200 = arith.constant 3200 : index
    %214 = vector.load %arg14[%c0_325, %c3200] : memref<1x4096xbf16, #tpu.memory_space<vmem>>, vector<1x64xbf16>
    tpu.vector_store %arg14[%c0_325, %c3200], %213 {strides = array<i32>} : memref<1x4096xbf16, #tpu.memory_space<vmem>>, vector<1x64xbf16>,
    %c0_326 = arith.constant 0 : index
    %c51 = arith.constant 51 : index
    %c0_327 = arith.constant 0 : index
    %215 = vector.load %arg13[%c0_326, %c51, %c0_327] : memref<1x64x64xbf16, #tpu.memory_space<vmem>>, vector<1x1x64xbf16>
    %216 = vector.shape_cast %215 : vector<1x1x64xbf16> to vector<1x64xbf16>
    %c0_328 = arith.constant 0 : index
    %c3264 = arith.constant 3264 : index
    %217 = vector.load %arg14[%c0_328, %c3264] : memref<1x4096xbf16, #tpu.memory_space<vmem>>, vector<1x64xbf16>
    tpu.vector_store %arg14[%c0_328, %c3264], %216 {strides = array<i32>} : memref<1x4096xbf16, #tpu.memory_space<vmem>>, vector<1x64xbf16>,
    %c0_329 = arith.constant 0 : index
    %c52 = arith.constant 52 : index
    %c0_330 = arith.constant 0 : index
    %218 = vector.load %arg13[%c0_329, %c52, %c0_330] : memref<1x64x64xbf16, #tpu.memory_space<vmem>>, vector<1x1x64xbf16>
    %219 = vector.shape_cast %218 : vector<1x1x64xbf16> to vector<1x64xbf16>
    %c0_331 = arith.constant 0 : index
    %c3328 = arith.constant 3328 : index
    %220 = vector.load %arg14[%c0_331, %c3328] : memref<1x4096xbf16, #tpu.memory_space<vmem>>, vector<1x64xbf16>
    tpu.vector_store %arg14[%c0_331, %c3328], %219 {strides = array<i32>} : memref<1x4096xbf16, #tpu.memory_space<vmem>>, vector<1x64xbf16>,
    %c0_332 = arith.constant 0 : index
    %c53 = arith.constant 53 : index
    %c0_333 = arith.constant 0 : index
    %221 = vector.load %arg13[%c0_332, %c53, %c0_333] : memref<1x64x64xbf16, #tpu.memory_space<vmem>>, vector<1x1x64xbf16>
    %222 = vector.shape_cast %221 : vector<1x1x64xbf16> to vector<1x64xbf16>
    %c0_334 = arith.constant 0 : index
    %c3392 = arith.constant 3392 : index
    %223 = vector.load %arg14[%c0_334, %c3392] : memref<1x4096xbf16, #tpu.memory_space<vmem>>, vector<1x64xbf16>
    tpu.vector_store %arg14[%c0_334, %c3392], %222 {strides = array<i32>} : memref<1x4096xbf16, #tpu.memory_space<vmem>>, vector<1x64xbf16>,
    %c0_335 = arith.constant 0 : index
    %c54 = arith.constant 54 : index
    %c0_336 = arith.constant 0 : index
    %224 = vector.load %arg13[%c0_335, %c54, %c0_336] : memref<1x64x64xbf16, #tpu.memory_space<vmem>>, vector<1x1x64xbf16>
    %225 = vector.shape_cast %224 : vector<1x1x64xbf16> to vector<1x64xbf16>
    %c0_337 = arith.constant 0 : index
    %c3456 = arith.constant 3456 : index
    %226 = vector.load %arg14[%c0_337, %c3456] : memref<1x4096xbf16, #tpu.memory_space<vmem>>, vector<1x64xbf16>
    tpu.vector_store %arg14[%c0_337, %c3456], %225 {strides = array<i32>} : memref<1x4096xbf16, #tpu.memory_space<vmem>>, vector<1x64xbf16>,
    %c0_338 = arith.constant 0 : index
    %c55 = arith.constant 55 : index
    %c0_339 = arith.constant 0 : index
    %227 = vector.load %arg13[%c0_338, %c55, %c0_339] : memref<1x64x64xbf16, #tpu.memory_space<vmem>>, vector<1x1x64xbf16>
    %228 = vector.shape_cast %227 : vector<1x1x64xbf16> to vector<1x64xbf16>
    %c0_340 = arith.constant 0 : index
    %c3520 = arith.constant 3520 : index
    %229 = vector.load %arg14[%c0_340, %c3520] : memref<1x4096xbf16, #tpu.memory_space<vmem>>, vector<1x64xbf16>
    tpu.vector_store %arg14[%c0_340, %c3520], %228 {strides = array<i32>} : memref<1x4096xbf16, #tpu.memory_space<vmem>>, vector<1x64xbf16>,
    %c0_341 = arith.constant 0 : index
    %c56 = arith.constant 56 : index
    %c0_342 = arith.constant 0 : index
    %230 = vector.load %arg13[%c0_341, %c56, %c0_342] : memref<1x64x64xbf16, #tpu.memory_space<vmem>>, vector<1x1x64xbf16>
    %231 = vector.shape_cast %230 : vector<1x1x64xbf16> to vector<1x64xbf16>
    %c0_343 = arith.constant 0 : index
    %c3584 = arith.constant 3584 : index
    %232 = vector.load %arg14[%c0_343, %c3584] : memref<1x4096xbf16, #tpu.memory_space<vmem>>, vector<1x64xbf16>
    tpu.vector_store %arg14[%c0_343, %c3584], %231 {strides = array<i32>} : memref<1x4096xbf16, #tpu.memory_space<vmem>>, vector<1x64xbf16>,
    %c0_344 = arith.constant 0 : index
    %c57 = arith.constant 57 : index
    %c0_345 = arith.constant 0 : index
    %233 = vector.load %arg13[%c0_344, %c57, %c0_345] : memref<1x64x64xbf16, #tpu.memory_space<vmem>>, vector<1x1x64xbf16>
    %234 = vector.shape_cast %233 : vector<1x1x64xbf16> to vector<1x64xbf16>
    %c0_346 = arith.constant 0 : index
    %c3648 = arith.constant 3648 : index
    %235 = vector.load %arg14[%c0_346, %c3648] : memref<1x4096xbf16, #tpu.memory_space<vmem>>, vector<1x64xbf16>
    tpu.vector_store %arg14[%c0_346, %c3648], %234 {strides = array<i32>} : memref<1x4096xbf16, #tpu.memory_space<vmem>>, vector<1x64xbf16>,
    %c0_347 = arith.constant 0 : index
    %c58 = arith.constant 58 : index
    %c0_348 = arith.constant 0 : index
    %236 = vector.load %arg13[%c0_347, %c58, %c0_348] : memref<1x64x64xbf16, #tpu.memory_space<vmem>>, vector<1x1x64xbf16>
    %237 = vector.shape_cast %236 : vector<1x1x64xbf16> to vector<1x64xbf16>
    %c0_349 = arith.constant 0 : index
    %c3712 = arith.constant 3712 : index
    %238 = vector.load %arg14[%c0_349, %c3712] : memref<1x4096xbf16, #tpu.memory_space<vmem>>, vector<1x64xbf16>
    tpu.vector_store %arg14[%c0_349, %c3712], %237 {strides = array<i32>} : memref<1x4096xbf16, #tpu.memory_space<vmem>>, vector<1x64xbf16>,
    %c0_350 = arith.constant 0 : index
    %c59 = arith.constant 59 : index
    %c0_351 = arith.constant 0 : index
    %239 = vector.load %arg13[%c0_350, %c59, %c0_351] : memref<1x64x64xbf16, #tpu.memory_space<vmem>>, vector<1x1x64xbf16>
    %240 = vector.shape_cast %239 : vector<1x1x64xbf16> to vector<1x64xbf16>
    %c0_352 = arith.constant 0 : index
    %c3776 = arith.constant 3776 : index
    %241 = vector.load %arg14[%c0_352, %c3776] : memref<1x4096xbf16, #tpu.memory_space<vmem>>, vector<1x64xbf16>
    tpu.vector_store %arg14[%c0_352, %c3776], %240 {strides = array<i32>} : memref<1x4096xbf16, #tpu.memory_space<vmem>>, vector<1x64xbf16>,
    %c0_353 = arith.constant 0 : index
    %c60 = arith.constant 60 : index
    %c0_354 = arith.constant 0 : index
    %242 = vector.load %arg13[%c0_353, %c60, %c0_354] : memref<1x64x64xbf16, #tpu.memory_space<vmem>>, vector<1x1x64xbf16>
    %243 = vector.shape_cast %242 : vector<1x1x64xbf16> to vector<1x64xbf16>
    %c0_355 = arith.constant 0 : index
    %c3840 = arith.constant 3840 : index
    %244 = vector.load %arg14[%c0_355, %c3840] : memref<1x4096xbf16, #tpu.memory_space<vmem>>, vector<1x64xbf16>
    tpu.vector_store %arg14[%c0_355, %c3840], %243 {strides = array<i32>} : memref<1x4096xbf16, #tpu.memory_space<vmem>>, vector<1x64xbf16>,
    %c0_356 = arith.constant 0 : index
    %c61 = arith.constant 61 : index
    %c0_357 = arith.constant 0 : index
    %245 = vector.load %arg13[%c0_356, %c61, %c0_357] : memref<1x64x64xbf16, #tpu.memory_space<vmem>>, vector<1x1x64xbf16>
    %246 = vector.shape_cast %245 : vector<1x1x64xbf16> to vector<1x64xbf16>
    %c0_358 = arith.constant 0 : index
    %c3904 = arith.constant 3904 : index
    %247 = vector.load %arg14[%c0_358, %c3904] : memref<1x4096xbf16, #tpu.memory_space<vmem>>, vector<1x64xbf16>
    tpu.vector_store %arg14[%c0_358, %c3904], %246 {strides = array<i32>} : memref<1x4096xbf16, #tpu.memory_space<vmem>>, vector<1x64xbf16>,
    %c0_359 = arith.constant 0 : index
    %c62 = arith.constant 62 : index
    %c0_360 = arith.constant 0 : index
    %248 = vector.load %arg13[%c0_359, %c62, %c0_360] : memref<1x64x64xbf16, #tpu.memory_space<vmem>>, vector<1x1x64xbf16>
    %249 = vector.shape_cast %248 : vector<1x1x64xbf16> to vector<1x64xbf16>
    %c0_361 = arith.constant 0 : index
    %c3968 = arith.constant 3968 : index
    %250 = vector.load %arg14[%c0_361, %c3968] : memref<1x4096xbf16, #tpu.memory_space<vmem>>, vector<1x64xbf16>
    tpu.vector_store %arg14[%c0_361, %c3968], %249 {strides = array<i32>} : memref<1x4096xbf16, #tpu.memory_space<vmem>>, vector<1x64xbf16>,
    %c0_362 = arith.constant 0 : index
    %c63 = arith.constant 63 : index
    %c0_363 = arith.constant 0 : index
    %251 = vector.load %arg13[%c0_362, %c63, %c0_363] : memref<1x64x64xbf16, #tpu.memory_space<vmem>>, vector<1x1x64xbf16>
    %252 = vector.shape_cast %251 : vector<1x1x64xbf16> to vector<1x64xbf16>
    %c0_364 = arith.constant 0 : index
    %c4032 = arith.constant 4032 : index
    %253 = vector.load %arg14[%c0_364, %c4032] : memref<1x4096xbf16, #tpu.memory_space<vmem>>, vector<1x64xbf16>
    tpu.vector_store %arg14[%c0_364, %c4032], %252 {strides = array<i32>} : memref<1x4096xbf16, #tpu.memory_space<vmem>>, vector<1x64xbf16>,
    %c0_365 = arith.constant 0 : index
    %c0_366 = arith.constant 0 : index
    %254 = vector.load %arg14[%c0_365, %c0_366] : memref<1x4096xbf16, #tpu.memory_space<vmem>>, vector<1x4096xbf16>
    %c0_367 = arith.constant 0 : index
    %c0_368 = arith.constant 0 : index
    %255 = vector.load %arg6[%c0_367, %c0_368] : memref<4096x128xbf16, #tpu.memory_space<vmem>>, vector<4096x128xbf16>
    %cst_369 = arith.constant dense<0.000000e+00> : vector<1x128xf32>
    %256 = tpu.matmul %254, %255, %cst_369 {dimension_numbers = #tpu.dot_dimension_numbers<[1], [0], [0], [1], [0, 0, 1, 1], [], []>} : vector<1x4096xbf16>, vector<4096x128xbf16>, vector<1x128xf32> -> vector<1x128xf32>
    %c0_370 = arith.constant 0 : index
    %c0_371 = arith.constant 0 : index
    %257 = vector.load %arg7[%c0_370, %c0_371] : memref<1x128xf32, #tpu.memory_space<vmem>>, vector<1x128xf32>
    %258 = arith.addf %256, %257 : vector<1x128xf32>
    %cst_372 = arith.constant 0.000000e+00 : f32
    %259 = vector.broadcast %cst_372 : f32 to vector<1x128xf32>
    %260 = arith.maximumf %258, %259 : vector<1x128xf32>
    %261 = arith.truncf %260 : vector<1x128xf32> to vector<1x128xbf16>
    %c0_373 = arith.constant 0 : index
    %c0_374 = arith.constant 0 : index
    %262 = vector.load %arg8[%c0_373, %c0_374] : memref<128x4xbf16, #tpu.memory_space<vmem>>, vector<128x4xbf16>
    %cst_375 = arith.constant dense<0.000000e+00> : vector<1x4xf32>
    %263 = tpu.matmul %261, %262, %cst_375 {dimension_numbers = #tpu.dot_dimension_numbers<[1], [0], [0], [1], [0, 0, 1, 1], [], []>} : vector<1x128xbf16>, vector<128x4xbf16>, vector<1x4xf32> -> vector<1x4xf32>
    %c0_376 = arith.constant 0 : index
    %c0_377 = arith.constant 0 : index
    %264 = vector.load %arg9[%c0_376, %c0_377] : memref<1x4xf32, #tpu.memory_space<vmem>>, vector<1x4xf32>
    %265 = arith.addf %263, %264 : vector<1x4xf32>
    %266 = vector.shape_cast %265 : vector<1x4xf32> to vector<1x1x4xf32>
    %c0_378 = arith.constant 0 : index
    %c0_379 = arith.constant 0 : index
    %c0_380 = arith.constant 0 : index
    %267 = vector.load %arg10[%c0_378, %c0_379, %c0_380] : memref<1x1x4xf32, #tpu.memory_space<vmem>>, vector<1x1x4xf32>
    tpu.vector_store %arg10[%c0_378, %c0_379, %c0_380], %266 {strides = array<i32>} : memref<1x1x4xf32, #tpu.memory_space<vmem>>, vector<1x1x4xf32>,
    return
  }
  func.func @transform_0(%arg0: i32) -> (i32, i32, i32, i32) {
    %c0_i32 = arith.constant 0 : i32
    %c0_i32_0 = arith.constant 0 : i32
    %c0_i32_1 = arith.constant 0 : i32
    %c0_i32_2 = arith.constant 0 : i32
    return %arg0, %c0_i32, %c0_i32_0, %c0_i32_1 : i32, i32, i32, i32
  }
  func.func @transform_1(%arg0: i32) -> (i32, i32) {
    %c0_i32 = arith.constant 0 : i32
    %c0_i32_0 = arith.constant 0 : i32
    %c0_i32_1 = arith.constant 0 : i32
    return %c0_i32, %c0_i32_0 : i32, i32
  }
  func.func @transform_2(%arg0: i32) -> (i32, i32) {
    %c0_i32 = arith.constant 0 : i32
    %c0_i32_0 = arith.constant 0 : i32
    %c0_i32_1 = arith.constant 0 : i32
    return %c0_i32, %c0_i32_0 : i32, i32
  }
  func.func @transform_3(%arg0: i32) -> (i32, i32) {
    %c0_i32 = arith.constant 0 : i32
    %c0_i32_0 = arith.constant 0 : i32
    %c0_i32_1 = arith.constant 0 : i32
    return %c0_i32, %c0_i32_0 : i32, i32
  }
  func.func @transform_4(%arg0: i32) -> (i32, i32) {
    %c0_i32 = arith.constant 0 : i32
    %c0_i32_0 = arith.constant 0 : i32
    %c0_i32_1 = arith.constant 0 : i32
    return %c0_i32, %c0_i32_0 : i32, i32
  }
  func.func @transform_5(%arg0: i32) -> (i32, i32) {
    %c0_i32 = arith.constant 0 : i32
    %c0_i32_0 = arith.constant 0 : i32
    %c0_i32_1 = arith.constant 0 : i32
    return %c0_i32, %c0_i32_0 : i32, i32
  }
  func.func @transform_6(%arg0: i32) -> (i32, i32) {
    %c0_i32 = arith.constant 0 : i32
    %c0_i32_0 = arith.constant 0 : i32
    %c0_i32_1 = arith.constant 0 : i32
    return %c0_i32, %c0_i32_0 : i32, i32
  }
  func.func @transform_7(%arg0: i32) -> (i32, i32) {
    %c0_i32 = arith.constant 0 : i32
    %c0_i32_0 = arith.constant 0 : i32
    %c0_i32_1 = arith.constant 0 : i32
    return %c0_i32, %c0_i32_0 : i32, i32
  }
  func.func @transform_8(%arg0: i32) -> (i32, i32) {
    %c0_i32 = arith.constant 0 : i32
    %c0_i32_0 = arith.constant 0 : i32
    %c0_i32_1 = arith.constant 0 : i32
    return %c0_i32, %c0_i32_0 : i32, i32
  }
  func.func @transform_9(%arg0: i32) -> (i32, i32, i32) {
    %c0_i32 = arith.constant 0 : i32
    %c0_i32_0 = arith.constant 0 : i32
    %c0_i32_1 = arith.constant 0 : i32
    return %arg0, %c0_i32, %c0_i32_0 : i32, i32, i32
  }
}

</mosaic_0001>

<bundles_post_ra>
// kernel: mlp_forward.1
= control target key start
LH: loop header
LB: loop body
LE: loop exit
PB: predicated region body
PF: predicated region fallthrough
CT: control target
= control target key end

     0   :  { %14 = vsyncpa [#allocation7], 0  ;;  %s10583_s0 = inlined_call_operand.vmem [shape: bf16[2,8,8,32], index: 0, kind: input, shape index: {}]   ;;  %s10584_s1 = inlined_call_operand.vmem [shape: bf16[288,32], index: 1, kind: input, shape index: {}]   ;;  %s10585_s2 = inlined_call_operand.vmem [shape: f32[1,32], index: 2, kind: input, shape index: {}]   ;;  %s10586_s3 = inlined_call_operand.vmem [shape: bf16[288,64], index: 3, kind: input, shape index: {}]   ;;  %s10587_s4 = inlined_call_operand.vmem [shape: f32[1,64], index: 4, kind: input, shape index: {}]   ;;  %s10588_s5 = inlined_call_operand.vmem [shape: bf16[4096,128], index: 5, kind: input, shape index: {}]   ;;  %s10589_s6 = inlined_call_operand.vmem [shape: f32[1,128], index: 6, kind: input, shape index: {}]   ;;  %s10590_s7 = inlined_call_operand.vmem [shape: bf16[128,4], index: 7, kind: input, shape index: {}]   ;;  %s10591_s8 = inlined_call_operand.vmem [shape: f32[1,4], index: 8, kind: input, shape index: {}]   ;;  %s10592_s9 = inlined_call_operand.hbm [shape: f32[2,1,4], index: 9, kind: output, shape index: {}]  }
   0x1   :  { %16 = vsyncpa [#allocation7 + $0x1], 0  ;;  %s8655_s30 = smov 0   ;;  %s8657_s10 = smov 0  }
   0x2   :  { %s8659_s11 = smov 0   ;;  %s8661_s12 = smov 0  }
   0x3 LB: > { %s8676_s13 = sadd.s32 4294967295, %s8595_s12   ;;  %s7188_s14 = sadd.s32 4294967294, %s8595_s12   ;;  %s8595_s12 = sphi %s8661_s12, %s10614_s12   ;;  %s8591_s11 = sphi %s8659_s11, %s10613_s11   ;;  %s8587_s10 = sphi %s8657_s10, %s10612_s10   ;;  %s8583_s30 = sphi %s8655_s30, %s10611_s30  }
   0x4   : > { %s8680_s15 = sadd.s32 1, %s8595_s12   ;;  %s223_s16 = sadd.s32 1, %s8591_s11 }
   0x5   : > { %s220_s17 = ssub.s32 %s8595_s12, %s8680_s15  ;;  %p233_p0 = scmp.ne.s32.totalorder %s8591_s11, %s8587_s10 }
   0x6   : > { %p221_p1 = scmp.eq.s32.totalorder %s220_s17, 0  ;;  %p234_p2 = scmp.eq.s32.totalorder %s8676_s13, 1 }
   0x7   : > { %p239_p3 = scmp.ne.s32.totalorder %s8587_s10, %s8583_s30  ;;  %p240_p4 = scmp.eq.s32.totalorder %s7188_s14, 1 }
   0x8   : > { %s8691_s18 = scalar_select %p221_p1, %s8591_s11, %s223_s16  }
   0x9   : > { %p8693_p5 = por %p234_p2, %p233_p0  ;;  %p8697_p6 = por %p240_p4, %p239_p3 }
   0xa   : > { %p7191_p7 = scmp.ge.s32.totalorder %s8595_s12, 1  ;;  %p290_p8 = scmp.lt.s32.totalorder %s8595_s12, 3 }
   0xc   : > { %p291_p9 = pnand %p7191_p7, %p290_p8 }
   0xd   : > { %p325_p10 = scmp.lt.s32.totalorder (!%p291_p9), %s8676_s13, 1  ;;  %s8598_s24 = smov (!%p291_p9), 32  }
   0xe   : > { %294 = sbr.rel (%p291_p9) target bundleno = 1545 (0x609), region = 56  ;;  %s8599_s27 = smov (!%p291_p9), 64  }
   0xf   : > { %s8600_s29 = smov (!%p291_p9), 96  }
  0x13   : > { %vm332_vm0 = vcmask 257024   ;;  %v8597_v0 = vmov 0   ;;  %v8200_v1 = vld [vmem:[%s10584_s1 + $0x78] sm:$0xff]   ;;  %s326_s23 = scalar_select %p325_p10, %s8676_s13, 1  ;;  %v8202_v3 = vld [vmem:[%s10584_s1 + $0x70] sm:$0xff]   ;;  %v8204_v5 = vld [vmem:[%s10584_s1 + $0x68] sm:$0xff]  }
  0x14   : > { %334 = vst [vmem:[#allocation2 + $0xc] sm:$0xff] %v8597_v0  ;;  %331 = vst [vmem:[#allocation2] sm:$0xff] %v8597_v0  ;;  %v8201_v2 = vld [vmem:[%s10584_s1 + $0x38] sm:$0xff]   ;;  %7657 = vmatprep.subr.bf16.mxu0 %v8200_v1  ;;  %v8203_v4 = vld [vmem:[%s10584_s1 + $0x30] sm:$0xff]   ;;  %vm413_vm1 = vsmask.f32 7938 }
  0x15   : > { %333 = vst.msk [vmem:[#allocation2 + $0x8] sm:$0xf] %vm332_vm0, %v8597_v0  ;;  %335 = vst.msk [vmem:[#allocation2 + $0x14] sm:$0xf] %vm332_vm0, %v8597_v0  ;;  %s7648_s26 = sshll.u32 %s326_s23, 5  ;;  %7658 = vmatpush3.bf16.msra.mxu0 %v8201_v2  ;;  %v8205_v39 = vld [vmem:[%s10584_s1 + $0x28] sm:$0xff]  }
  0x16   : > { %336 = vst [vmem:[#allocation2 + $0x18] sm:$0xff] %v8597_v0  ;;  %337 = vst.msk [vmem:[#allocation2 + $0x20] sm:$0xf] %vm332_vm0, %v8597_v0  ;;  %s8727_s16 = scalar_lea.vmem %s10583_s0, %s7648_s26  ;;  %7659 = vmatprep.subr.bf16.mxu0 %v8202_v3  ;;  %v8206_v43 = vld [vmem:[%s10584_s1 + $0x60] sm:$0xff]   ;;  %v8208_v55 = vld [vmem:[%s10584_s1 + $0x58] sm:$0xff]   ;;  %vm1323_vm5 = vcmask 261120  }
  0x17   : > { %338 = vst [vmem:[#allocation2 + $0x24] sm:$0xff] %v8597_v0  ;;  %339 = vst.msk [vmem:[#allocation2 + $0x2c] sm:$0xf] %vm332_vm0, %v8597_v0  ;;  %v436_v6 = vld [vmem:[%s8727_s16] sm:$0xf]  ;;  %v8209_v1 = vld [vmem:[%s10584_s1 + $0x18] sm:$0xff]  }
  0x18   : > { %340 = vst [vmem:[#allocation2 + $0x30] sm:$0xff] %v8597_v0  ;;  %341 = vst.msk [vmem:[#allocation2 + $0x38] sm:$0xf] %vm332_vm0, %v8597_v0  ;;  %v438_v7 = vld [vmem:[%s8727_s16 + $0x8] sm:$0xf]  ;;  %450 = vrot.lane.b32.xlu0 %v436_v6, %s8598_s24  ;;  %v8207_v49 = vld [vmem:[%s10584_s1 + $0x20] sm:$0xff]  }
  0x19   : > { %342 = vst [vmem:[#allocation2 + $0x3c] sm:$0xff] %v8597_v0  ;;  %343 = vst.msk [vmem:[#allocation2 + $0x44] sm:$0xf] %vm332_vm0, %v8597_v0  ;;  %v437_v8 = vld [vmem:[%s8727_s16 + $0x4] sm:$0xf]  ;;  %454 = vrot.lane.b32.xlu1 %v438_v7, %s8598_s24  ;;  %7660 = vmatpush3.bf16.msra.mxu0 %v8203_v4  ;;  %v8210_v2 = vld [vmem:[%s10584_s1 + $0x50] sm:$0xff]  }
  0x1a   : > { %344 = vst [vmem:[#allocation2 + $0x48] sm:$0xff] %v8597_v0  ;;  %345 = vst.msk [vmem:[#allocation2 + $0x50] sm:$0xf] %vm332_vm0, %v8597_v0  ;;  %v7195_v9 = vld [vmem:[%s8727_s16 + $0x8] sm:$0xf]  ;;  %7661 = vmatprep.subr.bf16.mxu0 %v8204_v5  ;;  %vm471_vm6 = vcmask 519424  }
  0x1b   : > { %346 = vst [vmem:[#allocation2 + $0x54] sm:$0xff] %v8597_v0  ;;  %347 = vst.msk [vmem:[#allocation2 + $0x5c] sm:$0xf] %vm332_vm0, %v8597_v0  ;;  %v7194_v10 = vld [vmem:[%s8727_s16 + $0x4] sm:$0xf]  ;;  %v870_v11 = vshrl.u32 %v7195_v9, 16 }
  0x1c   : > { %v873_v12 = vshll.u32 %v7195_v9, 16  ;;  %v863_v13 = vshrl.u32 %v7194_v10, 16  ;;  %v866_v14 = vshll.u32 %v7194_v10, 16  ;;  %v725_v15 = vld [vmem:[%s8727_s16 + $0x4] sm:$0xf]  ;;  %452 = vrot.lane.b32.xlu0 %v437_v8, %s8598_s24  ;;  %vm8890_vm2 = vmand %vm332_vm0, %vm413_vm1  ;;  %vm570_vm7 = vcmask 781824  }
  0x1d   : > { %v742_v16 = vshrl.u32 %v725_v15, 16  ;;  %v745_v17 = vshll.u32 %v725_v15, 16  ;;  %v724_v18 = vld [vmem:[%s8727_s16] sm:$0xf]  ;;  %v872_v20 = vrot.slane %v870_v11, 7  ;;  %7662 = vmatpush3.bf16.msra.mxu0 %v8205_v39  ;;  %v8212_v15 = vld [vmem:[%s10584_s1 + $0x48] sm:$0xff]   ;;  %vm9074_vm12 = vmand %vm570_vm7, %vm413_vm1 }
  0x1e   : > { %v479_v19 = vld [vmem:[%s8727_s16] sm:$0xf]  ;;  %v865_v21 = vrot.slane %v863_v13, 7  ;;  %v733_v22 = vshrl.u32 %v724_v18, 16  ;;  %v736_v23 = vshll.u32 %v724_v18, 16  ;;  %7663 = vmatprep.subr.bf16.mxu0 %v8206_v43  ;;  %vm682_vm8 = vcmask 1044224  }
  0x1f   : > { %v594_v24 = vld [vmem:[%s8727_s16] sm:$0xf]  ;;  %v744_v25 = vrot.slane %v742_v16, 4  ;;  %v747_v26 = vrot.slane %v745_v17, 5  ;;  %v487_v27 = vshrl.u32 %v479_v19, 16  ;;  %v490_v28 = vshll.u32 %v479_v19, 16  ;;  %vm9068_vm11 = vmand %vm682_vm8, %vm413_vm1 }
  0x20   : > { %v595_v29 = vld [vmem:[%s8727_s16 + $0x4] sm:$0xf]  ;;  %v875_v30 = vor.u32 %v873_v12, %v872_v20  ;;  %v868_v31 = vor.u32 %v866_v14, %v865_v21  ;;  %v735_v32 = vrot.slane %v733_v22, 4  ;;  %v738_v33 = vrot.slane %v736_v23, 5  ;;  %v726_v38 = vld [vmem:[%s8727_s16 + $0x8] sm:$0xf] }
  0x21   : > { %v748_v34 = vor.u32 %v747_v26, %v744_v25  ;;  %v489_v35 = vrot.slane %v487_v27, 4  ;;  %v492_v36 = vrot.slane %v490_v28, 5  ;;  %v603_v37 = vshrl.u32 %v594_v24, 16  ;;  %v727_v48 = vld [vmem:[%s8727_s16 + $0xc] sm:$0xf]  ;;  %7664 = vmatpush3.bf16.msra.mxu0 %v8207_v49  ;;  %v8211_v12 = vld [vmem:[%s10584_s1 + $0x10] sm:$0xff]  }
  0x22   : > { %913 = vrot.lane.b32.xlu1 %v875_v30, %s8599_s27  ;;  %v739_v40 = vor.u32 %v738_v33, %v735_v32  ;;  %v606_v41 = vshll.u32 %v594_v24, 16  ;;  %v610_v42 = vshrl.u32 %v595_v29, 16  ;;  %911 = vrot.lane.b32.xlu0 %v868_v31, %s8599_s27  ;;  %v751_v47 = vshrl.u32 %v726_v38, 16  ;;  %v480_v52 = vld [vmem:[%s8727_s16 + $0x4] sm:$0xf]  ;;  %v8213_v27 = vld [vmem:[%s10584_s1 + $0x8] sm:$0xff]  }
  0x23   : > { %v749_v44 = vrot.slane %v748_v34, 4  ;;  %v493_v45 = vor.u32 %v492_v36, %v489_v35  ;;  %v605_v46 = vrot.slane %v603_v37, 7  ;;  %v754_v51 = vshll.u32 %v726_v38, 16  ;;  %v481_v60 = vld [vmem:[%s8727_s16 + $0x8] sm:$0xf]  ;;  %7665 = vmatprep.subr.bf16.mxu0 %v8208_v55  ;;  %v8215_v33 = vld [vmem:[%s10584_s1 + $0x40] sm:$0xff]  }
  0x24   : > { %v740_v50 = vrot.slane %v739_v40, 4  ;;  %v612_v53 = vrot.slane %v610_v42, 7  ;;  %v613_v54 = vshll.u32 %v595_v29, 16  ;;  %v760_v58 = vshrl.u32 %v727_v48, 16  ;;  %v7196_v4 = vld [vmem:[%s8727_s16 + $0xc] sm:$0xf] }
  0x25   : > { %v494_v56 = vrot.slane %v493_v45, 4  ;;  %v608_v57 = vor.u32 %v606_v41, %v605_v46  ;;  %v763_v59 = vshll.u32 %v727_v48, 16  ;;  %v753_v61 = vrot.slane %v751_v47, 4  ;;  %7666 = vmatpush3.bf16.msra.mxu0 %v8209_v1  ;;  %v7201_v13 = vld [vmem:[%s8727_s16 + $0x4] sm:$0xf]  ;;  %v8214_v28 = vld [vmem:[%s10584_s1 + $0x88] sm:$0xff]  }
  0x26   : > { %806 = vrot.lane.b32.xlu1 %v749_v44, %s8598_s24  ;;  %804 = vrot.lane.b32.xlu0 %v740_v50, %s8598_s24  ;;  %v756_v62 = vrot.slane %v754_v51, 5  ;;  %v496_v63 = vshrl.u32 %v480_v52, 16  ;;  %v499_v0 = vshll.u32 %v480_v52, 16  ;;  %v615_v3 = vor.u32 %v613_v54, %v612_v53  ;;  %v7202_v16 = vld [vmem:[%s8727_s16 + $0x8] sm:$0xf]  ;;  %v8216_v46 = vld [vmem:[%s10584_s1] sm:$0xff]  }
  0x27   : > { %v762_v5 = vrot.slane %v760_v58, 4  ;;  %v765_v6 = vrot.slane %v763_v59, 5  ;;  %v505_v7 = vshrl.u32 %v481_v60, 16  ;;  %v508_v8 = vshll.u32 %v481_v60, 16  ;;  %7667 = vmatprep.subr.bf16.mxu0 %v8210_v2  ;;  %v8786_v17 = vld [vmem:[%s8727_s16 + $0x10] sm:$0xf]  ;;  %8110 = vmatprep.subr.bf16.mxu1 %v8214_v28 }
  0x28   : > { %v757_v9 = vor.u32 %v756_v62, %v753_v61  ;;  %v498_v10 = vrot.slane %v496_v63, 4  ;;  %v501_v11 = vrot.slane %v499_v0, 5  ;;  %v877_v14 = vshrl.u32 %v7196_v4, 16  ;;  %v8790_v21 = vld [vmem:[%s8727_s16 + $0x8] sm:$0xf]  ;;  %8111 = vmatpush3.bf16.msra.mxu1 %v8214_v28  ;;  %v8217_v47 = vld [vmem:[%s10584_s1 + $0x80] sm:$0xff]  }
  0x29   : > { %v766_v18 = vor.u32 %v765_v6, %v762_v5  ;;  %v507_v19 = vrot.slane %v505_v7, 4  ;;  %v510_v20 = vrot.slane %v508_v8, 5  ;;  %v729_v22 = vld [vmem:[%s8727_s16 + $0x14] sm:$0xf]  ;;  %v728_v23 = vld [vmem:[%s8727_s16 + $0x10] sm:$0xf]  ;;  %7668 = vmatpush3.bf16.msra.mxu0 %v8211_v12  ;;  %8112 = vmatprep.subr.bf16.mxu1 %v8217_v47 }
  0x2a   : > { %549 = vrot.lane.b32.xlu1 %v494_v56, %s8599_s27  ;;  %658 = vrot.lane.b32.xlu0 %v608_v57, %s8600_s29  ;;  %v758_v24 = vrot.slane %v757_v9, 4  ;;  %v502_v25 = vor.u32 %v501_v11, %v498_v10  ;;  %v483_v26 = vld [vmem:[%s8727_s16 + $0x10] sm:$0xf]  ;;  %v879_v29 = vrot.slane %v877_v14, 7  ;;  %v880_v30 = vshll.u32 %v7196_v4, 16  ;;  %s8604_s23 = smov [#allocation6]  }
  0x2b   : > { %v884_v31 = vshrl.u32 %v8786_v17, 16  ;;  %v8804_v32 = vld [vmem:[%s8727_s16 + $0xc] sm:$0xf]  ;;  %7669 = vmatprep.subr.bf16.mxu0 %v8212_v15  ;;  %v778_v34 = vshrl.u32 %v729_v22, 16  ;;  %v781_v35 = vshll.u32 %v729_v22, 16  ;;  %v769_v36 = vshrl.u32 %v728_v23, 16 }
  0x2c   : > { %v772_v37 = vshll.u32 %v728_v23, 16  ;;  %v482_v38 = vld [vmem:[%s8727_s16 + $0xc] sm:$0xf]  ;;  %v767_v39 = vrot.slane %v766_v18, 4  ;;  %v511_v40 = vor.u32 %v510_v20, %v507_v19  ;;  %v523_v41 = vshrl.u32 %v483_v26, 16  ;;  %8113 = vmatpush3.bf16.msra.mxu1 %v8217_v47  ;;  %s8539_s25 = sshll.u32 %s8604_s23, 4  ;;  %s8540_s25 = int_to_ptr.vmem [resolvable:$false] %s8539_s25 }
  0x2d   : > { %v526_v42 = vshll.u32 %v483_v26, 16  ;;  %v503_v43 = vrot.slane %v502_v25, 4  ;;  %v617_v44 = vshrl.u32 %v8790_v21, 16  ;;  %v624_v45 = vshrl.u32 %v8804_v32, 16  ;;  %7670 = vmatpush3.bf16.msra.mxu0 %v8213_v27  ;;  %v8823_v60 = vld [vmem:[%s8727_s16 + $0x18] sm:$0xf] }
  0x2e   : > { %660 = vrot.lane.b32.xlu1 %v615_v3, %s8600_s29  ;;  %968 = vrot.lane.b32.xlu0 %v7201_v13, %s8600_s29  ;;  %v882_v48 = vor.u32 %v880_v30, %v879_v29  ;;  %v887_v49 = vshll.u32 %v8786_v17, 16  ;;  %v514_v50 = vshrl.u32 %v482_v38, 16  ;;  %v517_v51 = vshll.u32 %v482_v38, 16  ;;  %v8829_v1 = vld [vmem:[%s8727_s16 + $0x14] sm:$0xf]  ;;  %s8541_s26 = scalar_lea.vmem %s8540_s25, 32 }
  0x2f   : > { %7671 = vmatprep.subr.bf16.mxu0 %v8215_v33  ;;  %v780_v52 = vrot.slane %v778_v34, 4  ;;  %v783_v53 = vrot.slane %v781_v35, 5  ;;  %v771_v54 = vrot.slane %v769_v36, 4  ;;  %v774_v55 = vrot.slane %v772_v37, 5  ;;  %v8832_v4 = vld [vmem:[%s8727_s16 + $0x14] sm:$0xf] }
  0x30   : > { %v512_v56 = vrot.slane %v511_v40, 4  ;;  %v886_v57 = vrot.slane %v884_v31, 7  ;;  %v525_v58 = vrot.slane %v523_v41, 4  ;;  %v528_v59 = vrot.slane %v526_v42, 5  ;;  %v8836_v8 = vld [vmem:[%s8727_s16 + $0x10] sm:$0xf] }
  0x31   : > { %v619_v61 = vrot.slane %v617_v44, 7  ;;  %v620_v62 = vshll.u32 %v8790_v21, 16  ;;  %v626_v63 = vrot.slane %v624_v45, 7  ;;  %v627_v0 = vshll.u32 %v8804_v32, 16  ;;  %7672 = vmatpush3.bf16.msra.mxu0 %v8216_v46  ;;  %v730_v9 = vld [vmem:[%s8727_s16 + $0x18] sm:$0xf] }
  0x32   : > { %970 = vrot.lane.b32.xlu1 %v7202_v16, %s8600_s29  ;;  %808 = vrot.lane.b32.xlu0 %v758_v24, %s8598_s24  ;;  %v516_v2 = vrot.slane %v514_v50, 4  ;;  %v519_v3 = vrot.slane %v517_v51, 5  ;;  %v784_v5 = vor.u32 %v783_v53, %v780_v52  ;;  %v775_v6 = vor.u32 %v774_v55, %v771_v54  ;;  %v484_v13 = vld [vmem:[%s8727_s16 + $0x14] sm:$0xf]  ;;  %v485_v22 = vld [vmem:[%s8727_s16 + $0x18] sm:$0xf] }
  0x33   : > { %v898_v7 = vshrl.u32 %v8823_v60, 16  ;;  %v889_v10 = vor.u32 %v887_v49, %v886_v57  ;;  %v529_v11 = vor.u32 %v528_v59, %v525_v58  ;;  %v891_v12 = vshrl.u32 %v8829_v1, 16  ;;  %v7203_v27 = vld [vmem:[%s8727_s16 + $0xc] sm:$0xf]  ;;  %v8866_v36 = vld [vmem:[%s8727_s16 + $0x1c] sm:$0xf] }
  0x34   : > { %v622_v14 = vor.u32 %v620_v62, %v619_v61  ;;  %v629_v15 = vor.u32 %v627_v0, %v626_v63  ;;  %v901_v16 = vshll.u32 %v8823_v60, 16  ;;  %v638_v17 = vshrl.u32 %v8832_v4, 16  ;;  %v348_v41 = vld [vmem:[%s8727_s16] sm:$0xf]  ;;  %v7204_v42 = vld [vmem:[%s8727_s16 + $0x10] sm:$0xf] }
  0x35   : > { %v520_v18 = vor.u32 %v519_v3, %v516_v2  ;;  %v631_v19 = vshrl.u32 %v8836_v8, 16  ;;  %v787_v20 = vshrl.u32 %v730_v9, 16  ;;  %v790_v21 = vshll.u32 %v730_v9, 16  ;;  %v439_v47 = vld [vmem:[%s8727_s16 + $0xc] sm:$0xf] }
  0x36   : > { %810 = vrot.lane.b32.xlu1 %v767_v39, %s8598_s24  ;;  %551 = vrot.lane.b32.xlu0 %v503_v43, %s8599_s27  ;;  %v8847_v23 = vrot.slane %v784_v5, 4  ;;  %v8849_v24 = vrot.slane %v775_v6, 4  ;;  %v8851_v25 = vrot.slane %v898_v7, 7  ;;  %v532_v26 = vshrl.u32 %v484_v13, 16  ;;  %v415_v50 = vld [vmem:[#allocation2 + $0xc] sm:$0xf] }
  0x37   : > { %v8855_v28 = vrot.slane %v529_v11, 4  ;;  %v8857_v29 = vrot.slane %v891_v12, 7  ;;  %v894_v30 = vshll.u32 %v8829_v1, 16  ;;  %v535_v31 = vshll.u32 %v484_v13, 16  ;;  %v350_v51 = vld [vmem:[%s8727_s16 + $0x8] sm:$0xf] }
  0x38   : > { %v8861_v32 = vrot.slane %v638_v17, 7  ;;  %v641_v33 = vshll.u32 %v8832_v4, 16  ;;  %v634_v34 = vshll.u32 %v8836_v8, 16  ;;  %v541_v35 = vshrl.u32 %v485_v22, 16  ;;  %v421_v58 = vld [vmem:[#allocation2 + $0x24] sm:$0xf] }
  0x39   : > { %v521_v37 = vrot.slane %v520_v18, 4  ;;  %v8868_v38 = vrot.slane %v631_v19, 7  ;;  %v8870_v39 = vrot.slane %v787_v20, 4  ;;  %v8872_v40 = vrot.slane %v790_v21, 5  ;;  %v709_v62 = vld [vmem:[%s8727_s16 + $0x4] sm:$0xf] }
  0x3a   : > { %553 = vrot.lane.b32.xlu1 %v512_v56, %s8599_s27  ;;  %915 = vrot.lane.b32.xlu0 %v882_v48, %s8599_s27  ;;  %v8876_v43 = vrot.slane %v532_v26, 4  ;;  %v544_v44 = vshll.u32 %v485_v22, 16  ;;  %v356_v45 = vshrl.u32 %v348_v41, 16  ;;  %v359_v46 = vshll.u32 %v348_v41, 16  ;;  %v349_v56 = vld [vmem:[%s8727_s16 + $0x4] sm:$0xf] }
  0x3b   : > { %v8880_v48 = vrot.slane %v535_v31, 5  ;;  %v905_v49 = vshrl.u32 %v8866_v36, 16  ;;  %v8885_v52 = vrot.slane %v541_v35, 4  ;;  %v370_v54 = vshrl.u32 %v350_v51, 16  ;;  %v440_v63 = vld [vmem:[%s8727_s16 + $0x10] sm:$0xf] }
  0x3c   : > { %v358_v53 = vrot.slane %v356_v45, 7  ;;  %v373_v55 = vshll.u32 %v350_v51, 16  ;;  %v363_v59 = vshrl.u32 %v349_v56, 16  ;;  %v366_v61 = vshll.u32 %v349_v56, 16  ;;  %717 = vst.msk [vmem:[#allocation2 + $0x10] sm:$0xf] %vm332_vm0, %v709_v62 }
  0x3d   : > { %v8896_v0 = vrot.slane %v544_v44, 5  ;;  %v372_v3 = vrot.slane %v370_v54, 7  ;;  %v708_v5 = vld [vmem:[%s8727_s16] sm:$0xf]  ;;  %v908_v6 = vshll.u32 %v8866_v36, 16  ;;  %v8919_v19 = vrot.slane %v905_v49, 7 }
  0x3e   : > { %917 = vrot.lane.b32.xlu1 %v889_v10, %s8599_s27  ;;  %662 = vrot.lane.b32.xlu0 %v622_v14, %s8600_s29  ;;  %v361_v2 = vor.u32 %v359_v46, %v358_v53  ;;  %v365_v7 = vrot.slane %v363_v59, 7  ;;  %716 = vst.msk [vmem:[#allocation2 + $0x4] sm:$0xf] %vm332_vm0, %v708_v5  ;;  %v8905_v9 = vld [vmem:[%s8727_s16 + $0x18] sm:$0xf]  ;;  %v896_v26 = vor.u32 %v894_v30, %v8857_v29  ;;  %vm2632_vm13 = vcmask 519168  }
  0x3f   : > { %v375_v11 = vor.u32 %v373_v55, %v372_v3  ;;  %v418_v12 = vld [vmem:[#allocation2 + $0x18] sm:$0xf]  ;;  %v710_v17 = vld [vmem:[%s8727_s16 + $0x8] sm:$0xf]  ;;  %v711_v18 = vld [vmem:[%s8727_s16 + $0xc] sm:$0xf]  ;;  %v636_v31 = vor.u32 %v634_v34, %v8868_v38  ;;  %v643_v54 = vor.u32 %v641_v33, %v8861_v32  ;;  %v538_v5 = vor.u32 %v8880_v48, %v8876_v43 }
  0x40   : > { %v416_v10 = vsel %vm8890_vm2, %v361_v2, %v415_v50  ;;  %v368_v13 = vor.u32 %v366_v61, %v365_v7  ;;  %718 = vst.msk [vmem:[#allocation2 + $0x1c] sm:$0xf] %vm332_vm0, %v710_v17  ;;  %v645_v20 = vshrl.u32 %v8905_v9, 16  ;;  %719 = vst.msk [vmem:[#allocation2 + $0x28] sm:$0xf] %vm332_vm0, %v711_v18  ;;  %vm2642_vm14 = vcmask 516096  }
  0x41   : > { %417 = vst [vmem:[#allocation2 + $0xc] sm:$0xf] %v416_v10  ;;  %v422_v14 = vsel %vm8890_vm2, %v375_v11, %v421_v58  ;;  %v8924_v21 = vld [vmem:[%s8727_s16 + $0x1c] sm:$0xf]  ;;  %vm571_vm3 = vsmask.f32 3328 }
  0x42   : > { %664 = vrot.lane.b32.xlu1 %v629_v15, %s8600_s29  ;;  %972 = vrot.lane.b32.xlu0 %v7203_v27, %s8600_s29  ;;  %423 = vst [vmem:[#allocation2 + $0x24] sm:$0xf] %v422_v14  ;;  %v419_v15 = vsel %vm8890_vm2, %v368_v13, %v418_v12  ;;  %v8927_v22 = vld [vmem:[%s8727_s16 + $0x1c] sm:$0xf]  ;;  %v903_v27 = vor.u32 %v901_v16, %v8851_v25  ;;  %v7208_v35 = vld [vmem:[%s8727_s16 + $0x4] sm:$0xf]  ;;  %vm8966_vm4 = vmand %vm332_vm0, %vm571_vm3 }
  0x43   : > { %420 = vst [vmem:[#allocation2 + $0x18] sm:$0xf] %v419_v15  ;;  %v1008_v41 = vshll.u32 %v7208_v35, 16  ;;  %v652_v60 = vshrl.u32 %v8924_v21, 16  ;;  %v655_v25 = vshll.u32 %v8924_v21, 16  ;;  %v799_v29 = vshll.u32 %v8927_v22, 16  ;;  %vm9055_vm9 = vmand %vm471_vm6, %vm571_vm3 }
  0x44   : > { %v7210_v38 = vld [vmem:[%s8727_s16 + $0xc] sm:$0xf]  ;;  %v7211_v45 = vld [vmem:[%s8727_s16 + $0x10] sm:$0xf]  ;;  %v1075_v50 = vld [vmem:[#allocation2 + $0x8] sm:$0xf] }
  0x45   : > { %v1010_v34 = vrot.slane %v1008_v41, 5  ;;  %v1026_v46 = vshll.u32 %v7210_v38, 16  ;;  %v1032_v51 = vshrl.u32 %v7211_v45, 16  ;;  %v1035_v53 = vshll.u32 %v7211_v45, 16  ;;  %v7205_v55 = vld [vmem:[%s8727_s16 + $0x14] sm:$0xf]  ;;  %vm9062_vm10 = vmand %vm570_vm7, %vm571_vm3 }
  0x46   : > { %974 = vrot.lane.b32.xlu1 %v7204_v42, %s8600_s29  ;;  %456 = vrot.lane.b32.xlu0 %v439_v47, %s8598_s24  ;;  %v1078_v59 = vld [vmem:[#allocation2 + $0x14] sm:$0xf]  ;;  %v1081_v33 = vld [vmem:[#allocation2 + $0x20] sm:$0xf]  ;;  %v1084_v11 = vld [vmem:[#allocation2 + $0x2c] sm:$0xf] }
  0x47   : > { %v1028_v62 = vrot.slane %v1026_v46, 5  ;;  %v1034_v4 = vrot.slane %v1032_v51, 4  ;;  %v1037_v32 = vrot.slane %v1035_v53, 5  ;;  %v351_v13 = vld [vmem:[%s8727_s16 + $0xc] sm:$0xf]  ;;  %vm2672_vm1 = vcmask 1040896  }
  0x48   : > { %v713_v14 = vld [vmem:[%s8727_s16 + $0x14] sm:$0xf]  ;;  %v7206_v15 = vld [vmem:[%s8727_s16 + $0x18] sm:$0xf]  ;;  %v424_v41 = vld [vmem:[#allocation2 + $0x30] sm:$0xf] }
  0x49   : > { %v1038_v18 = vor.u32 %v1037_v32, %v1034_v4  ;;  %721 = vst.msk [vmem:[#allocation2 + $0x40] sm:$0xf] %vm332_vm0, %v713_v14  ;;  %v714_v46 = vld [vmem:[%s8727_s16 + $0x18] sm:$0xf]  ;;  %v801_v4 = vrot.slane %v799_v29, 5  ;;  %vm8603_vm3 = vmmov 0  }
  0x4a   : > { %458 = vrot.lane.b32.xlu1 %v440_v63, %s8598_s24  ;;  %812 = vrot.lane.b32.xlu0 %v8849_v24, %s8598_s24  ;;  %v793_v24 = vor.u32 %v8872_v40, %v8870_v39  ;;  %v796_v39 = vshrl.u32 %v8927_v22, 16  ;;  %v7209_v40 = vld [vmem:[%s8727_s16 + $0x8] sm:$0xf]  ;;  %v352_v63 = vld [vmem:[%s8727_s16 + $0x10] sm:$0xf] }
  0x4b   : > { %v1014_v16 = vshrl.u32 %v7209_v40, 16  ;;  %v1017_v8 = vshll.u32 %v7209_v40, 16  ;;  %v384_v3 = vshrl.u32 %v352_v63, 16  ;;  %v387_v12 = vshll.u32 %v352_v63, 16  ;;  %722 = vst.msk [vmem:[#allocation2 + $0x4c] sm:$0xf] %vm332_vm0, %v714_v46 }
  0x4c   : > { %v8949_v1 = vrot.slane %v793_v24, 4  ;;  %v8957_v47 = vrot.slane %v796_v39, 4  ;;  %v427_v24 = vld [vmem:[#allocation2 + $0x3c] sm:$0xf]  ;;  %v547_v39 = vor.u32 %v8896_v0, %v8885_v52  ;;  %v353_v0 = vld [vmem:[%s8727_s16 + $0x14] sm:$0xf] }
  0x4d   : > { %v1016_v42 = vrot.slane %v1014_v16, 4  ;;  %v1019_v44 = vrot.slane %v1017_v8, 5  ;;  %v380_v16 = vshll.u32 %v351_v13, 16  ;;  %v354_v8 = vld [vmem:[%s8727_s16 + $0x18] sm:$0xf]  ;;  %v391_v45 = vshrl.u32 %v353_v0, 16 }
  0x4e   : > { %814 = vrot.lane.b32.xlu1 %v8847_v23, %s8598_s24  ;;  %555 = vrot.lane.b32.xlu0 %v521_v37, %s8599_s27  ;;  %v648_v23 = vshll.u32 %v8905_v9, 16  ;;  %v1005_v37 = vshrl.u32 %v7208_v35, 16  ;;  %v441_v35 = vld [vmem:[%s8727_s16 + $0x14] sm:$0xf]  ;;  %v398_v52 = vshrl.u32 %v354_v8, 16  ;;  %v548_v43 = vrot.slane %v547_v39, 4 }
  0x4f   : > { %v1020_v56 = vor.u32 %v1019_v44, %v1016_v42  ;;  %v401_v44 = vshll.u32 %v354_v8, 16  ;;  %vm2643_vm15 = vsmask.f32 256 }
  0x50   : > { %v1007_v30 = vrot.slane %v1005_v37, 4 }
  0x51   : > { %v1021_v7 = vrot.slane %v1020_v56, 4  ;;  %v7213_v56 = vld [vmem:[%s8727_s16 + $0x18] sm:$0xf] }
  0x52   : > { %557 = vrot.lane.b32.xlu1 %v8855_v28, %s8599_s27  ;;  %919 = vrot.lane.b32.xlu0 %v896_v26, %s8599_s27  ;;  %v1023_v28 = vshrl.u32 %v7210_v38, 16  ;;  %v1011_v49 = vor.u32 %v1010_v34, %v1007_v30  ;;  %v386_v26 = vrot.slane %v384_v3, 7  ;;  %v1039_v30 = vrot.slane %v1038_v18, 4  ;;  %v430_v3 = vld [vmem:[#allocation2 + $0x48] sm:$0xf] }
  0x53   : > { %v1079_v40 = vsel %vm8966_vm4, %v1021_v7, %v1078_v59  ;;  %v433_v59 = vld [vmem:[#allocation2 + $0x54] sm:$0xf]  ;;  %v1053_v7 = vshll.u32 %v7213_v56, 16  ;;  %v647_v18 = vrot.slane %v645_v20, 7 }
  0x54   : > { %v1025_v61 = vrot.slane %v1023_v28, 4  ;;  %v1012_v2 = vrot.slane %v1011_v49, 4  ;;  %1080 = vst [vmem:[#allocation2 + $0x14] sm:$0xf] %v1079_v40  ;;  %v389_v34 = vor.u32 %v387_v12, %v386_v26  ;;  %v394_v28 = vshll.u32 %v353_v0, 16 }
  0x55   : > { %v442_v49 = vld [vmem:[%s8727_s16 + $0x18] sm:$0xf]  ;;  %v1055_v29 = vrot.slane %v1053_v7, 5  ;;  %v802_v40 = vor.u32 %v801_v4, %v8957_v47 }
  0x56   : > { %921 = vrot.lane.b32.xlu1 %v903_v27, %s8599_s27  ;;  %666 = vrot.lane.b32.xlu0 %v636_v31, %s8600_s29  ;;  %v1029_v10 = vor.u32 %v1028_v62, %v1025_v61  ;;  %v1076_v17 = vsel %vm8966_vm4, %v1012_v2, %v1075_v50  ;;  %v377_v27 = vshrl.u32 %v351_v13, 16  ;;  %v712_v31 = vld [vmem:[%s8727_s16 + $0x10] sm:$0xf]  ;;  %v1085_v50 = vsel %vm8966_vm4, %v1039_v30, %v1084_v11 }
  0x57   : > { %1077 = vst [vmem:[#allocation2 + $0x8] sm:$0xf] %v1076_v17  ;;  %720 = vst.msk [vmem:[#allocation2 + $0x34] sm:$0xf] %vm332_vm0, %v712_v31  ;;  %v428_v51 = vsel %vm8890_vm2, %v389_v34, %v427_v24  ;;  %v393_v61 = vrot.slane %v391_v45, 7  ;;  %v1050_v2 = vshrl.u32 %v7213_v56, 16 }
  0x58   : > { %v1030_v37 = vrot.slane %v1029_v10, 4  ;;  %v379_v38 = vrot.slane %v377_v27, 7  ;;  %1086 = vst [vmem:[#allocation2 + $0x2c] sm:$0xf] %v1085_v50  ;;  %429 = vst [vmem:[#allocation2 + $0x3c] sm:$0xf] %v428_v51 }
  0x59   : > { %v7214_v10 = vld [vmem:[%s8727_s16 + $0x1c] sm:$0xf]  ;;  %v396_v11 = vor.u32 %v394_v28, %v393_v61  ;;  %v1052_v14 = vrot.slane %v1050_v2, 4  ;;  %v1093_v34 = vld [vmem:[#allocation2 + $0x50] sm:$0xf]  ;;  %v803_v36 = vrot.slane %v802_v40, 4 }
  0x5a   : > { %668 = vrot.lane.b32.xlu1 %v643_v54, %s8600_s29  ;;  %976 = vrot.lane.b32.xlu0 %v7205_v55, %s8600_s29  ;;  %v1082_v42 = vsel %vm8966_vm4, %v1030_v37, %v1081_v33  ;;  %v382_v53 = vor.u32 %v380_v16, %v379_v38  ;;  %v400_v54 = vrot.slane %v398_v52, 7  ;;  %v7212_v55 = vld [vmem:[%s8727_s16 + $0x14] sm:$0xf]  ;;  %v1059_v17 = vshrl.u32 %v7214_v10, 16  ;;  %v1090_v37 = vld [vmem:[#allocation2 + $0x44] sm:$0xf] }
  0x5b   : > { %1083 = vst [vmem:[#allocation2 + $0x20] sm:$0xf] %v1082_v42  ;;  %v1041_v62 = vshrl.u32 %v7212_v55, 16  ;;  %v1044_v63 = vshll.u32 %v7212_v55, 16  ;;  %v431_v26 = vsel %vm8890_vm2, %v396_v11, %v430_v3  ;;  %v1062_v31 = vshll.u32 %v7214_v10, 16 }
  0x5c   : > { %v425_v32 = vsel %vm8890_vm2, %v382_v53, %v424_v41  ;;  %v403_v33 = vor.u32 %v401_v44, %v400_v54  ;;  %432 = vst [vmem:[#allocation2 + $0x48] sm:$0xf] %v431_v26  ;;  %v1056_v48 = vor.u32 %v1055_v29, %v1052_v14  ;;  %v654_v16 = vrot.slane %v652_v60, 7  ;;  %v715_v38 = vld [vmem:[%s8727_s16 + $0x1c] sm:$0xf] }
  0x5d   : > { %426 = vst [vmem:[#allocation2 + $0x30] sm:$0xf] %v425_v32  ;;  %v1043_v12 = vrot.slane %v1041_v62, 4  ;;  %v1046_v13 = vrot.slane %v1044_v63, 5  ;;  %v1064_v41 = vrot.slane %v1062_v31, 5  ;;  %v650_v60 = vor.u32 %v648_v23, %v647_v18  ;;  %v8267_v44 = vld [vmem:[%s10588_s5 + $0x78] sm:$0xff]  }
  0x5e   : > { %978 = vrot.lane.b32.xlu1 %v7206_v15, %s8600_s29  ;;  %460 = vrot.lane.b32.xlu0 %v441_v35, %s8598_s24  ;;  %v539_v15 = vrot.slane %v538_v5, 4  ;;  %v434_v22 = vsel %vm8890_vm2, %v403_v33, %v433_v59  ;;  %v8221_v24 = vld [vmem:[#allocation2 + $0x8] ss:$12 sps:$4 sm:$0xff]   ;;  %v1087_v5 = vld [vmem:[#allocation2 + $0x38] sm:$0xf]  ;;  %v1061_v35 = vrot.slane %v1059_v17, 4 }
  0x5f   : > { %435 = vst [vmem:[#allocation2 + $0x54] sm:$0xf] %v434_v22  ;;  %v1047_v27 = vor.u32 %v1046_v13, %v1043_v12  ;;  %8114 = vmatprep.mubr.msk.bf16.mxu1 %vm1323_vm5, %v8221_v24  ;;  %v1057_v30 = vrot.slane %v1056_v48, 4  ;;  %723 = vst.msk [vmem:[#allocation2 + $0x58] sm:$0xf] %vm332_vm0, %v715_v38 }
  0x60   : > { %v1065_v39 = vor.u32 %v1064_v41, %v1061_v35  ;;  %v7207_v23 = vld [vmem:[%s8727_s16 + $0x1c] sm:$0xf]  ;;  %v833_v51 = vld [vmem:[#allocation2 + $0x10] sm:$0xf]  ;;  %v830_v53 = vld [vmem:[#allocation2 + $0x4] sm:$0xf] }
  0x61   : > { %v1048_v20 = vrot.slane %v1047_v27, 4  ;;  %v1091_v52 = vsel %vm8966_vm4, %v1057_v30, %v1090_v37  ;;  %v684_v61 = vld [vmem:[#allocation2] sm:$0xf]  ;;  %v836_v11 = vld [vmem:[#allocation2 + $0x1c] sm:$0xf]  ;;  %s323_s16 = sand.u32 1, %s8587_s10  }
  0x62   : > { %462 = vrot.lane.b32.xlu1 %v442_v49, %s8598_s24  ;;  %816 = vrot.lane.b32.xlu0 %v8949_v1, %s8598_s24  ;;  %v8222_v8 = vld [vmem:[#allocation2 + $0x20] ss:$12 sps:$4 sm:$0xff]   ;;  %v910_v1 = vor.u32 %v908_v6, %v8919_v19  ;;  %1092 = vst [vmem:[#allocation2 + $0x44] sm:$0xf] %v1091_v52  ;;  %v1066_v6 = vrot.slane %v1065_v39, 4  ;;  %v657_v19 = vor.u32 %v655_v25, %v654_v16  ;;  %s324_s28 = scalar_lea.vmem [#allocation6], %s323_s16 }
  0x63   : > { %v1088_v47 = vsel %vm8966_vm4, %v1048_v20, %v1087_v5  ;;  %8115 = vmatmul.mubr.msk.bf16.vlgmr.msra.gmra.mxu1 %vm1323_vm5, %v8222_v8  ;;  %v839_v24 = vld [vmem:[#allocation2 + $0x28] sm:$0xf]  ;;  %s7133_s14 = sshll.u32 %s324_s28, 4  ;;  %s7121_s22 = scalar_lea.sflag [#allocation7], %s323_s16  ;;  %s10544_s14 = int_to_ptr.vmem [resolvable:$true] %s7133_s14 }
  0x64   : > { %1089 = vst [vmem:[#allocation2 + $0x38] sm:$0xf] %v1088_v47  ;;  %v1094_v9 = vsel %vm8966_vm4, %v1066_v6, %v1093_v34  ;;  %p8542_p0 = scmp.lt.s32.totalorder %s10544_s14, %s8540_s25 }
  0x65   : > { %1095 = vst [vmem:[#allocation2 + $0x50] sm:$0xf] %v1094_v9 }
  0x66   : > { %559 = vrot.lane.b32.xlu1 %v539_v15, %s8599_s27  ;;  %561 = vrot.lane.b32.xlu0 %v548_v43, %s8599_s27 }
  0x6a   : > { %923 = vrot.lane.b32.xlu1 %v910_v1, %s8599_s27  ;;  %670 = vrot.lane.b32.xlu0 %v650_v60, %s8600_s29 }
  0x6b   : > { %v8229_v0 = vld [vmem:[#allocation2 + $0x38] ss:$12 sps:$4 sm:$0xff]  }
  0x6c   : > { %8118 = vmatprep.mubr.msk.bf16.mxu1 %vm1323_vm5, %v8229_v0  ;;  %v8230_v42 = vld [vmem:[#allocation2 + $0x50] ss:$12 sps:$4 sm:$0xff]  }
  0x6d   : > { %8119 = vmatmul.mubr.msk.bf16.gmra.mxu1 %vm1323_vm5, %v8230_v42 }
  0x6e   : > { %672 = vrot.lane.b32.xlu1 %v657_v19, %s8600_s29  ;;  %818 = vrot.lane.b32.xlu0 %v803_v36, %s8598_s24 }
  0x72   : > { %980 = vrot.lane.b32.xlu1 %v7207_v23, %s8600_s29  ;;  %v842_v23 = vld [vmem:[#allocation2 + $0x34] sm:$0xf] }
  0x8a   : > { %v451_v21 = vpop.permute.xlu0 %450 }
  0x8b   : > { %v455_v25 = vpop.permute.xlu1 %454  ;;  %472 = vst.msk [vmem:[#allocation2 + $0xc] sm:$0xf] %vm471_vm6, %v451_v21  ;;  %v845_v21 = vld [vmem:[#allocation2 + $0x40] sm:$0xf] }
  0x8c   : > { %474 = vst.msk [vmem:[#allocation2 + $0x24] sm:$0xf] %vm471_vm6, %v455_v25 }
  0x8e   : > { %v453_v45 = vpop.permute.xlu0 %452 }
  0x8f   : > { %473 = vst.msk [vmem:[#allocation2 + $0x18] sm:$0xf] %vm471_vm6, %v453_v45 }
  0x92   : > { %v573_v63 = vld [vmem:[#allocation2 + $0xc] sm:$0xf] }
  0x93   : > { %v579_v5 = vld [vmem:[#allocation2 + $0x24] sm:$0xf] }
  0x94   : > { %v914_v49 = vpop.permute.xlu1 %913  ;;  %v912_v50 = vpop.permute.xlu0 %911 }
  0x96   : > { %v576_v26 = vld [vmem:[#allocation2 + $0x18] sm:$0xf] }
  0x98   : > { %v807_v55 = vpop.permute.xlu1 %806  ;;  %v805_v59 = vpop.permute.xlu0 %804 }
  0x99   : > { %v834_v56 = vsel %vm9055_vm9, %v807_v55, %v833_v51  ;;  %v831_v62 = vsel %vm9055_vm9, %v805_v59, %v830_v53 }
  0x9a   : > { %835 = vst [vmem:[#allocation2 + $0x10] sm:$0xf] %v834_v56  ;;  %832 = vst [vmem:[#allocation2 + $0x4] sm:$0xf] %v831_v62 }
  0x9c   : > { %v550_v2 = vpop.permute.xlu1 %549  ;;  %v659_v32 = vpop.permute.xlu0 %658 }
  0x9d   : > { %v574_v4 = vsel %vm9062_vm10, %v550_v2, %v573_v63  ;;  %v685_v33 = vsel %vm9068_vm11, %v659_v32, %v684_v61 }
  0x9e   : > { %575 = vst [vmem:[#allocation2 + $0xc] sm:$0xf] %v574_v4  ;;  %686 = vst [vmem:[#allocation2] sm:$0xf] %v685_v33 }
  0xa0   : > { %v661_v3 = vpop.permute.xlu1 %660  ;;  %v969_v10 = vpop.permute.xlu0 %968 }
  0xa1   : > { %v936_v7 = vld [vmem:[#allocation2 + $0x10] sm:$0xf]  ;;  %v933_v13 = vld [vmem:[#allocation2 + $0x4] sm:$0xf] }
  0xa2   : > { %v937_v12 = vsel %vm9074_vm12, %v914_v49, %v936_v7  ;;  %v934_v14 = vsel %vm9074_vm12, %v912_v50, %v933_v13 }
  0xa3   : > { %938 = vst [vmem:[#allocation2 + $0x10] sm:$0xf] %v937_v12  ;;  %935 = vst [vmem:[#allocation2 + $0x4] sm:$0xf] %v934_v14 }
  0xa4   : > { %v971_v15 = vpop.permute.xlu1 %970  ;;  %990 = vst.msk [vmem:[#allocation2 + $0x4] sm:$0xf] %vm682_vm8, %v969_v10  ;;  %v809_v29 = vpop.permute.xlu0 %808 }
  0xa5   : > { %v687_v22 = vld [vmem:[#allocation2 + $0xc] sm:$0xf]  ;;  %991 = vst.msk [vmem:[#allocation2 + $0x10] sm:$0xf] %vm682_vm8, %v971_v15  ;;  %v837_v18 = vsel %vm9055_vm9, %v809_v29, %v836_v11 }
  0xa6   : > { %v688_v17 = vsel %vm9068_vm11, %v661_v3, %v687_v22  ;;  %838 = vst [vmem:[#allocation2 + $0x1c] sm:$0xf] %v837_v18 }
  0xa7   : > { %689 = vst [vmem:[#allocation2 + $0xc] sm:$0xf] %v688_v17  ;;  %v848_v17 = vld [vmem:[#allocation2 + $0x4c] sm:$0xf] }
  0xa8   : > { %v811_v27 = vpop.permute.xlu1 %810  ;;  %v552_v43 = vpop.permute.xlu0 %551 }
  0xa9   : > { %v840_v31 = vsel %vm9055_vm9, %v811_v27, %v839_v24  ;;  %v577_v48 = vsel %vm9062_vm10, %v552_v43, %v576_v26 }
  0xaa   : > { %841 = vst [vmem:[#allocation2 + $0x28] sm:$0xf] %v840_v31  ;;  %578 = vst [vmem:[#allocation2 + $0x18] sm:$0xf] %v577_v48 }
  0xac   : > { %v554_v35 = vpop.permute.xlu1 %553  ;;  %v916_v20 = vpop.permute.xlu0 %915  ;;  %v8218_v41 = vld [vmem:[#allocation2 + $0x4] ss:$12 sps:$4 sm:$0xff]  }
  0xad   : > { %v580_v40 = vsel %vm9062_vm10, %v554_v35, %v579_v5  ;;  %v939_v37 = vld [vmem:[#allocation2 + $0x1c] sm:$0xf]  ;;  %1368 = vmatprep.mubr.bf16.mxu0 %v8218_v41 }
  0xae   : > { %581 = vst [vmem:[#allocation2 + $0x24] sm:$0xf] %v580_v40  ;;  %v940_v16 = vsel %vm9074_vm12, %v916_v20, %v939_v37  ;;  %v8220_v8 = vld [vmem:[#allocation2] ss:$12 sps:$4 sm:$0xff]  }
  0xaf   : > { %941 = vst [vmem:[#allocation2 + $0x1c] sm:$0xf] %v940_v16  ;;  %1369 = vmatmul.mubr.bf16.vlgmr.msra.gmra.mxu0 %v8220_v8  ;;  %v851_v16 = vld [vmem:[#allocation2 + $0x58] sm:$0xf] }
  0xb0   : > { %v918_v30 = vpop.permute.xlu1 %917  ;;  %v663_v1 = vpop.permute.xlu0 %662 }
  0xb1   : > { %v942_v34 = vld [vmem:[#allocation2 + $0x28] sm:$0xf]  ;;  %v690_v39 = vld [vmem:[#allocation2 + $0x18] sm:$0xf] }
  0xb2   : > { %v943_v47 = vsel %vm9074_vm12, %v918_v30, %v942_v34  ;;  %v691_v38 = vsel %vm9068_vm11, %v663_v1, %v690_v39 }
  0xb3   : > { %944 = vst [vmem:[#allocation2 + $0x28] sm:$0xf] %v943_v47  ;;  %692 = vst [vmem:[#allocation2 + $0x18] sm:$0xf] %v691_v38 }
  0xb4   : > { %v665_v60 = vpop.permute.xlu1 %664  ;;  %v973_v36 = vpop.permute.xlu0 %972 }
  0xb5   : > { %v693_v52 = vld [vmem:[#allocation2 + $0x24] sm:$0xf]  ;;  %992 = vst.msk [vmem:[#allocation2 + $0x1c] sm:$0xf] %vm682_vm8, %v973_v36 }
  0xb6   : > { %v694_v6 = vsel %vm9068_vm11, %v665_v60, %v693_v52 }
  0xb7   : > { %695 = vst [vmem:[#allocation2 + $0x24] sm:$0xf] %v694_v6 }
  0xb8   : > { %v975_v19 = vpop.permute.xlu1 %974  ;;  %v457_v9 = vpop.permute.xlu0 %456 }
  0xb9   : > { %993 = vst.msk [vmem:[#allocation2 + $0x28] sm:$0xf] %vm682_vm8, %v975_v19 }
  0xba   : > { %475 = vst.msk [vmem:[#allocation2 + $0x30] sm:$0xf] %vm471_vm6, %v457_v9  ;;  %v8235_v9 = vld [vmem:[%s10586_s3 + $0x88] sm:$0xff]  }
  0xbb   : > { %8122 = vmatprep.subr.bf16.mxu0 %v8235_v9 }
  0xbc   : > { %v459_v0 = vpop.permute.xlu1 %458  ;;  %v813_v42 = vpop.permute.xlu0 %812  ;;  %8123 = vmatpush3.bf16.msra.mxu0 %v8235_v9 }
  0xbd   : > { %476 = vst.msk [vmem:[#allocation2 + $0x3c] sm:$0xf] %vm471_vm6, %v459_v0  ;;  %v843_v25 = vsel %vm9055_vm9, %v813_v42, %v842_v23  ;;  %v8236_v23 = vld [vmem:[%s10586_s3 + $0x80] sm:$0xff]  }
  0xbe   : > { %844 = vst [vmem:[#allocation2 + $0x34] sm:$0xf] %v843_v25  ;;  %v8225_v50 = vld [vmem:[#allocation2 + $0x18] ss:$12 sps:$4 sm:$0xff]   ;;  %8124 = vmatprep.subr.bf16.mxu0 %v8236_v23  ;;  %v9158_v25 = vld [vmem:[%s10585_s2] ss:$0 sm:$0xff] }
  0xc0   : > { %v815_v45 = vpop.permute.xlu1 %814  ;;  %v8223_v49 = vld [vmem:[#allocation2 + $0x1c] ss:$12 sps:$4 sm:$0xff]   ;;  %v556_v53 = vpop.permute.xlu0 %555  ;;  %8125 = vmatpush3.bf16.msra.mxu0 %v8236_v23 }
  0xc1   : > { %v846_v51 = vsel %vm9055_vm9, %v815_v45, %v845_v21  ;;  %v582_v55 = vld [vmem:[#allocation2 + $0x30] sm:$0xf]  ;;  %1376 = vmatprep.mubr.bf16.mxu0 %v8223_v49 }
  0xc2   : > { %847 = vst [vmem:[#allocation2 + $0x40] sm:$0xf] %v846_v51  ;;  %v583_v56 = vsel %vm9062_vm10, %v556_v53, %v582_v55  ;;  %1377 = vmatmul.mubr.bf16.gmra.mxu0 %v8225_v50 }
  0xc3   : > { %584 = vst [vmem:[#allocation2 + $0x30] sm:$0xf] %v583_v56 }
  0xc4   : > { %v558_v59 = vpop.permute.xlu1 %557  ;;  %v585_v61 = vld [vmem:[#allocation2 + $0x3c] sm:$0xf]  ;;  %v920_v63 = vpop.permute.xlu0 %919 }
  0xc5   : > { %v586_v62 = vsel %vm9062_vm10, %v558_v59, %v585_v61  ;;  %v945_v2 = vld [vmem:[#allocation2 + $0x34] sm:$0xf]  ;;  %v8240_v61 = vld [vmem:[%s10586_s3 + $0x78] sm:$0xff]  }
  0xc6   : > { %587 = vst [vmem:[#allocation2 + $0x3c] sm:$0xf] %v586_v62  ;;  %v946_v4 = vsel %vm9074_vm12, %v920_v63, %v945_v2  ;;  %7703 = vmatprep.subr.bf16.mxu1 %v8240_v61 }
  0xc7   : > { %947 = vst [vmem:[#allocation2 + $0x34] sm:$0xf] %v946_v4 }
  0xc8   : > { %v922_v32 = vpop.permute.xlu1 %921  ;;  %v667_v3 = vpop.permute.xlu0 %666 }
  0xc9   : > { %v948_v33 = vld [vmem:[#allocation2 + $0x40] sm:$0xf] }
  0xca   : > { %v949_v7 = vsel %vm9074_vm12, %v922_v32, %v948_v33  ;;  %v696_v10 = vld [vmem:[#allocation2 + $0x30] sm:$0xf] }
  0xcb   : > { %950 = vst [vmem:[#allocation2 + $0x40] sm:$0xf] %v949_v7  ;;  %v697_v11 = vsel %vm9068_vm11, %v667_v3, %v696_v10  ;;  %v8241_v10 = vld [vmem:[%s10586_s3 + $0x38] sm:$0xff]  }
  0xcc   : > { %v669_v12 = vpop.permute.xlu1 %668  ;;  %698 = vst [vmem:[#allocation2 + $0x30] sm:$0xf] %v697_v11  ;;  %v977_v14 = vpop.permute.xlu0 %976  ;;  %v8242_v11 = vld [vmem:[%s10586_s3 + $0x70] sm:$0xff]   ;;  %7704 = vmatpush3.bf16.msra.mxu1 %v8241_v10 }
  0xcd   : > { %v699_v13 = vld [vmem:[#allocation2 + $0x3c] sm:$0xf]  ;;  %994 = vst.msk [vmem:[#allocation2 + $0x34] sm:$0xf] %vm682_vm8, %v977_v14  ;;  %7705 = vmatprep.subr.bf16.mxu1 %v8242_v11 }
  0xce   : > { %v700_v15 = vsel %vm9068_vm11, %v669_v12, %v699_v13 }
  0xcf   : > { %701 = vst [vmem:[#allocation2 + $0x3c] sm:$0xf] %v700_v15 }
  0xd0   : > { %v979_v22 = vpop.permute.xlu1 %978  ;;  %v461_v29 = vpop.permute.xlu0 %460 }
  0xd1   : > { %995 = vst.msk [vmem:[#allocation2 + $0x40] sm:$0xf] %vm682_vm8, %v979_v22 }
  0xd2   : > { %477 = vst.msk [vmem:[#allocation2 + $0x48] sm:$0xf] %vm471_vm6, %v461_v29 }
  0xd4   : > { %v463_v18 = vpop.permute.xlu1 %462  ;;  %v817_v24 = vpop.permute.xlu0 %816 }
  0xd5   : > { %478 = vst.msk [vmem:[#allocation2 + $0x54] sm:$0xf] %vm471_vm6, %v463_v18  ;;  %v849_v26 = vsel %vm9055_vm9, %v817_v24, %v848_v17 }
  0xd6   : > { %850 = vst [vmem:[#allocation2 + $0x4c] sm:$0xf] %v849_v26  ;;  %v8228_v43 = vld [vmem:[#allocation2 + $0x30] ss:$12 sps:$4 sm:$0xff]  }
  0xd8   : > { %v560_v27 = vpop.permute.xlu1 %559  ;;  %v8226_v31 = vld [vmem:[#allocation2 + $0x34] ss:$12 sps:$4 sm:$0xff]   ;;  %v562_v5 = vpop.permute.xlu0 %561 }
  0xd9   : > { %v588_v48 = vld [vmem:[#allocation2 + $0x48] sm:$0xf]  ;;  %1384 = vmatprep.mubr.bf16.mxu0 %v8226_v31 }
  0xda   : > { %v589_v35 = vsel %vm9062_vm10, %v560_v27, %v588_v48  ;;  %1385 = vmatmul.mubr.bf16.gmra.mxu0 %v8228_v43 }
  0xdb   : > { %590 = vst [vmem:[#allocation2 + $0x48] sm:$0xf] %v589_v35 }
  0xdc   : > { %v591_v40 = vld [vmem:[#allocation2 + $0x54] sm:$0xf]  ;;  %v924_v20 = vpop.permute.xlu1 %923  ;;  %v671_v41 = vpop.permute.xlu0 %670 }
  0xdd   : > { %v592_v37 = vsel %vm9062_vm10, %v562_v5, %v591_v40  ;;  %v951_v8 = vld [vmem:[#allocation2 + $0x4c] sm:$0xf] }
  0xde   : > { %593 = vst [vmem:[#allocation2 + $0x54] sm:$0xf] %v592_v37  ;;  %v952_v30 = vsel %vm9074_vm12, %v924_v20, %v951_v8 }
  0xdf   : > { %953 = vst [vmem:[#allocation2 + $0x4c] sm:$0xf] %v952_v30 }
  0xe0   : > { %v673_v34 = vpop.permute.xlu1 %672  ;;  %v819_v1 = vpop.permute.xlu0 %818 }
  0xe1   : > { %v852_v39 = vsel %vm9055_vm9, %v819_v1, %v851_v16 }
  0xe2   : > { %v702_v47 = vld [vmem:[#allocation2 + $0x48] sm:$0xf]  ;;  %853 = vst [vmem:[#allocation2 + $0x58] sm:$0xf] %v852_v39 }
  0xe3   : > { %v703_v38 = vsel %vm9068_vm11, %v671_v41, %v702_v47  ;;  %v8243_v47 = vld [vmem:[%s10586_s3 + $0x30] sm:$0xff]  }
  0xe4   : > { %704 = vst [vmem:[#allocation2 + $0x48] sm:$0xf] %v703_v38  ;;  %v981_v60 = vpop.permute.xlu1 %980  ;;  %7706 = vmatpush3.bf16.msra.mxu1 %v8243_v47 }
  0xe5   : > { %v705_v52 = vld [vmem:[#allocation2 + $0x54] sm:$0xf]  ;;  %996 = vst.msk [vmem:[#allocation2 + $0x4c] sm:$0xf] %vm682_vm8, %v981_v60 }
  0xe6   : > { %v706_v36 = vsel %vm9068_vm11, %v673_v34, %v705_v52 }
  0xe7   : > { %707 = vst [vmem:[#allocation2 + $0x54] sm:$0xf] %v706_v36  ;;  %v8244_v36 = vld [vmem:[%s10586_s3 + $0x68] sm:$0xff]  }
  0xe8   : > { %7707 = vmatprep.subr.bf16.mxu1 %v8244_v36 }
  0xec   : > { %v8231_v6 = vld [vmem:[#allocation2 + $0x4c] ss:$12 sps:$4 sm:$0xff]  }
  0xed   : > { %1392 = vmatprep.mubr.bf16.mxu0 %v8231_v6 }
  0xee   : > { %v8233_v19 = vld [vmem:[#allocation2 + $0x48] ss:$12 sps:$4 sm:$0xff]  }
  0xef   : > { %1393 = vmatmul.mubr.bf16.gmra.mxu0 %v8233_v19 }
 0x123   : > { %v8116_v0 = vpop.f32.mrf.mxu1 }
 0x125   : > { %v1435_v45 = vpop.f32.mrf.mxu1 }
 0x127   : > { %v9161_v55 = vpop.f32.mrf.mxu1 }
 0x129   : > { %v1438_v2 = vpop.f32.mrf.mxu1 }
 0x16f   : > { %v7673_v42 = vpop.f32.mrf.mxu0 }
 0x171   : > { %v7674_v21 = vpop.f32.mrf.mxu0 }
 0x172   : > { %v7675_v49 = vadd.f32 %v7674_v21, %v7673_v42 }
 0x173   : > { %v7676_v50 = vpop.f32.mrf.mxu0 }
 0x174   : > { %v1371_v51 = vadd.f32 %v7675_v49, %v9158_v25 }
 0x175   : > { %v7677_v53 = vpop.f32.mrf.mxu0 }
 0x176   : > { %v1436_v56 = vadd.f32 %v1435_v45, %v1371_v51  ;;  %v7678_v59 = vadd.f32 %v7677_v53, %v7676_v50 }
 0x178   : > { %v1466_v62 = vmax.f32 %v1436_v56, 0.0  ;;  %v1374_v63 = vadd.f32 %v7678_v59, %v9158_v25 }
 0x17a   : > { %v1474_v4 = vpack.c.bf16 %v1466_v62, %v1466_v62  ;;  %v1439_v32 = vadd.f32 %v1438_v2, %v1374_v63 }
 0x17c   : > { %1482 = vst.msk [vmem:[#allocation3] sm:$0xf] %vm332_vm0, %v1474_v4  ;;  %v1467_v33 = vmax.f32 %v1439_v32, 0.0 }
 0x17e   : > { %v1475_v3 = vpack.c.bf16 %v1467_v33, %v1467_v33 }
 0x180   : > { %1483 = vst.msk [vmem:[#allocation3 + $0x4] sm:$0xf] %vm332_vm0, %v1475_v3  ;;  %v2202_v3 = vld [vmem:[#allocation2 + $0x8] sm:$0xf] }
 0x182   : > { %v7679_v7 = vpop.f32.mrf.mxu0 }
 0x183   : > { %v1490_v12 = vld [vmem:[#allocation3] sm:$0xf] }
 0x184   : > { %v7680_v13 = vpop.f32.mrf.mxu0  ;;  %v1574_v14 = vld [vmem:[#allocation3] sm:$0xf]  ;;  %v1498_v22 = vshrl.u32 %v1490_v12, 16  ;;  %v1501_v31 = vshll.u32 %v1490_v12, 16 }
 0x185   : > { %v1856_v15 = vld [vmem:[#allocation3] sm:$0xf]  ;;  %v7681_v29 = vadd.f32 %v7680_v13, %v7679_v7  ;;  %1588 = vrot.lane.b32.xlu0 %v1574_v14, %s8598_s24 }
 0x186   : > { %v1865_v17 = vshrl.u32 %v1856_v15, 16  ;;  %v1616_v18 = vld [vmem:[#allocation3] sm:$0xf]  ;;  %v7682_v24 = vpop.f32.mrf.mxu0  ;;  %v1868_v26 = vshll.u32 %v1856_v15, 16  ;;  %v1500_v40 = vrot.slane %v1498_v22, 7 }
 0x187   : > { %v1624_v27 = vshrl.u32 %v1616_v18, 16  ;;  %v1379_v43 = vadd.f32 %v7681_v29, %v9158_v25  ;;  %v1627_v5 = vshll.u32 %v1616_v18, 16  ;;  %v1840_v35 = vld [vmem:[#allocation3] sm:$0xf]  ;;  %v1491_v20 = vld [vmem:[#allocation3 + $0x4] sm:$0xf] }
 0x188   : > { %v1867_v48 = vrot.slane %v1865_v17, 4  ;;  %v2125_v37 = vld [vmem:[#allocation3 + $0x4] sm:$0xf]  ;;  %v7683_v41 = vpop.f32.mrf.mxu0  ;;  %v1870_v16 = vrot.slane %v1868_v26, 5  ;;  %1848 = vst.msk [vmem:[#allocation2 + $0x4] sm:$0xf] %vm332_vm0, %v1840_v35  ;;  %v1503_v32 = vor.u32 %v1501_v31, %v1500_v40 }
 0x189   : > { %v1505_v8 = vshrl.u32 %v1491_v20, 16  ;;  %v2133_v30 = vshrl.u32 %v2125_v37, 16  ;;  %v1626_v34 = vrot.slane %v1624_v27, 4  ;;  %v1857_v1 = vld [vmem:[#allocation3 + $0x4] sm:$0xf]  ;;  %v2136_v39 = vshll.u32 %v2125_v37, 16 }
 0x18a   : > { %v1444_v38 = vadd.f32 %v8116_v0, %v1379_v43  ;;  %v7684_v60 = vadd.f32 %v7683_v41, %v7682_v24  ;;  %v1871_v52 = vor.u32 %v1870_v16, %v1867_v48  ;;  %v1629_v9 = vrot.slane %v1627_v5, 5  ;;  %v1729_v42 = vld [vmem:[#allocation3 + $0x4] sm:$0xf]  ;;  %v1728_v11 = vld [vmem:[#allocation3] sm:$0xf]  ;;  %v8248_v35 = vld [vmem:[%s10586_s3 + $0x58] sm:$0xff]  }
 0x18b   : > { %v1507_v6 = vrot.slane %v1505_v8, 7  ;;  %v2135_v19 = vrot.slane %v2133_v30, 4  ;;  %v1874_v23 = vshrl.u32 %v1857_v1, 16  ;;  %v2138_v21 = vrot.slane %v2136_v39, 5  ;;  %v1985_v51 = vld [vmem:[#allocation3 + $0x4] sm:$0xf]  ;;  %v9211_v30 = vpop.f32.mrf.mxu1 }
 0x18c   : > { %v1468_v45 = vmax.f32 %v1444_v38, 0.0  ;;  %v1382_v49 = vadd.f32 %v7684_v60, %v9158_v25  ;;  %v1872_v50 = vrot.slane %v1871_v52, 4  ;;  %v1508_v0 = vshll.u32 %v1491_v20, 16  ;;  %v1841_v61 = vld [vmem:[#allocation3 + $0x4] sm:$0xf]  ;;  %v8250_v60 = vld [vmem:[%s10586_s3 + $0x50] sm:$0xff]  }
 0x18d   : > { %v1630_v53 = vor.u32 %v1629_v9, %v1626_v34  ;;  %v1876_v56 = vrot.slane %v1874_v23, 4  ;;  %v1877_v59 = vshll.u32 %v1857_v1, 16  ;;  %v2139_v62 = vor.u32 %v2138_v21, %v2135_v19  ;;  %1849 = vst.msk [vmem:[#allocation2 + $0x10] sm:$0xf] %vm332_vm0, %v1841_v61  ;;  %v8246_v22 = vld [vmem:[%s10586_s3 + $0x60] sm:$0xff]   ;;  %v8249_v34 = vld [vmem:[%s10586_s3 + $0x18] sm:$0xff]  }
 0x18e   : > { %v1476_v63 = vpack.c.bf16 %v1468_v45, %v1468_v45  ;;  %v1447_v2 = vadd.f32 %v9161_v55, %v1382_v49  ;;  %1936 = vrot.lane.b32.xlu1 %v1872_v50, %s8598_s24  ;;  %v1744_v4 = vshrl.u32 %v1729_v42, 16  ;;  %v1510_v33 = vor.u32 %v1508_v0, %v1507_v6  ;;  %v8245_v55 = vld [vmem:[%s10586_s3 + $0x28] sm:$0xff]   ;;  %v1617_v26 = vld [vmem:[#allocation3 + $0x4] sm:$0xf]  ;;  %v1556_v40 = vld [vmem:[#allocation2 + $0x18] sm:$0xf] }
 0x18f   : > { %v1879_v7 = vrot.slane %v1877_v59, 5  ;;  %v1993_v10 = vshrl.u32 %v1985_v51, 16  ;;  %v2140_v12 = vrot.slane %v2139_v62, 4  ;;  %v1631_v14 = vrot.slane %v1630_v53, 4  ;;  %v1553_v27 = vld [vmem:[#allocation2 + $0xc] sm:$0xf]  ;;  %7708 = vmatpush3.bf16.msra.mxu1 %v8245_v55 }
 0x190   : > { %1484 = vst.msk [vmem:[#allocation3 + $0x8] sm:$0xf] %vm332_vm0, %v1476_v63  ;;  %v1469_v13 = vmax.f32 %v1447_v2, 0.0  ;;  %v1746_v15 = vrot.slane %v1744_v4, 7  ;;  %v1747_v24 = vshll.u32 %v1729_v42, 16  ;;  %v8247_v31 = vld [vmem:[%s10586_s3 + $0x20] sm:$0xff]   ;;  %7709 = vmatprep.subr.bf16.mxu1 %v8246_v22  ;;  %v1554_v37 = vsel %vm8890_vm2, %v1503_v32, %v1553_v27 }
 0x191   : > { %v1880_v29 = vor.u32 %v1879_v7, %v1876_v56  ;;  %v2203_v17 = vsel %vm8966_vm4, %v2140_v12, %v2202_v3  ;;  %v1995_v48 = vrot.slane %v1993_v10, 7  ;;  %v1737_v5 = vshrl.u32 %v1728_v11, 16  ;;  %1555 = vst [vmem:[#allocation2 + $0xc] sm:$0xf] %v1554_v37  ;;  %v8251_v53 = vld [vmem:[%s10586_s3 + $0x10] sm:$0xff]   ;;  %v8252_v2 = vld [vmem:[%s10586_s3 + $0x48] sm:$0xff]  }
 0x192   : > { %v1477_v18 = vpack.c.bf16 %v1469_v13, %v1469_v13  ;;  %1686 = vrot.lane.b32.xlu1 %v1631_v14, %s8599_s27  ;;  %2204 = vst [vmem:[#allocation2 + $0x8] sm:$0xf] %v2203_v17  ;;  %v1749_v20 = vor.u32 %v1747_v24, %v1746_v15  ;;  %v1557_v41 = vsel %vm8890_vm2, %v1510_v33, %v1556_v40  ;;  %v1996_v16 = vshll.u32 %v1985_v51, 16  ;;  %v1451_v51 = vpop.f32.mrf.mxu1  ;;  %v2205_v63 = vld [vmem:[#allocation2 + $0x14] sm:$0xf] }
 0x193   : > { %v1881_v43 = vrot.slane %v1880_v29, 4  ;;  %v1633_v8 = vshrl.u32 %v1617_v26, 16  ;;  %1558 = vst [vmem:[#allocation2 + $0x18] sm:$0xf] %v1557_v41  ;;  %7710 = vmatpush3.bf16.msra.mxu1 %v8247_v31  ;;  %v1739_v39 = vrot.slane %v1737_v5, 7  ;;  %v1636_v6 = vshll.u32 %v1617_v26, 16 }
 0x194   : > { %1485 = vst.msk [vmem:[#allocation3 + $0xc] sm:$0xf] %vm332_vm0, %v1477_v18  ;;  %v1998_v47 = vor.u32 %v1996_v16, %v1995_v48  ;;  %7711 = vmatprep.subr.bf16.mxu1 %v8248_v35  ;;  %v1740_v9 = vshll.u32 %v1728_v11, 16  ;;  %v9237_v18 = vpop.f32.mrf.mxu1  ;;  %v2083_v48 = vld [vmem:[#allocation3 + $0x4] sm:$0xf] }
 0x195   : > { %1938 = vrot.lane.b32.xlu0 %v1881_v43, %s8598_s24  ;;  %v9222_v42 = vrot.slane %v1633_v8, 4  ;;  %v9232_v3 = vrot.slane %v1636_v6, 5  ;;  %v2208_v16 = vld [vmem:[#allocation2 + $0x20] sm:$0xf] }
 0x196   : > { %1794 = vrot.lane.b32.xlu1 %v1749_v20, %s8600_s29  ;;  %v1742_v61 = vor.u32 %v1740_v9, %v1739_v39 }
 0x197   : > { %v2126_v1 = vld [vmem:[#allocation3 + $0x8] sm:$0xf]  ;;  %7712 = vmatpush3.bf16.msra.mxu1 %v8249_v34  ;;  %v1639_v6 = vor.u32 %v9232_v3, %v9222_v42 }
 0x198   : > { %v1986_v38 = vld [vmem:[#allocation3 + $0x8] sm:$0xf]  ;;  %v2142_v52 = vshrl.u32 %v2126_v1, 16  ;;  %v2145_v36 = vshll.u32 %v2126_v1, 16  ;;  %7713 = vmatprep.subr.bf16.mxu1 %v8250_v60 }
 0x199   : > { %v9219_v19 = vld [vmem:[#allocation3 + $0x8] sm:$0xf]  ;;  %2041 = vrot.lane.b32.xlu0 %v1998_v47, %s8599_s27  ;;  %v2000_v23 = vshrl.u32 %v1986_v38, 16  ;;  %v2003_v50 = vshll.u32 %v1986_v38, 16 }
 0x19a   : > { %v2144_v21 = vrot.slane %v2142_v52, 4  ;;  %v2147_v45 = vrot.slane %v2145_v36, 5  ;;  %v7685_v49 = vpop.f32.mrf.mxu0  ;;  %v1618_v0 = vld [vmem:[#allocation3 + $0x8] sm:$0xf]  ;;  %v1512_v11 = vshrl.u32 %v9219_v19, 16  ;;  %v1454_v36 = vpop.f32.mrf.mxu1 }
 0x19b   : > { %v9227_v56 = vld [vmem:[#allocation3 + $0xc] sm:$0xf]  ;;  %v2002_v62 = vrot.slane %v2000_v23, 7  ;;  %v1642_v7 = vshrl.u32 %v1618_v0, 16  ;;  %v1858_v10 = vld [vmem:[#allocation3 + $0x8] sm:$0xf]  ;;  %7714 = vmatpush3.bf16.msra.mxu1 %v8251_v53 }
 0x19c   : > { %v2127_v59 = vld [vmem:[#allocation3 + $0xc] sm:$0xf]  ;;  %v2148_v4 = vor.u32 %v2147_v45, %v2144_v21  ;;  %v7686_v33 = vpop.f32.mrf.mxu0  ;;  %v1519_v22 = vshrl.u32 %v9227_v56, 16  ;;  %v1645_v24 = vshll.u32 %v1618_v0, 16  ;;  %v1883_v31 = vshrl.u32 %v1858_v10, 16  ;;  %7715 = vmatprep.subr.bf16.mxu1 %v8252_v2  ;;  %v8254_v23 = vld [vmem:[%s10586_s3 + $0x40] sm:$0xff]  }
 0x19d   : > { %v2151_v32 = vshrl.u32 %v2127_v59, 16  ;;  %v2154_v12 = vshll.u32 %v2127_v59, 16  ;;  %1792 = vrot.lane.b32.xlu0 %v1742_v61, %s8600_s29  ;;  %v7687_v13 = vadd.f32 %v7686_v33, %v7685_v49  ;;  %v2005_v14 = vor.u32 %v2003_v50, %v2002_v62  ;;  %v1859_v15 = vld [vmem:[#allocation3 + $0xc] sm:$0xf]  ;;  %v2084_v60 = vld [vmem:[#allocation3 + $0x8] sm:$0xf] }
 0x19e   : > { %v2149_v55 = vrot.slane %v2148_v4, 4  ;;  %v7688_v17 = vpop.f32.mrf.mxu0  ;;  %v1886_v43 = vshll.u32 %v1858_v10, 16  ;;  %v1644_v35 = vrot.slane %v1642_v7, 4  ;;  %v1892_v20 = vshrl.u32 %v1859_v15, 16  ;;  %v8253_v47 = vld [vmem:[%s10586_s3 + $0x8] sm:$0xff]   ;;  %v8255_v0 = vld [vmem:[%s10586_s3] sm:$0xff]  }
 0x19f   : > { %v2153_v29 = vrot.slane %v2151_v32, 4  ;;  %v2156_v26 = vrot.slane %v2154_v12, 5  ;;  %2043 = vrot.lane.b32.xlu1 %v2005_v14, %s8599_s27  ;;  %v1387_v27 = vadd.f32 %v7687_v13, %v9158_v25  ;;  %v1895_v37 = vshll.u32 %v1859_v15, 16  ;;  %v1575_v52 = vld [vmem:[#allocation3 + $0x4] sm:$0xf]  ;;  %7716 = vmatpush3.bf16.msra.mxu1 %v8253_v47 }
 0x1a0   : > { %v7689_v5 = vpop.f32.mrf.mxu0  ;;  %v2206_v40 = vsel %vm8966_vm4, %v2149_v55, %v2205_v63  ;;  %v1647_v1 = vrot.slane %v1645_v24, 5  ;;  %v1514_v39 = vrot.slane %v1512_v11, 7  ;;  %v1521_v38 = vrot.slane %v1519_v22, 7  ;;  %v1730_v59 = vld [vmem:[#allocation3 + $0x8] sm:$0xf]  ;;  %7717 = vmatprep.subr.bf16.mxu1 %v8254_v23 }
 0x1a1   : > { %v2157_v41 = vor.u32 %v2156_v26, %v2153_v29  ;;  %2097 = vrot.lane.b32.xlu0 %v2083_v48, %s8600_s29  ;;  %v7690_v8 = vadd.f32 %v7689_v5, %v7688_v17  ;;  %v1452_v34 = vadd.f32 %v1451_v51, %v1387_v27  ;;  %2207 = vst [vmem:[#allocation2 + $0x14] sm:$0xf] %v2206_v40  ;;  %v1885_v9 = vrot.slane %v1883_v31, 4  ;;  %v1842_v51 = vld [vmem:[#allocation3 + $0x8] sm:$0xf] }
 0x1a2   : > { %v1888_v50 = vrot.slane %v1886_v43, 5  ;;  %v1894_v53 = vrot.slane %v1892_v20, 4  ;;  %v1897_v42 = vrot.slane %v1895_v37, 5  ;;  %1850 = vst.msk [vmem:[#allocation2 + $0x1c] sm:$0xf] %vm332_vm0, %v1842_v51  ;;  %v1648_v4 = vor.u32 %v1647_v1, %v1644_v35 }
 0x1a3   : > { %v2158_v21 = vrot.slane %v2157_v41, 4  ;;  %v1470_v45 = vmax.f32 %v1452_v34, 0.0  ;;  %2099 = vrot.lane.b32.xlu1 %v2084_v60, %s8600_s29  ;;  %v1390_v49 = vadd.f32 %v7690_v8, %v9158_v25  ;;  %v1843_v61 = vld [vmem:[#allocation3 + $0xc] sm:$0xf]  ;;  %v1515_v33 = vshll.u32 %v9219_v19, 16  ;;  %7718 = vmatpush3.bf16.msra.mxu1 %v8255_v0 }
 0x1a4   : > { %v1731_v32 = vld [vmem:[#allocation3 + $0xc] sm:$0xf]  ;;  %1851 = vst.msk [vmem:[#allocation2 + $0x28] sm:$0xf] %vm332_vm0, %v1843_v61  ;;  %v1522_v3 = vshll.u32 %v9227_v56, 16  ;;  %v1640_v12 = vrot.slane %v1639_v6, 4  ;;  %v1889_v13 = vor.u32 %v1888_v50, %v1885_v9  ;;  %v1898_v55 = vor.u32 %v1897_v42, %v1894_v53  ;;  %7749 = vmatprep.subr.bf16.mxu1 %v8267_v44 }
 0x1a5   : > { %v2209_v62 = vsel %vm8966_vm4, %v2158_v21, %v2208_v16  ;;  %v1478_v63 = vpack.c.bf16 %v1470_v45, %v1470_v45  ;;  %1590 = vrot.lane.b32.xlu0 %v1575_v52, %s8598_s24  ;;  %v1455_v2 = vadd.f32 %v1454_v36, %v1390_v49  ;;  %v1576_v7 = vld [vmem:[#allocation3 + $0x8] sm:$0xf]  ;;  %v1987_v10 = vld [vmem:[#allocation3 + $0xc] sm:$0xf]  ;;  %v1751_v14 = vshrl.u32 %v1730_v59, 16 }
 0x1a6   : > { %2210 = vst [vmem:[#allocation2 + $0x20] sm:$0xf] %v2209_v62  ;;  %v1758_v22 = vshrl.u32 %v1731_v32, 16  ;;  %v1517_v29 = vor.u32 %v1515_v33, %v1514_v39  ;;  %v1524_v17 = vor.u32 %v1522_v3, %v1521_v38  ;;  %v1649_v56 = vrot.slane %v1648_v4, 4  ;;  %v1559_v26 = vld [vmem:[#allocation2 + $0x24] sm:$0xf] }
 0x1a7   : > { %1486 = vst.msk [vmem:[#allocation3 + $0x10] sm:$0xf] %vm332_vm0, %v1478_v63  ;;  %v1471_v11 = vmax.f32 %v1455_v2, 0.0  ;;  %1592 = vrot.lane.b32.xlu1 %v1576_v7, %s8598_s24  ;;  %v2007_v24 = vshrl.u32 %v1987_v10, 16  ;;  %v1562_v27 = vld [vmem:[#allocation2 + $0x30] sm:$0xf] }
 0x1a8   : > { %v8234_v15 = vld [vmem:[#allocation2 + $0x8] ss:$12 sps:$4 sm:$0xff]   ;;  %v1619_v31 = vld [vmem:[#allocation3 + $0xc] sm:$0xf]  ;;  %v1560_v43 = vsel %vm8890_vm2, %v1517_v29, %v1559_v26  ;;  %v1563_v48 = vsel %vm8890_vm2, %v1524_v17, %v1562_v27  ;;  %v1890_v5 = vrot.slane %v1889_v13, 4  ;;  %v1753_v35 = vrot.slane %v1751_v14, 7 }
 0x1a9   : > { %v1479_v19 = vpack.c.bf16 %v1471_v11, %v1471_v11  ;;  %1688 = vrot.lane.b32.xlu0 %v1640_v12, %s8599_s27  ;;  %8126 = vmatprep.mubr.msk.bf16.mxu0 %vm1323_vm5, %v8234_v15  ;;  %1561 = vst [vmem:[#allocation2 + $0x24] sm:$0xf] %v1560_v43  ;;  %1564 = vst [vmem:[#allocation2 + $0x30] sm:$0xf] %v1563_v48  ;;  %v1899_v40 = vrot.slane %v1898_v55, 4  ;;  %v1754_v20 = vshll.u32 %v1730_v59, 16 }
 0x1aa   : > { %v1760_v37 = vrot.slane %v1758_v22, 7  ;;  %v1761_v41 = vshll.u32 %v1731_v32, 16  ;;  %v2009_v16 = vrot.slane %v2007_v24, 7  ;;  %v1651_v8 = vshrl.u32 %v1619_v31, 16  ;;  %v2211_v7 = vld [vmem:[#allocation2 + $0x2c] sm:$0xf] }
 0x1ab   : > { %1487 = vst.msk [vmem:[#allocation3 + $0x14] sm:$0xf] %vm332_vm0, %v1479_v19  ;;  %1690 = vrot.lane.b32.xlu1 %v1649_v56, %s8599_s27  ;;  %v1654_v34 = vshll.u32 %v1619_v31, 16  ;;  %v1756_v52 = vor.u32 %v1754_v20, %v1753_v35  ;;  %v2010_v9 = vshll.u32 %v1987_v10, 16  ;;  %v2085_v43 = vld [vmem:[#allocation3 + $0xc] sm:$0xf] }
 0x1ac   : > { %v1763_v6 = vor.u32 %v1761_v41, %v1760_v37  ;;  %v9280_v51 = vrot.slane %v1651_v8, 4 }
 0x1ad   : > { %1940 = vrot.lane.b32.xlu0 %v1890_v5, %s8598_s24  ;;  %v2012_v59 = vor.u32 %v2010_v9, %v2009_v16  ;;  %v9284_v63 = vrot.slane %v1654_v34, 5 }
 0x1ae   : > { %v9275_v1 = vld [vmem:[#allocation3 + $0x10] sm:$0xf] }
 0x1af   : > { %v2128_v47 = vld [vmem:[#allocation3 + $0x10] sm:$0xf]  ;;  %1942 = vrot.lane.b32.xlu1 %v1899_v40, %s8598_s24  ;;  %v7691_v36 = vpop.f32.mrf.mxu0  ;;  %v1526_v45 = vshrl.u32 %v9275_v1, 16  ;;  %v1529_v2 = vshll.u32 %v9275_v1, 16  ;;  %v2214_v1 = vld [vmem:[#allocation2 + $0x38] sm:$0xf] }
 0x1b0   : > { %v1988_v39 = vld [vmem:[#allocation3 + $0x10] sm:$0xf]  ;;  %v2160_v38 = vshrl.u32 %v2128_v47, 16  ;;  %v2163_v60 = vshll.u32 %v2128_v47, 16 }
 0x1b1   : > { %v2014_v23 = vshrl.u32 %v1988_v39, 16  ;;  %v2017_v21 = vshll.u32 %v1988_v39, 16  ;;  %1796 = vrot.lane.b32.xlu0 %v1756_v52, %s8600_s29  ;;  %v1620_v0 = vld [vmem:[#allocation3 + $0x10] sm:$0xf]  ;;  %v7692_v61 = vpop.f32.mrf.mxu0  ;;  %v1528_v15 = vrot.slane %v1526_v45, 7 }
 0x1b2   : > { %v2162_v49 = vrot.slane %v2160_v38, 4  ;;  %v2165_v50 = vrot.slane %v2163_v60, 5  ;;  %v9282_v53 = vld [vmem:[#allocation3 + $0x14] sm:$0xf]  ;;  %v1660_v33 = vshrl.u32 %v1620_v0, 16  ;;  %v7693_v12 = vadd.f32 %v7692_v61, %v7691_v36 }
 0x1b3   : > { %v2129_v42 = vld [vmem:[#allocation3 + $0x14] sm:$0xf]  ;;  %v2016_v62 = vrot.slane %v2014_v23, 7  ;;  %v1533_v32 = vshrl.u32 %v9282_v53, 16  ;;  %1798 = vrot.lane.b32.xlu1 %v1763_v6, %s8600_s29  ;;  %v1860_v3 = vld [vmem:[#allocation3 + $0x10] sm:$0xf]  ;;  %v7694_v14 = vpop.f32.mrf.mxu0 }
 0x1b4   : > { %v2166_v4 = vor.u32 %v2165_v50, %v2162_v49  ;;  %v2169_v10 = vshrl.u32 %v2129_v42, 16  ;;  %v2172_v11 = vshll.u32 %v2129_v42, 16  ;;  %v1536_v22 = vshll.u32 %v9282_v53, 16  ;;  %v1861_v27 = vld [vmem:[#allocation3 + $0x14] sm:$0xf] }
 0x1b5   : > { %v2019_v13 = vor.u32 %v2017_v21, %v2016_v62  ;;  %2045 = vrot.lane.b32.xlu0 %v2012_v59, %s8599_s27  ;;  %v1663_v29 = vshll.u32 %v1620_v0, 16  ;;  %v1395_v56 = vadd.f32 %v7693_v12, %v9158_v25  ;;  %v7695_v24 = vpop.f32.mrf.mxu0  ;;  %v1901_v26 = vshrl.u32 %v1860_v3, 16  ;;  %v2086_v48 = vld [vmem:[#allocation3 + $0x10] sm:$0xf]  ;;  %v1845_v34 = vld [vmem:[#allocation3 + $0x14] sm:$0xf] }
 0x1b6   : > { %v2167_v55 = vrot.slane %v2166_v4, 4  ;;  %v2171_v17 = vrot.slane %v2169_v10, 4  ;;  %v2174_v19 = vrot.slane %v2172_v11, 5  ;;  %v7696_v5 = vadd.f32 %v7695_v24, %v7694_v14  ;;  %v1844_v8 = vld [vmem:[#allocation3 + $0x10] sm:$0xf] }
 0x1b7   : > { %2047 = vrot.lane.b32.xlu1 %v2019_v13, %s8599_s27  ;;  %v1662_v35 = vrot.slane %v1660_v33, 4  ;;  %v1665_v40 = vrot.slane %v1663_v29, 5  ;;  %v1535_v20 = vrot.slane %v1533_v32, 7  ;;  %v1460_v41 = vadd.f32 %v9211_v30, %v1395_v56  ;;  %1852 = vst.msk [vmem:[#allocation2 + $0x34] sm:$0xf] %vm332_vm0, %v1844_v8 }
 0x1b8   : > { %v2212_v31 = vsel %vm8966_vm4, %v2167_v55, %v2211_v7  ;;  %v2175_v37 = vor.u32 %v2174_v19, %v2171_v17  ;;  %v1904_v16 = vshll.u32 %v1860_v3, 16  ;;  %v1398_v47 = vadd.f32 %v7696_v5, %v9158_v25  ;;  %1853 = vst.msk [vmem:[#allocation2 + $0x40] sm:$0xf] %vm332_vm0, %v1845_v34  ;;  %v1732_v9 = vld [vmem:[#allocation3 + $0x10] sm:$0xf] }
 0x1b9   : > { %2213 = vst [vmem:[#allocation2 + $0x2c] sm:$0xf] %v2212_v31  ;;  %2101 = vrot.lane.b32.xlu0 %v2085_v43, %s8600_s29  ;;  %v1903_v39 = vrot.slane %v1901_v26, 4  ;;  %v1910_v38 = vshrl.u32 %v1861_v27, 16  ;;  %v1913_v60 = vshll.u32 %v1861_v27, 16  ;;  %v1472_v36 = vmax.f32 %v1460_v41, 0.0 }
 0x1ba   : > { %v2176_v52 = vrot.slane %v2175_v37, 4  ;;  %v1657_v30 = vor.u32 %v9284_v63, %v9280_v51  ;;  %v1906_v6 = vrot.slane %v1904_v16, 5  ;;  %v1463_v23 = vadd.f32 %v9237_v18, %v1398_v47  ;;  %v1577_v53 = vld [vmem:[#allocation3 + $0xc] sm:$0xf]  ;;  %v1578_v42 = vld [vmem:[#allocation3 + $0x10] sm:$0xf] }
 0x1bb   : > { %2103 = vrot.lane.b32.xlu1 %v2086_v48, %s8600_s29  ;;  %v1666_v21 = vor.u32 %v1665_v40, %v1662_v35  ;;  %v1912_v25 = vrot.slane %v1910_v38, 4  ;;  %v1915_v45 = vrot.slane %v1913_v60, 5  ;;  %v1531_v49 = vor.u32 %v1529_v2, %v1528_v15  ;;  %v1733_v59 = vld [vmem:[#allocation3 + $0x14] sm:$0xf]  ;;  %v1565_v32 = vld [vmem:[#allocation2 + $0x3c] sm:$0xf] }
 0x1bc   : > { %v2215_v50 = vsel %vm8966_vm4, %v2176_v52, %v2214_v1  ;;  %v1480_v0 = vpack.c.bf16 %v1472_v36, %v1472_v36  ;;  %v1538_v61 = vor.u32 %v1536_v22, %v1535_v20  ;;  %v1473_v51 = vmax.f32 %v1463_v23, 0.0  ;;  %v1989_v4 = vld [vmem:[#allocation3 + $0x14] sm:$0xf]  ;;  %v1568_v13 = vld [vmem:[#allocation2 + $0x48] sm:$0xf] }
 0x1bd   : > { %2216 = vst [vmem:[#allocation2 + $0x38] sm:$0xf] %v2215_v50  ;;  %1594 = vrot.lane.b32.xlu0 %v1577_v53, %s8598_s24  ;;  %v1907_v62 = vor.u32 %v1906_v6, %v1903_v39  ;;  %v1765_v63 = vshrl.u32 %v1732_v9, 16  ;;  %v1658_v18 = vrot.slane %v1657_v30, 4  ;;  %v1667_v33 = vrot.slane %v1666_v21, 4 }
 0x1be   : > { %1488 = vst.msk [vmem:[#allocation3 + $0x18] sm:$0xf] %vm332_vm0, %v1480_v0  ;;  %v1481_v2 = vpack.c.bf16 %v1473_v51, %v1473_v51  ;;  %v1916_v7 = vor.u32 %v1915_v45, %v1912_v25  ;;  %v1772_v10 = vshrl.u32 %v1733_v59, 16  ;;  %v2021_v11 = vshrl.u32 %v1989_v4, 16  ;;  %v1621_v5 = vld [vmem:[#allocation3 + $0x14] sm:$0xf] }
 0x1bf   : > { %1596 = vrot.lane.b32.xlu1 %v1578_v42, %s8598_s24  ;;  %v1566_v12 = vsel %vm8890_vm2, %v1531_v49, %v1565_v32  ;;  %v1908_v14 = vrot.slane %v1907_v62, 4  ;;  %v1767_v15 = vrot.slane %v1765_v63, 7  ;;  %v1768_v55 = vshll.u32 %v1732_v9, 16  ;;  %v2217_v49 = vld [vmem:[#allocation2 + $0x44] sm:$0xf] }
 0x1c0   : > { %v8237_v3 = vld [vmem:[#allocation2 + $0x20] ss:$12 sps:$4 sm:$0xff]   ;;  %1489 = vst.msk [vmem:[#allocation3 + $0x1c] sm:$0xf] %vm332_vm0, %v1481_v2  ;;  %1567 = vst [vmem:[#allocation2 + $0x3c] sm:$0xf] %v1566_v12  ;;  %v1569_v22 = vsel %vm8890_vm2, %v1538_v61, %v1568_v13 }
 0x1c1   : > { %1692 = vrot.lane.b32.xlu0 %v1658_v18, %s8599_s27  ;;  %8127 = vmatmul.mubr.msk.bf16.vlgmr.msra.gmra.mxu0 %vm1323_vm5, %v8237_v3  ;;  %1570 = vst [vmem:[#allocation2 + $0x48] sm:$0xf] %v1569_v22  ;;  %v1917_v29 = vrot.slane %v1916_v7, 4  ;;  %v1774_v17 = vrot.slane %v1772_v10, 7  ;;  %v1775_v19 = vshll.u32 %v1733_v59, 16  ;;  %v2023_v56 = vrot.slane %v2021_v11, 7 }
 0x1c2   : > { %v2024_v24 = vshll.u32 %v1989_v4, 16  ;;  %v1770_v27 = vor.u32 %v1768_v55, %v1767_v15  ;;  %v1669_v6 = vshrl.u32 %v1621_v5, 16  ;;  %v1672_v45 = vshll.u32 %v1621_v5, 16  ;;  %v2220_v51 = vld [vmem:[#allocation2 + $0x50] sm:$0xf] }
 0x1c3   : > { %1694 = vrot.lane.b32.xlu1 %v1667_v33, %s8599_s27  ;;  %v1777_v40 = vor.u32 %v1775_v19, %v1774_v17  ;;  %v2087_v4 = vld [vmem:[#allocation3 + $0x14] sm:$0xf] }
 0x1c4   : > { %v2026_v1 = vor.u32 %v2024_v24, %v2023_v56  ;;  %v1671_v33 = vrot.slane %v1669_v6, 4  ;;  %v1674_v3 = vrot.slane %v1672_v45, 5  ;;  %v1579_v55 = vld [vmem:[#allocation3 + $0x14] sm:$0xf]  ;;  %v1960_v45 = vld [vmem:[#allocation2 + $0x4] sm:$0xf] }
 0x1c5   : > { %v2130_v26 = vld [vmem:[#allocation3 + $0x18] sm:$0xf]  ;;  %1944 = vrot.lane.b32.xlu0 %v1908_v14, %s8598_s24  ;;  %v1571_v19 = vld [vmem:[#allocation2 + $0x54] sm:$0xf] }
 0x1c6   : > { %v1990_v31 = vld [vmem:[#allocation3 + $0x18] sm:$0xf]  ;;  %v2178_v43 = vshrl.u32 %v2130_v26, 16  ;;  %v2181_v48 = vshll.u32 %v2130_v26, 16  ;;  %v1675_v17 = vor.u32 %v1674_v3, %v1671_v33 }
 0x1c7   : > { %v1496_v35 = vld [vmem:[#allocation3 + $0x18] sm:$0xf]  ;;  %1946 = vrot.lane.b32.xlu1 %v1917_v29, %s8598_s24  ;;  %v2028_v20 = vshrl.u32 %v1990_v31, 16  ;;  %v2031_v37 = vshll.u32 %v1990_v31, 16  ;;  %v2131_v34 = vld [vmem:[#allocation3 + $0x1c] sm:$0xf] }
 0x1c8   : > { %v1862_v41 = vld [vmem:[#allocation3 + $0x18] sm:$0xf]  ;;  %v2180_v16 = vrot.slane %v2178_v43, 4  ;;  %v2183_v8 = vrot.slane %v2181_v48, 5  ;;  %v2187_v39 = vshrl.u32 %v2131_v34, 16  ;;  %v2190_v38 = vshll.u32 %v2131_v34, 16 }
 0x1c9   : > { %v1919_v47 = vshrl.u32 %v1862_v41, 16  ;;  %1800 = vrot.lane.b32.xlu0 %v1770_v27, %s8600_s29  ;;  %v2030_v60 = vrot.slane %v2028_v20, 7  ;;  %v1922_v52 = vshll.u32 %v1862_v41, 16  ;;  %v1540_v36 = vshrl.u32 %v1496_v35, 16  ;;  %v1622_v9 = vld [vmem:[#allocation3 + $0x18] sm:$0xf] }
 0x1ca   : > { %v2184_v30 = vor.u32 %v2183_v8, %v2180_v16  ;;  %v2189_v23 = vrot.slane %v2187_v39, 4  ;;  %v2192_v21 = vrot.slane %v2190_v38, 5  ;;  %v1678_v59 = vshrl.u32 %v1622_v9, 16  ;;  %v1846_v32 = vld [vmem:[#allocation3 + $0x18] sm:$0xf] }
 0x1cb   : > { %1802 = vrot.lane.b32.xlu1 %v1777_v40, %s8600_s29  ;;  %v2033_v25 = vor.u32 %v2031_v37, %v2030_v60  ;;  %v1921_v0 = vrot.slane %v1919_v47, 4  ;;  %v1924_v42 = vrot.slane %v1922_v52, 5  ;;  %v1681_v61 = vshll.u32 %v1622_v9, 16  ;;  %1854 = vst.msk [vmem:[#allocation2 + $0x4c] sm:$0xf] %vm332_vm0, %v1846_v32 }
 0x1cc   : > { %v2185_v50 = vrot.slane %v2184_v30, 4  ;;  %v2193_v53 = vor.u32 %v2192_v21, %v2189_v23  ;;  %v1542_v62 = vrot.slane %v1540_v36, 7  ;;  %v1543_v63 = vshll.u32 %v1496_v35, 16  ;;  %v1847_v7 = vld [vmem:[#allocation3 + $0x1c] sm:$0xf] }
 0x1cd   : > { %2049 = vrot.lane.b32.xlu0 %v2026_v1, %s8599_s27  ;;  %v2088_v10 = vld [vmem:[#allocation3 + $0x18] sm:$0xf]  ;;  %1855 = vst.msk [vmem:[#allocation2 + $0x58] sm:$0xf] %vm332_vm0, %v1847_v7  ;;  %v1925_v11 = vor.u32 %v1924_v42, %v1921_v0  ;;  %v1680_v12 = vrot.slane %v1678_v59, 4  ;;  %v1683_v13 = vrot.slane %v1681_v61, 5  ;;  %vm9462_vm0 = vmand %vm2642_vm14, %vm2643_vm15 }
 0x1ce   : > { %v2218_v18 = vsel %vm8966_vm4, %v2185_v50, %v2217_v49  ;;  %v2194_v2 = vrot.slane %v2193_v53, 4  ;;  %v1991_v14 = vld [vmem:[#allocation3 + $0x1c] sm:$0xf]  ;;  %v1545_v22 = vor.u32 %v1543_v63, %v1542_v62  ;;  %v1580_v29 = vld [vmem:[#allocation3 + $0x18] sm:$0xf]  ;;  %v1676_v5 = vrot.slane %v1675_v17, 4 }
 0x1cf   : > { %2051 = vrot.lane.b32.xlu1 %v2033_v25, %s8599_s27  ;;  %2219 = vst [vmem:[#allocation2 + $0x44] sm:$0xf] %v2218_v18  ;;  %v2035_v56 = vshrl.u32 %v1991_v14, 16  ;;  %v1734_v24 = vld [vmem:[#allocation3 + $0x18] sm:$0xf]  ;;  %v1926_v31 = vrot.slane %v1925_v11, 4  ;;  %v1684_v43 = vor.u32 %v1683_v13, %v1680_v12 }
 0x1d0   : > { %v2221_v15 = vsel %vm8966_vm4, %v2194_v2, %v2220_v51  ;;  %v1863_v26 = vld [vmem:[#allocation3 + $0x1c] sm:$0xf]  ;;  %v1572_v27 = vsel %vm8890_vm2, %v1545_v22, %v1571_v19  ;;  %v1779_v35 = vshrl.u32 %v1734_v24, 16  ;;  %v2038_v41 = vshll.u32 %v1991_v14, 16  ;;  %v1963_v42 = vld [vmem:[#allocation2 + $0x10] sm:$0xf]  ;;  %vm9699_vm2 = vmand %vm2672_vm1, %vm2643_vm15 }
 0x1d1   : > { %2105 = vrot.lane.b32.xlu0 %v2087_v4, %s8600_s29  ;;  %2222 = vst [vmem:[#allocation2 + $0x50] sm:$0xf] %v2221_v15  ;;  %1573 = vst [vmem:[#allocation2 + $0x54] sm:$0xf] %v1572_v27  ;;  %v1735_v48 = vld [vmem:[#allocation3 + $0x1c] sm:$0xf] }
 0x1d2   : > { %v1928_v40 = vshrl.u32 %v1863_v26, 16  ;;  %v1931_v20 = vshll.u32 %v1863_v26, 16  ;;  %v2037_v37 = vrot.slane %v2035_v56, 7  ;;  %v1685_v57 = vrot.slane %v1684_v43, 4  ;;  %v2089_v23 = vld [vmem:[#allocation3 + $0x1c] sm:$0xf] }
 0x1d3   : > { %2107 = vrot.lane.b32.xlu1 %v2088_v10, %s8600_s29  ;;  %v1786_v16 = vshrl.u32 %v1735_v48, 16  ;;  %v1781_v34 = vrot.slane %v1779_v35, 7  ;;  %v1782_v1 = vshll.u32 %v1734_v24, 16  ;;  %v1789_v52 = vshll.u32 %v1735_v48, 16  ;;  %v1816_v2 = vld [vmem:[#allocation2] sm:$0xf] }
 0x1d4   : > { %v1930_v47 = vrot.slane %v1928_v40, 4  ;;  %v1933_v39 = vrot.slane %v1931_v20, 5  ;;  %v2040_v38 = vor.u32 %v2038_v41, %v2037_v37  ;;  %v1966_v56 = vld [vmem:[#allocation2 + $0x1c] sm:$0xf]  ;;  %v1969_v43 = vld [vmem:[#allocation2 + $0x28] sm:$0xf] }
 0x1d5   : > { %1598 = vrot.lane.b32.xlu0 %v1579_v55, %s8598_s24  ;;  %v1788_v60 = vrot.slane %v1786_v16, 7  ;;  %v1784_v36 = vor.u32 %v1782_v1, %v1781_v34  ;;  %vm7118_vm4 = vcmask 24576  }
 0x1d6   : > { %v8238_v58 = vld [vmem:[#allocation2 + $0x38] ss:$12 sps:$4 sm:$0xff]   ;;  %v1934_v30 = vor.u32 %v1933_v39, %v1930_v47 }
 0x1d7   : > { %1600 = vrot.lane.b32.xlu1 %v1580_v29, %s8598_s24  ;;  %8130 = vmatprep.mubr.msk.bf16.mxu0 %vm1323_vm5, %v8238_v58  ;;  %v1791_v6 = vor.u32 %v1789_v52, %v1788_v60 }
 0x1d8   : > { %v8239_v8 = vld [vmem:[#allocation2 + $0x50] ss:$12 sps:$4 sm:$0xff]   ;;  %v1935_v9 = vrot.slane %v1934_v30, 4 }
 0x1d9   : > { %1948 = vrot.lane.b32.xlu0 %v1926_v31, %s8598_s24  ;;  %8131 = vmatmul.mubr.msk.bf16.gmra.mxu0 %vm1323_vm5, %v8239_v8 }
 0x1db   : > { %1696 = vrot.lane.b32.xlu1 %v1676_v5, %s8599_s27 }
 0x1dd   : > { %1698 = vrot.lane.b32.xlu0 %v1685_v57, %s8599_s27 }
 0x1df   : > { %2053 = vrot.lane.b32.xlu1 %v2040_v38, %s8599_s27 }
 0x1e1   : > { %1804 = vrot.lane.b32.xlu0 %v1784_v36, %s8600_s29 }
 0x1e3   : > { %1806 = vrot.lane.b32.xlu1 %v1791_v6, %s8600_s29 }
 0x1e5   : > { %1950 = vrot.lane.b32.xlu0 %v1935_v9, %s8598_s24 }
 0x1e7   : > { %2109 = vrot.lane.b32.xlu1 %v2089_v23, %s8600_s29  ;;  %s7645_s29 = sshll.u32 %s8676_s13, 4  ;;  %s8535_s13 = scalar_lea.vmem %s10544_s14, 16 }
 0x1e8   : > { %s10542_s21 = scalar_lea.hbm %s10592_s9, %s7645_s29  ;;  %p8536_p11 = scmp.ne.s32.totalorder %s10544_s14, %s8535_s13 }
 0x1e9   : > { %p8543_p1 = scmp.lt.s32.totalorder %s8541_s26, %s8535_s13 }
 0x1ea   : > { %p8537_p12 = pnand %p8536_p11, %p8693_p5 }
 0x1eb   : > { %p8544_p2 = por %p8543_p1, %p8542_p0 }
 0x1ec   : > { %p8538_p13 = pneg %p8537_p12 }
 0x1ee   : > { %p8545_p3 = pnand %p8544_p2, %p8538_p13 }
 0x1f7   : > { %v1589_v21 = vpop.permute.xlu0 %1588 }
 0x1f8   : > { %1609 = vst.msk [vmem:[#allocation2 + $0xc] sm:$0xf] %vm471_vm6, %v1589_v21 }
 0x1ff   : > { %v1707_v0 = vld [vmem:[#allocation2 + $0xc] sm:$0xf] }
 0x200   : > { %v1937_v25 = vpop.permute.xlu1 %1936 }
 0x201   : > { %v1961_v49 = vsel %vm9055_vm9, %v1937_v25, %v1960_v45 }
 0x202   : > { %1962 = vst [vmem:[#allocation2 + $0x4] sm:$0xf] %v1961_v49  ;;  %v1972_v49 = vld [vmem:[#allocation2 + $0x34] sm:$0xf] }
 0x204   : > { %v1687_v50 = vpop.permute.xlu1 %1686 }
 0x205   : > { %v1708_v53 = vsel %vm9062_vm10, %v1687_v50, %v1707_v0 }
 0x206   : > { %1709 = vst [vmem:[#allocation2 + $0xc] sm:$0xf] %v1708_v53 }
 0x207   : > { %v1939_v59 = vpop.permute.xlu0 %1938 }
 0x208   : > { %v1964_v61 = vsel %vm9055_vm9, %v1939_v59, %v1963_v42  ;;  %v1795_v4 = vpop.permute.xlu1 %1794  ;;  %v1975_v59 = vld [vmem:[#allocation2 + $0x40] sm:$0xf] }
 0x209   : > { %1965 = vst [vmem:[#allocation2 + $0x10] sm:$0xf] %v1964_v61  ;;  %v2062_v51 = vld [vmem:[#allocation2 + $0x4] sm:$0xf] }
 0x20b   : > { %v2042_v62 = vpop.permute.xlu0 %2041 }
 0x20c   : > { %v2063_v63 = vsel %vm9074_vm12, %v2042_v62, %v2062_v51 }
 0x20d   : > { %v1819_v18 = vld [vmem:[#allocation2 + $0xc] sm:$0xf]  ;;  %2064 = vst [vmem:[#allocation2 + $0x4] sm:$0xf] %v2063_v63 }
 0x20e   : > { %v1820_v32 = vsel %vm9068_vm11, %v1795_v4, %v1819_v18 }
 0x20f   : > { %1821 = vst [vmem:[#allocation2 + $0xc] sm:$0xf] %v1820_v32  ;;  %v1793_v33 = vpop.permute.xlu0 %1792 }
 0x210   : > { %v1817_v3 = vsel %vm9068_vm11, %v1793_v33, %v1816_v2  ;;  %v2065_v10 = vld [vmem:[#allocation2 + $0x10] sm:$0xf] }
 0x211   : > { %1818 = vst [vmem:[#allocation2] sm:$0xf] %v1817_v3  ;;  %v2044_v7 = vpop.permute.xlu1 %2043 }
 0x212   : > { %v2066_v11 = vsel %vm9074_vm12, %v2044_v7, %v2065_v10 }
 0x213   : > { %2067 = vst [vmem:[#allocation2 + $0x10] sm:$0xf] %v2066_v11  ;;  %v2098_v12 = vpop.permute.xlu0 %2097 }
 0x214   : > { %2118 = vst.msk [vmem:[#allocation2 + $0x4] sm:$0xf] %vm682_vm8, %v2098_v12 }
 0x215   : > { %v2100_v13 = vpop.permute.xlu1 %2099 }
 0x216   : > { %2119 = vst.msk [vmem:[#allocation2 + $0x10] sm:$0xf] %vm682_vm8, %v2100_v13 }
 0x217   : > { %v1591_v14 = vpop.permute.xlu0 %1590 }
 0x218   : > { %1610 = vst.msk [vmem:[#allocation2 + $0x18] sm:$0xf] %vm471_vm6, %v1591_v14  ;;  %v8256_v29 = vld [vmem:[#allocation2] ss:$12 sps:$4 sm:$0xff]  }
 0x219   : > { %v1593_v15 = vpop.permute.xlu1 %1592 }
 0x21a   : > { %1611 = vst.msk [vmem:[#allocation2 + $0x24] sm:$0xf] %vm471_vm6, %v1593_v15 }
 0x21b   : > { %v1689_v55 = vpop.permute.xlu0 %1688 }
 0x21d   : > { %v1691_v22 = vpop.permute.xlu1 %1690  ;;  %v8258_v17 = vld [vmem:[#allocation2 + $0x4] ss:$12 sps:$4 sm:$0xff]  }
 0x21e   : > { %2494 = vmatprep.mubr.bf16.mxu1 %v8258_v17 }
 0x21f   : > { %v1710_v19 = vld [vmem:[#allocation2 + $0x18] sm:$0xf]  ;;  %v1941_v24 = vpop.permute.xlu0 %1940  ;;  %2495 = vmatmul.mubr.bf16.vlgmr.msra.gmra.mxu1 %v8256_v29  ;;  %v1978_v29 = vld [vmem:[#allocation2 + $0x4c] sm:$0xf] }
 0x220   : > { %v1711_v26 = vsel %vm9062_vm10, %v1689_v55, %v1710_v19  ;;  %v1967_v27 = vsel %vm9055_vm9, %v1941_v24, %v1966_v56 }
 0x221   : > { %1712 = vst [vmem:[#allocation2 + $0x18] sm:$0xf] %v1711_v26  ;;  %v1713_v31 = vld [vmem:[#allocation2 + $0x24] sm:$0xf]  ;;  %1968 = vst [vmem:[#allocation2 + $0x1c] sm:$0xf] %v1967_v27  ;;  %v1943_v58 = vpop.permute.xlu1 %1942 }
 0x222   : > { %v1714_v48 = vsel %vm9062_vm10, %v1691_v22, %v1713_v31  ;;  %v1970_v5 = vsel %vm9055_vm9, %v1943_v58, %v1969_v43 }
 0x223   : > { %1715 = vst [vmem:[#allocation2 + $0x24] sm:$0xf] %v1714_v48  ;;  %1971 = vst [vmem:[#allocation2 + $0x28] sm:$0xf] %v1970_v5  ;;  %v1797_v35 = vpop.permute.xlu0 %1796 }
 0x225   : > { %v1799_v40 = vpop.permute.xlu1 %1798 }
 0x227   : > { %v2046_v20 = vpop.permute.xlu0 %2045 }
 0x228   : > { %v1822_v37 = vld [vmem:[#allocation2 + $0x18] sm:$0xf]  ;;  %v2068_v41 = vld [vmem:[#allocation2 + $0x1c] sm:$0xf] }
 0x229   : > { %v1823_v57 = vsel %vm9068_vm11, %v1797_v35, %v1822_v37  ;;  %v2069_v16 = vsel %vm9074_vm12, %v2046_v20, %v2068_v41  ;;  %v2048_v8 = vpop.permute.xlu1 %2047  ;;  %v1981_v41 = vld [vmem:[#allocation2 + $0x58] sm:$0xf] }
 0x22a   : > { %1824 = vst [vmem:[#allocation2 + $0x18] sm:$0xf] %v1823_v57  ;;  %v1825_v34 = vld [vmem:[#allocation2 + $0x24] sm:$0xf]  ;;  %2070 = vst [vmem:[#allocation2 + $0x1c] sm:$0xf] %v2069_v16 }
 0x22b   : > { %v2071_v1 = vld [vmem:[#allocation2 + $0x28] sm:$0xf]  ;;  %v1826_v47 = vsel %vm9068_vm11, %v1799_v40, %v1825_v34  ;;  %v2102_v38 = vpop.permute.xlu0 %2101 }
 0x22c   : > { %v2072_v39 = vsel %vm9074_vm12, %v2048_v8, %v2071_v1  ;;  %1827 = vst [vmem:[#allocation2 + $0x24] sm:$0xf] %v1826_v47  ;;  %2120 = vst.msk [vmem:[#allocation2 + $0x1c] sm:$0xf] %vm682_vm8, %v2102_v38  ;;  %v8268_v38 = vld [vmem:[%s10588_s5 + $0x38] sm:$0xff]  }
 0x22d   : > { %2073 = vst [vmem:[#allocation2 + $0x28] sm:$0xf] %v2072_v39  ;;  %v2104_v60 = vpop.permute.xlu1 %2103  ;;  %7750 = vmatpush3.bf16.msra.mxu1 %v8268_v38 }
 0x22e   : > { %2121 = vst.msk [vmem:[#allocation2 + $0x28] sm:$0xf] %vm682_vm8, %v2104_v60  ;;  %v8269_v60 = vld [vmem:[%s10588_s5 + $0xf8] sm:$0xff]  }
 0x22f   : > { %v1595_v52 = vpop.permute.xlu0 %1594  ;;  %7771 = vmatprep.subr.bf16.mxu0 %v8269_v60 }
 0x230   : > { %1612 = vst.msk [vmem:[#allocation2 + $0x30] sm:$0xf] %vm471_vm6, %v1595_v52 }
 0x231   : > { %v1597_v36 = vpop.permute.xlu1 %1596 }
 0x232   : > { %1613 = vst.msk [vmem:[#allocation2 + $0x3c] sm:$0xf] %vm471_vm6, %v1597_v36 }
 0x233   : > { %v1693_v30 = vpop.permute.xlu0 %1692  ;;  %v2227_v9 = vld [vmem:[#allocation2 + $0x18] sm:$0xff] }
 0x235   : > { %v1695_v6 = vpop.permute.xlu1 %1694  ;;  %v2229_v23 = vld [vmem:[#allocation2 + $0x24] sm:$0xff] }
 0x236   : > { %v8259_v21 = vld [vmem:[#allocation2 + $0x1c] ss:$12 sps:$4 sm:$0xff]   ;;  %v7254_v25 = vcombine.low %v2227_v9, %v2229_v23 }
 0x237   : > { %v1716_v45 = vld [vmem:[#allocation2 + $0x30] sm:$0xf]  ;;  %v1945_v50 = vpop.permute.xlu0 %1944  ;;  %2502 = vmatprep.mubr.bf16.mxu1 %v8259_v21 }
 0x238   : > { %v1717_v0 = vsel %vm9062_vm10, %v1693_v30, %v1716_v45  ;;  %v1973_v53 = vsel %vm9055_vm9, %v1945_v50, %v1972_v49  ;;  %2503 = vmatmul.mubr.bf16.gmra.mxu1 %v7254_v25  ;;  %v9433_v30 = vld [vmem:[%s10587_s4] ss:$0 sm:$0xff] }
 0x239   : > { %1718 = vst [vmem:[#allocation2 + $0x30] sm:$0xf] %v1717_v0  ;;  %v1719_v42 = vld [vmem:[#allocation2 + $0x3c] sm:$0xf]  ;;  %1974 = vst [vmem:[#allocation2 + $0x34] sm:$0xf] %v1973_v53  ;;  %v1947_v61 = vpop.permute.xlu1 %1946 }
 0x23a   : > { %v1720_v51 = vsel %vm9062_vm10, %v1695_v6, %v1719_v42  ;;  %v1976_v62 = vsel %vm9055_vm9, %v1947_v61, %v1975_v59  ;;  %v8601_v42 = vmov 1966171168   ;;  %v2660_v61 = vlaneseq }
 0x23b   : > { %1721 = vst [vmem:[#allocation2 + $0x3c] sm:$0xf] %v1720_v51  ;;  %1977 = vst [vmem:[#allocation2 + $0x40] sm:$0xf] %v1976_v62  ;;  %v1801_v63 = vpop.permute.xlu0 %1800  ;;  %v2658_v59 = vunpack.c.l.s4 %v8601_v42 }
 0x23d   : > { %v1803_v4 = vpop.permute.xlu1 %1802 }
 0x23f   : > { %v2050_v18 = vpop.permute.xlu0 %2049 }
 0x240   : > { %v1828_v32 = vld [vmem:[#allocation2 + $0x30] sm:$0xf]  ;;  %v2074_v2 = vld [vmem:[#allocation2 + $0x34] sm:$0xf] }
 0x241   : > { %v1829_v33 = vsel %vm9068_vm11, %v1801_v63, %v1828_v32  ;;  %v2075_v3 = vsel %vm9074_vm12, %v2050_v18, %v2074_v2  ;;  %v2052_v7 = vpop.permute.xlu1 %2051  ;;  %v2659_v18 = vunpack.c.0.s8 %v2658_v59  ;;  %v2661_v32 = vshrl.u32 %v2660_v61, 7  ;;  %v8270_v2 = vld [vmem:[%s10588_s5 + $0xb8] sm:$0xff]  }
 0x242   : > { %1830 = vst [vmem:[#allocation2 + $0x30] sm:$0xf] %v1829_v33  ;;  %v1831_v10 = vld [vmem:[#allocation2 + $0x3c] sm:$0xf]  ;;  %2076 = vst [vmem:[#allocation2 + $0x34] sm:$0xf] %v2075_v3  ;;  %7772 = vmatpush3.bf16.msra.mxu0 %v8270_v2 }
 0x243   : > { %v2077_v11 = vld [vmem:[#allocation2 + $0x40] sm:$0xf]  ;;  %v1832_v12 = vsel %vm9068_vm11, %v1803_v4, %v1831_v10  ;;  %v2106_v14 = vpop.permute.xlu0 %2105  ;;  %v8271_v33 = vld [vmem:[%s10588_s5 + $0x70] sm:$0xff]   ;;  %v2924_v2 = vld [vmem:[#allocation5 + $0x6] sm:$0x1] }
 0x244   : > { %v2078_v13 = vsel %vm9074_vm12, %v2052_v7, %v2077_v11  ;;  %1833 = vst [vmem:[#allocation2 + $0x3c] sm:$0xf] %v1832_v12  ;;  %2122 = vst.msk [vmem:[#allocation2 + $0x34] sm:$0xf] %vm682_vm8, %v2106_v14  ;;  %7751 = vmatprep.subr.bf16.mxu1 %v8271_v33  ;;  %v8272_v7 = vld [vmem:[%s10588_s5 + $0x30] sm:$0xff]   ;;  %v9453_v11 = vsub.s32 %v2659_v18, %v2661_v32  ;;  %v8286_v33 = vld [vmem:[%s10588_s5 + $0x98] sm:$0xff]  }
 0x245   : > { %2079 = vst [vmem:[#allocation2 + $0x40] sm:$0xf] %v2078_v13  ;;  %v2108_v15 = vpop.permute.xlu1 %2107  ;;  %v8273_v10 = vld [vmem:[%s10588_s5 + $0xf0] sm:$0xff]   ;;  %v8275_v13 = vld [vmem:[%s10588_s5 + $0x68] sm:$0xff]   ;;  %7752 = vmatpush3.bf16.msra.mxu1 %v8272_v7 }
 0x246   : > { %2123 = vst.msk [vmem:[#allocation2 + $0x40] sm:$0xf] %vm682_vm8, %v2108_v15  ;;  %v8274_v12 = vld [vmem:[%s10588_s5 + $0xb0] sm:$0xff]   ;;  %v2645_v15 = vld [vmem:[#allocation5] sm:$0x1]  ;;  %7773 = vmatprep.subr.bf16.mxu0 %v8273_v10  ;;  %7753 = vmatprep.subr.bf16.mxu1 %v8275_v13 }
 0x247   : > { %v1599_v55 = vpop.permute.xlu0 %1598  ;;  %7774 = vmatpush3.bf16.msra.mxu0 %v8274_v12 }
 0x248   : > { %1614 = vst.msk [vmem:[#allocation2 + $0x48] sm:$0xf] %vm471_vm6, %v1599_v55 }
 0x249   : > { %v1601_v22 = vpop.permute.xlu1 %1600 }
 0x24a   : > { %1615 = vst.msk [vmem:[#allocation2 + $0x54] sm:$0xf] %vm471_vm6, %v1601_v22 }
 0x24b   : > { %v1949_v17 = vpop.permute.xlu0 %1948  ;;  %v8263_v26 = vld [vmem:[#allocation2 + $0x30] ss:$12 sps:$4 sm:$0xff]  }
 0x24c   : > { %v1979_v19 = vsel %vm9055_vm9, %v1949_v17, %v1978_v29  ;;  %v2827_v29 = vld [vmem:[#allocation5 + $0x4] sm:$0x1] }
 0x24d   : > { %1980 = vst [vmem:[#allocation2 + $0x4c] sm:$0xf] %v1979_v19  ;;  %v1697_v56 = vpop.permute.xlu1 %1696  ;;  %v8261_v24 = vld [vmem:[#allocation2 + $0x34] ss:$12 sps:$4 sm:$0xff]  }
 0x24e   : > { %2510 = vmatprep.mubr.bf16.mxu1 %v8261_v24  ;;  %v2695_v24 = vld [vmem:[#allocation5 + $0x1] sm:$0x1] }
 0x24f   : > { %v1722_v27 = vld [vmem:[#allocation2 + $0x48] sm:$0xf]  ;;  %v1699_v31 = vpop.permute.xlu0 %1698  ;;  %2511 = vmatmul.mubr.bf16.gmra.mxu1 %v8263_v26 }
 0x250   : > { %v1723_v43 = vsel %vm9062_vm10, %v1697_v56, %v1722_v27  ;;  %v8276_v26 = vld [vmem:[%s10588_s5 + $0x28] sm:$0xff]  }
 0x251   : > { %1724 = vst [vmem:[#allocation2 + $0x48] sm:$0xf] %v1723_v43  ;;  %v1725_v58 = vld [vmem:[#allocation2 + $0x54] sm:$0xf]  ;;  %v2054_v48 = vpop.permute.xlu1 %2053  ;;  %v8277_v27 = vld [vmem:[%s10588_s5 + $0xe8] sm:$0xff]   ;;  %7754 = vmatpush3.bf16.msra.mxu1 %v8276_v26 }
 0x252   : > { %v1726_v5 = vsel %vm9062_vm10, %v1699_v31, %v1725_v58  ;;  %v8278_v58 = vld [vmem:[%s10588_s5 + $0xa8] sm:$0xff]   ;;  %7775 = vmatprep.subr.bf16.mxu0 %v8277_v27 }
 0x253   : > { %1727 = vst [vmem:[#allocation2 + $0x54] sm:$0xf] %v1726_v5  ;;  %v1805_v35 = vpop.permute.xlu0 %1804  ;;  %7776 = vmatpush3.bf16.msra.mxu0 %v8278_v58 }
 0x254   : > { %v2080_v40 = vld [vmem:[#allocation2 + $0x4c] sm:$0xf] }
 0x255   : > { %v2081_v20 = vsel %vm9074_vm12, %v2054_v48, %v2080_v40  ;;  %v1807_v37 = vpop.permute.xlu1 %1806  ;;  %v8279_v48 = vld [vmem:[%s10588_s5 + $0x60] sm:$0xff]  }
 0x256   : > { %2082 = vst [vmem:[#allocation2 + $0x4c] sm:$0xf] %v2081_v20  ;;  %v2744_v20 = vld [vmem:[#allocation5 + $0x2] sm:$0x1]  ;;  %7755 = vmatprep.subr.bf16.mxu1 %v8279_v48 }
 0x257   : > { %v1951_v57 = vpop.permute.xlu0 %1950 }
 0x258   : > { %v1834_v16 = vld [vmem:[#allocation2 + $0x48] sm:$0xf]  ;;  %v1982_v8 = vsel %vm9055_vm9, %v1951_v57, %v1981_v41 }
 0x259   : > { %v1835_v34 = vsel %vm9068_vm11, %v1805_v35, %v1834_v16  ;;  %1983 = vst [vmem:[#allocation2 + $0x58] sm:$0xf] %v1982_v8  ;;  %v2110_v28 = vpop.permute.xlu1 %2109 }
 0x25a   : > { %1836 = vst [vmem:[#allocation2 + $0x48] sm:$0xf] %v1835_v34  ;;  %v1837_v1 = vld [vmem:[#allocation2 + $0x54] sm:$0xf]  ;;  %2124 = vst.msk [vmem:[#allocation2 + $0x4c] sm:$0xf] %vm682_vm8, %v2110_v28 }
 0x25b   : > { %v1838_v54 = vsel %vm9068_vm11, %v1807_v37, %v1837_v1  ;;  %v2794_v1 = vld [vmem:[#allocation5 + $0x3] sm:$0x1] }
 0x25c   : > { %1839 = vst [vmem:[#allocation2 + $0x54] sm:$0xf] %v1838_v54 }
 0x261   : > { %v8264_v47 = vld [vmem:[#allocation2 + $0x4c] ss:$12 sps:$4 sm:$0xff]  }
 0x262   : > { %2518 = vmatprep.mubr.bf16.mxu1 %v8264_v47  ;;  %v8280_v47 = vld [vmem:[%s10588_s5 + $0x20] sm:$0xff]  }
 0x263   : > { %v8266_v39 = vld [vmem:[#allocation2 + $0x48] ss:$12 sps:$4 sm:$0xff]   ;;  %7756 = vmatpush3.bf16.msra.mxu1 %v8280_v47 }
 0x264   : > { %2519 = vmatmul.mubr.bf16.gmra.mxu1 %v8266_v39  ;;  %v8281_v39 = vld [vmem:[%s10588_s5 + $0xe0] sm:$0xff]   ;;  %v3007_v47 = vld [vmem:[#allocation5 + $0x8] sm:$0x1] }
 0x265   : > { %7777 = vmatprep.subr.bf16.mxu0 %v8281_v39 }
 0x281   : > { %v9428_v46 = vpop.f32.mrf.mxu0 }
 0x283   : > { %v2561_v36 = vpop.f32.mrf.mxu0 }
 0x285   : > { %v9436_v25 = vpop.f32.mrf.mxu0 }
 0x287   : > { %v2564_v51 = vpop.f32.mrf.mxu0 }
 0x2df   : > { %v7719_v52 = vpop.f32.mrf.mxu1 }
 0x2e1   : > { %v7720_v6 = vpop.f32.mrf.mxu1 }
 0x2e2   : > { %v7721_v9 = vadd.f32 %v7720_v6, %v7719_v52 }
 0x2e3   : > { %v7722_v23 = vpop.f32.mrf.mxu1 }
 0x2e4   : > { %v2497_v21 = vadd.f32 %v7721_v9, %v9433_v30  ;;  %v2875_v9 = vld [vmem:[#allocation5 + $0x5] sm:$0x1] }
 0x2e5   : > { %v7723_v45 = vpop.f32.mrf.mxu1 }
 0x2e6   : > { %v2562_v49 = vadd.f32 %v2561_v36, %v2497_v21  ;;  %v7724_v50 = vadd.f32 %v7723_v45, %v7722_v23  ;;  %v8282_v23 = vld [vmem:[%s10588_s5 + $0xa0] sm:$0xff]  }
 0x2e7   : > { %7778 = vmatpush3.bf16.msra.mxu0 %v8282_v23 }
 0x2e8   : > { %v2592_v0 = vmax.f32 %v2562_v49, 0.0  ;;  %v2500_v53 = vadd.f32 %v7724_v50, %v9433_v30 }
 0x2ea   : > { %v7649_v62 = vpack.c.bf16 %v2592_v0, %v2592_v0  ;;  %v2565_v63 = vadd.f32 %v2564_v51, %v2500_v53 }
 0x2ec   : > { %2633 = vst.msk [vmem:[#allocation4] sm:$0xf] %vm2632_vm13, %v7649_v62  ;;  %v2593_v4 = vmax.f32 %v2565_v63, 0.0  ;;  %v8283_v62 = vld [vmem:[%s10588_s5 + $0x58] sm:$0xff]  }
 0x2ed   : > { %v8284_v63 = vld [vmem:[%s10588_s5 + $0x18] sm:$0xff]   ;;  %7757 = vmatprep.subr.bf16.mxu1 %v8283_v62 }
 0x2ee   : > { %v7650_v3 = vpack.c.bf16 %v2593_v4, %v2593_v4  ;;  %v8285_v4 = vld [vmem:[%s10588_s5 + $0xd8] sm:$0xff]   ;;  %7758 = vmatpush3.bf16.msra.mxu1 %v8284_v63 }
 0x2ef   : > { %7779 = vmatprep.subr.bf16.mxu0 %v8285_v4 }
 0x2f0   : > { %2634 = vst.msk [vmem:[#allocation4 + $0x4] sm:$0xf] %vm2632_vm13, %v7650_v3  ;;  %v8287_v3 = vld [vmem:[%s10588_s5 + $0x50] sm:$0xff]   ;;  %7780 = vmatpush3.bf16.msra.mxu0 %v8286_v33 }
 0x2f1   : > { %7759 = vmatprep.subr.bf16.mxu1 %v8287_v3 }
 0x2f3   : > { %v7293_v55 = vld.sshfl [vmem:[#allocation4] sm:$0x1 pattern:$0x75316420] }
 0x2f4   : > { %v2641_v22 = vld [vmem:[#allocation4] sm:$0x1]  ;;  %v2663_v17 = vrot.slane %v7293_v55, %v9453_v11  ;;  %v7296_v19 = vld.sshfl [vmem:[#allocation4] sm:$0x10 pattern:$0x75316420] }
 0x2f5   : > { %v2646_v56 = vsel %vm9462_vm0, %v2641_v22, %v2645_v15  ;;  %v2707_v31 = vcombine.high %v7296_v19, %v7296_v19  ;;  %v7299_v43 = vld.sshfl [vmem:[#allocation4] sm:$0x2 pattern:$0x75316420]  ;;  %v8289_v15 = vld [vmem:[%s10588_s5 + $0xd0] sm:$0xff]  }
 0x2f6   : > { %2647 = vst [vmem:[#allocation5] sm:$0x1] %v2646_v56  ;;  %v2665_v5 = vshrl.u32 %v2663_v17, 16  ;;  %v2762_v35 = vrot.slane %v7299_v43, %v9453_v11  ;;  %v2974_v19 = vld [vmem:[#allocation5 + $0x7] sm:$0x1]  ;;  %v8288_v56 = vld [vmem:[%s10588_s5 + $0x10] sm:$0xff]   ;;  %7781 = vmatprep.subr.bf16.mxu0 %v8289_v15 }
 0x2f7   : > { %v7302_v40 = vld.sshfl [vmem:[#allocation4] sm:$0x20 pattern:$0x75316420]  ;;  %v2714_v41 = vrot.slane %v2707_v31, %v9453_v11  ;;  %v2826_v8 = vld [vmem:[#allocation4 + $0x4] sm:$0x1]  ;;  %7760 = vmatpush3.bf16.msra.mxu1 %v8288_v56 }
 0x2f8   : > { %v7725_v37 = vpop.f32.mrf.mxu1  ;;  %v2806_v57 = vcombine.high %v7302_v40, %v7302_v40  ;;  %v7304_v16 = vld.sshfl [vmem:[#allocation4 + $0x4] sm:$0x1 pattern:$0x75316420]  ;;  %2669 = vrot.lane.b32.xlu0 %v2665_v5, %s8599_s27  ;;  %v2763_v34 = vcombine.high %v2762_v35, %v2762_v35  ;;  %v2828_v54 = vsel %vm9462_vm0, %v2826_v8, %v2827_v29  ;;  %v8290_v43 = vld [vmem:[%s10588_s5 + $0x90] sm:$0xff]   ;;  %v8293_v5 = vld [vmem:[%s10588_s5 + $0xc8] sm:$0xff]  }
 0x2f9   : > { %v7307_v28 = vld.sshfl [vmem:[#allocation4 + $0x4] sm:$0x10 pattern:$0x75316420]  ;;  %v2716_v38 = vshrl.u32 %v2714_v41, 16  ;;  %v2696_v6 = vsel %vm9462_vm0, %v2714_v41, %v2695_v24  ;;  %v2845_v49 = vrot.slane %v7304_v16, %v9453_v11  ;;  %7782 = vmatpush3.bf16.msra.mxu0 %v8290_v43 }
 0x2fa   : > { %v7726_v44 = vpop.f32.mrf.mxu1  ;;  %v2813_v60 = vrot.slane %v2806_v57, %v9453_v11  ;;  %v2887_v52 = vcombine.high %v7307_v28, %v7307_v28  ;;  %v7310_v36 = vld.sshfl [vmem:[#allocation4 + $0x4] sm:$0x2 pattern:$0x75316420]  ;;  %2829 = vst [vmem:[#allocation5 + $0x4] sm:$0x1] %v2828_v54  ;;  %v2745_v51 = vsel %vm9462_vm0, %v2763_v34, %v2744_v20  ;;  %7783 = vmatprep.subr.bf16.mxu0 %v8293_v5 }
 0x2fb   : > { %v7727_v21 = vadd.f32 %v7726_v44, %v7725_v37  ;;  %v2765_v45 = vshrl.u32 %v2763_v34, 16  ;;  %v2942_v50 = vrot.slane %v7310_v36, %v9453_v11  ;;  %v7313_v0 = vld.sshfl [vmem:[#allocation4 + $0x4] sm:$0x20 pattern:$0x75316420]  ;;  %2720 = vrot.lane.b32.xlu1 %v2716_v38, %s8599_s27  ;;  %v2847_v29 = vshrl.u32 %v2845_v49, 16 }
 0x2fc   : > { %2697 = vst [vmem:[#allocation5 + $0x1] sm:$0x1] %v2696_v6  ;;  %v7728_v53 = vpop.f32.mrf.mxu1  ;;  %v2814_v42 = vcombine.high %v2813_v60, %v2813_v60  ;;  %v2894_v59 = vrot.slane %v2887_v52, %v9453_v11  ;;  %v2986_v61 = vcombine.high %v7313_v0, %v7313_v0  ;;  %2746 = vst [vmem:[#allocation5 + $0x2] sm:$0x1] %v2745_v51  ;;  %v8292_v37 = vld [vmem:[%s10588_s5 + $0x8] sm:$0xff]   ;;  %v8295_v57 = vld [vmem:[%s10588_s5 + $0x40] sm:$0xff]  }
 0x2fd   : > { %v2505_v18 = vadd.f32 %v7727_v21, %v9433_v30  ;;  %2769 = vrot.lane.b32.xlu0 %v2765_v45, %s8599_s27  ;;  %v2943_v32 = vcombine.high %v2942_v50, %v2942_v50  ;;  %v8296_v34 = vld [vmem:[%s10588_s5] sm:$0xff]   ;;  %v8299_v54 = vld [vmem:[%s10588_s5 + $0x178] sm:$0xff]   ;;  %v3055_v36 = vld [vmem:[#allocation5 + $0x9] sm:$0x1] }
 0x2fe   : > { %v7729_v7 = vpop.f32.mrf.mxu1  ;;  %v2816_v10 = vshrl.u32 %v2814_v42, 16  ;;  %v2993_v12 = vrot.slane %v2986_v61, %v9453_v11  ;;  %v2795_v13 = vsel %vm9462_vm0, %v2814_v42, %v2794_v1  ;;  %v2876_v17 = vsel %vm9462_vm0, %v2894_v59, %v2875_v9  ;;  %v8297_v28 = vld [vmem:[%s10588_s5 + $0xc0] sm:$0xff]   ;;  %v8301_v6 = vld [vmem:[%s10588_s5 + $0x1f8] sm:$0xff]   ;;  %v9582_v9 = vpop.f32.mrf.mxu0  ;;  %v3187_v45 = vld [vmem:[#allocation5 + $0xc] sm:$0x1] }
 0x2ff   : > { %v2570_v55 = vadd.f32 %v9428_v46, %v2505_v18  ;;  %v7730_v22 = vadd.f32 %v7729_v7, %v7728_v53  ;;  %2796 = vst [vmem:[#allocation5 + $0x3] sm:$0x1] %v2795_v13  ;;  %2877 = vst [vmem:[#allocation5 + $0x5] sm:$0x1] %v2876_v17  ;;  %v2925_v26 = vsel %vm9462_vm0, %v2943_v32, %v2924_v2  ;;  %v8291_v46 = vld [vmem:[%s10588_s5 + $0x48] sm:$0xff]   ;;  %v2896_v58 = vshrl.u32 %v2894_v59, 16 }
 0x300   : > { %2820 = vrot.lane.b32.xlu1 %v2816_v10, %s8599_s27  ;;  %v2994_v24 = vcombine.high %v2993_v12, %v2993_v12  ;;  %2926 = vst [vmem:[#allocation5 + $0x6] sm:$0x1] %v2925_v26  ;;  %v2945_v20 = vshrl.u32 %v2943_v32, 16  ;;  %7761 = vmatprep.subr.bf16.mxu1 %v8291_v46  ;;  %v8298_v1 = vld [vmem:[%s10588_s5 + $0x80] sm:$0xff]   ;;  %v3104_v53 = vld [vmem:[#allocation5 + $0xa] sm:$0x1]  ;;  %v2577_v2 = vpop.f32.mrf.mxu0 }
 0x301   : > { %v2594_v27 = vmax.f32 %v2570_v55, 0.0  ;;  %v2508_v31 = vadd.f32 %v7730_v22, %v9433_v30  ;;  %2851 = vrot.lane.b32.xlu0 %v2847_v29, %s8599_s27  ;;  %7762 = vmatpush3.bf16.msra.mxu1 %v8292_v37  ;;  %v3154_v18 = vld [vmem:[#allocation5 + $0xb] sm:$0x1] }
 0x302   : > { %v2975_v48 = vsel %vm9462_vm0, %v2994_v24, %v2974_v19  ;;  %v2996_v16 = vshrl.u32 %v2994_v24, 16  ;;  %7763 = vmatprep.subr.bf16.mxu1 %v8295_v57 }
 0x303   : > { %v7651_v35 = vpack.c.bf16 %v2594_v27, %v2594_v27  ;;  %v2573_v40 = vadd.f32 %v9436_v25, %v2508_v31  ;;  %2976 = vst [vmem:[#allocation5 + $0x7] sm:$0x1] %v2975_v48  ;;  %v8294_v25 = vld [vmem:[%s10588_s5 + $0x88] sm:$0xff]   ;;  %v9600_v48 = vpop.f32.mrf.mxu0  ;;  %v2772_v14 = vld [vmem:[#allocation5 + $0x2] sm:$0x1] }
 0x304   : > { %2900 = vrot.lane.b32.xlu1 %v2896_v58, %s8599_s27  ;;  %7784 = vmatpush3.bf16.msra.mxu0 %v8294_v25  ;;  %v3235_v27 = vld [vmem:[#allocation5 + $0xd] sm:$0x1]  ;;  %v3284_v58 = vld [vmem:[#allocation5 + $0xe] sm:$0x1] }
 0x305   : > { %2635 = vst.msk [vmem:[#allocation4 + $0x8] sm:$0xf] %vm2632_vm13, %v7651_v35  ;;  %v2595_v41 = vmax.f32 %v2573_v40, 0.0  ;;  %2949 = vrot.lane.b32.xlu0 %v2945_v20, %s8599_s27  ;;  %7785 = vmatprep.subr.bf16.mxu0 %v8297_v28 }
 0x306   : > { %7764 = vmatpush3.bf16.msra.mxu1 %v8296_v34 }
 0x307   : > { %v7652_v8 = vpack.c.bf16 %v2595_v41, %v2595_v41  ;;  %7793 = vmatprep.subr.bf16.mxu1 %v8299_v54  ;;  %v2580_v54 = vpop.f32.mrf.mxu0 }
 0x308   : > { %3000 = vrot.lane.b32.xlu1 %v2996_v16, %s8599_s27  ;;  %7786 = vmatpush3.bf16.msra.mxu0 %v8298_v1  ;;  %v3334_v16 = vld [vmem:[#allocation5 + $0xf] sm:$0x1] }
 0x309   : > { %2636 = vst.msk [vmem:[#allocation4 + $0xc] sm:$0xf] %vm2632_vm13, %v7652_v8  ;;  %7815 = vmatprep.subr.bf16.mxu0 %v8301_v6 }
 0x30c   : > { %v7315_v39 = vld.sshfl [vmem:[#allocation4 + $0x8] sm:$0x1 pattern:$0x75316420] }
 0x30d   : > { %v3006_v44 = vld [vmem:[#allocation4 + $0x8] sm:$0x1]  ;;  %v3025_v38 = vrot.slane %v7315_v39, %v9453_v11  ;;  %v7318_v60 = vld.sshfl [vmem:[#allocation4 + $0x8] sm:$0x10 pattern:$0x75316420] }
 0x30e   : > { %v3008_v52 = vsel %vm9462_vm0, %v3006_v44, %v3007_v47  ;;  %v3067_v23 = vcombine.high %v7318_v60, %v7318_v60  ;;  %v7321_v21 = vld.sshfl [vmem:[#allocation4 + $0x8] sm:$0x2 pattern:$0x75316420] }
 0x30f   : > { %3009 = vst [vmem:[#allocation5 + $0x8] sm:$0x1] %v3008_v52  ;;  %v3027_v49 = vshrl.u32 %v3025_v38, 16  ;;  %v3122_v50 = vrot.slane %v7321_v21, %v9453_v11  ;;  %v7731_v42 = vpop.f32.mrf.mxu1 }
 0x310   : > { %v7324_v0 = vld.sshfl [vmem:[#allocation4 + $0x8] sm:$0x20 pattern:$0x75316420]  ;;  %v3074_v59 = vrot.slane %v3067_v23, %v9453_v11  ;;  %v3186_v62 = vld [vmem:[#allocation4 + $0xc] sm:$0x1] }
 0x311   : > { %v3166_v61 = vcombine.high %v7324_v0, %v7324_v0  ;;  %v7326_v51 = vld.sshfl [vmem:[#allocation4 + $0xc] sm:$0x1 pattern:$0x75316420]  ;;  %3031 = vrot.lane.b32.xlu0 %v3027_v49, %s8599_s27  ;;  %v3123_v63 = vcombine.high %v3122_v50, %v3122_v50  ;;  %v3188_v32 = vsel %vm9462_vm0, %v3186_v62, %v3187_v45  ;;  %v7732_v33 = vpop.f32.mrf.mxu1  ;;  %v3367_v23 = vld [vmem:[#allocation5 + $0x10] sm:$0x1] }
 0x312   : > { %v7329_v4 = vld.sshfl [vmem:[#allocation4 + $0xc] sm:$0x10 pattern:$0x75316420]  ;;  %v3076_v3 = vshrl.u32 %v3074_v59, 16  ;;  %v3056_v13 = vsel %vm9462_vm0, %v3074_v59, %v3055_v36  ;;  %v7733_v15 = vadd.f32 %v7732_v33, %v7731_v42  ;;  %v3205_v22 = vrot.slane %v7326_v51, %v9453_v11 }
 0x313   : > { %v3173_v7 = vrot.slane %v3166_v61, %v9453_v11  ;;  %v3247_v10 = vcombine.high %v7329_v4, %v7329_v4  ;;  %v7332_v12 = vld.sshfl [vmem:[#allocation4 + $0xc] sm:$0x2 pattern:$0x75316420]  ;;  %3189 = vst [vmem:[#allocation5 + $0xc] sm:$0x1] %v3188_v32  ;;  %v7734_v19 = vpop.f32.mrf.mxu1  ;;  %v3105_v46 = vsel %vm9462_vm0, %v3123_v63, %v3104_v53 }
 0x314   : > { %v3125_v55 = vshrl.u32 %v3123_v63, 16  ;;  %v3302_v29 = vrot.slane %v7332_v12, %v9453_v11  ;;  %v7335_v17 = vld.sshfl [vmem:[#allocation4 + $0xc] sm:$0x20 pattern:$0x75316420]  ;;  %3080 = vrot.lane.b32.xlu1 %v3076_v3, %s8599_s27  ;;  %v2513_v31 = vadd.f32 %v7733_v15, %v9433_v30  ;;  %v3207_v25 = vshrl.u32 %v3205_v22, 16 }
 0x315   : > { %3057 = vst [vmem:[#allocation5 + $0x9] sm:$0x1] %v3056_v13  ;;  %v3174_v56 = vcombine.high %v3173_v7, %v3173_v7  ;;  %v3254_v24 = vrot.slane %v3247_v10, %v9453_v11  ;;  %v3346_v26 = vcombine.high %v7335_v17, %v7335_v17  ;;  %3106 = vst [vmem:[#allocation5 + $0xa] sm:$0x1] %v3105_v46  ;;  %v7735_v5 = vpop.f32.mrf.mxu1  ;;  %v3415_v53 = vld [vmem:[#allocation5 + $0x11] sm:$0x1] }
 0x316   : > { %3129 = vrot.lane.b32.xlu0 %v3125_v55, %s8599_s27  ;;  %v3303_v43 = vcombine.high %v3302_v29, %v3302_v29  ;;  %v2578_v37 = vadd.f32 %v2577_v2, %v2513_v31  ;;  %v7736_v41 = vadd.f32 %v7735_v5, %v7734_v19  ;;  %v3547_v51 = vld [vmem:[#allocation5 + $0x14] sm:$0x1]  ;;  %v3514_v55 = vld [vmem:[#allocation5 + $0x13] sm:$0x1] }
 0x317   : > { %v3176_v35 = vshrl.u32 %v3174_v56, 16  ;;  %v3353_v40 = vrot.slane %v3346_v26, %v9453_v11  ;;  %v3155_v20 = vsel %vm9462_vm0, %v3174_v56, %v3154_v18  ;;  %v3236_v57 = vsel %vm9462_vm0, %v3254_v24, %v3235_v27  ;;  %v3464_v18 = vld [vmem:[#allocation5 + $0x12] sm:$0x1] }
 0x318   : > { %3156 = vst [vmem:[#allocation5 + $0xb] sm:$0x1] %v3155_v20  ;;  %3237 = vst [vmem:[#allocation5 + $0xd] sm:$0x1] %v3236_v57  ;;  %v3285_v34 = vsel %vm9462_vm0, %v3303_v43, %v3284_v58  ;;  %v2596_v28 = vmax.f32 %v2578_v37, 0.0  ;;  %v2516_v1 = vadd.f32 %v7736_v41, %v9433_v30  ;;  %v3256_v47 = vshrl.u32 %v3254_v24, 16 }
 0x319   : > { %3180 = vrot.lane.b32.xlu1 %v3176_v35, %s8599_s27  ;;  %v3354_v8 = vcombine.high %v3353_v40, %v3353_v40  ;;  %3286 = vst [vmem:[#allocation5 + $0xe] sm:$0x1] %v3285_v34  ;;  %v3305_v60 = vshrl.u32 %v3303_v43, 16  ;;  %v3595_v37 = vld [vmem:[#allocation5 + $0x15] sm:$0x1] }
 0x31a   : > { %3211 = vrot.lane.b32.xlu0 %v3207_v25, %s8599_s27  ;;  %v7653_v44 = vpack.c.bf16 %v2596_v28, %v2596_v28  ;;  %v2581_v38 = vadd.f32 %v2580_v54, %v2516_v1 }
 0x31b   : > { %v3335_v39 = vsel %vm9462_vm0, %v3354_v8, %v3334_v16  ;;  %v3356_v36 = vshrl.u32 %v3354_v8, 16 }
 0x31c   : > { %3336 = vst [vmem:[#allocation5 + $0xf] sm:$0x1] %v3335_v39  ;;  %2637 = vst.msk [vmem:[#allocation4 + $0x10] sm:$0xf] %vm2632_vm13, %v7653_v44  ;;  %v2597_v52 = vmax.f32 %v2581_v38, 0.0 }
 0x31d   : > { %3260 = vrot.lane.b32.xlu1 %v3256_v47, %s8599_s27 }
 0x31e   : > { %3309 = vrot.lane.b32.xlu0 %v3305_v60, %s8599_s27  ;;  %v7654_v6 = vpack.c.bf16 %v2597_v52, %v2597_v52 }
 0x320   : > { %2638 = vst.msk [vmem:[#allocation4 + $0x14] sm:$0xf] %vm2632_vm13, %v7654_v6 }
 0x321   : > { %3360 = vrot.lane.b32.xlu1 %v3356_v36, %s8599_s27 }
 0x323   : > { %v7337_v21 = vld.sshfl [vmem:[#allocation4 + $0x10] sm:$0x1 pattern:$0x75316420] }
 0x324   : > { %v3366_v45 = vld [vmem:[#allocation4 + $0x10] sm:$0x1]  ;;  %v3385_v49 = vrot.slane %v7337_v21, %v9453_v11  ;;  %v7340_v50 = vld.sshfl [vmem:[#allocation4 + $0x10] sm:$0x10 pattern:$0x75316420]  ;;  %v7737_v42 = vpop.f32.mrf.mxu1 }
 0x325   : > { %v3368_v0 = vsel %vm9462_vm0, %v3366_v45, %v3367_v23  ;;  %v3427_v59 = vcombine.high %v7340_v50, %v7340_v50  ;;  %v7343_v61 = vld.sshfl [vmem:[#allocation4 + $0x10] sm:$0x2 pattern:$0x75316420]  ;;  %v3644_v21 = vld [vmem:[#allocation5 + $0x16] sm:$0x1] }
 0x326   : > { %3369 = vst [vmem:[#allocation5 + $0x10] sm:$0x1] %v3368_v0  ;;  %v3387_v62 = vshrl.u32 %v3385_v49, 16  ;;  %v3482_v63 = vrot.slane %v7343_v61, %v9453_v11  ;;  %v7738_v32 = vpop.f32.mrf.mxu1 }
 0x327   : > { %v7346_v4 = vld.sshfl [vmem:[#allocation4 + $0x10] sm:$0x20 pattern:$0x75316420]  ;;  %v3434_v2 = vrot.slane %v3427_v59, %v9453_v11  ;;  %v3546_v7 = vld [vmem:[#allocation4 + $0x14] sm:$0x1]  ;;  %v7739_v10 = vadd.f32 %v7738_v32, %v7737_v42 }
 0x328   : > { %v3526_v33 = vcombine.high %v7346_v4, %v7346_v4  ;;  %v7348_v3 = vld.sshfl [vmem:[#allocation4 + $0x14] sm:$0x1 pattern:$0x75316420]  ;;  %3391 = vrot.lane.b32.xlu0 %v3387_v62, %s8599_s27  ;;  %v3483_v12 = vcombine.high %v3482_v63, %v3482_v63  ;;  %v3548_v22 = vsel %vm9462_vm0, %v3546_v7, %v3547_v51  ;;  %v7740_v29 = vpop.f32.mrf.mxu1  ;;  %v3694_v42 = vld [vmem:[#allocation5 + $0x17] sm:$0x1] }
 0x329   : > { %v3565_v13 = vrot.slane %v7348_v3, %v9453_v11  ;;  %v7351_v15 = vld.sshfl [vmem:[#allocation4 + $0x14] sm:$0x10 pattern:$0x75316420]  ;;  %v3436_v17 = vshrl.u32 %v3434_v2, 16  ;;  %v3416_v26 = vsel %vm9462_vm0, %v3434_v2, %v3415_v53  ;;  %v2521_v46 = vadd.f32 %v7739_v10, %v9433_v30 }
 0x32a   : > { %v3533_v19 = vrot.slane %v3526_v33, %v9453_v11  ;;  %v3607_v56 = vcombine.high %v7351_v15, %v7351_v15  ;;  %v7354_v24 = vld.sshfl [vmem:[#allocation4 + $0x14] sm:$0x2 pattern:$0x75316420]  ;;  %3549 = vst [vmem:[#allocation5 + $0x14] sm:$0x1] %v3548_v22  ;;  %v7741_v58 = vpop.f32.mrf.mxu1  ;;  %v3465_v40 = vsel %vm9462_vm0, %v3483_v12, %v3464_v18 }
 0x32b   : > { %v3485_v27 = vshrl.u32 %v3483_v12, 16  ;;  %v3662_v31 = vrot.slane %v7354_v24, %v9453_v11  ;;  %v7357_v43 = vld.sshfl [vmem:[#allocation4 + $0x14] sm:$0x20 pattern:$0x75316420]  ;;  %3440 = vrot.lane.b32.xlu1 %v3436_v17, %s8599_s27  ;;  %v2586_v41 = vadd.f32 %v9582_v9, %v2521_v46  ;;  %v7742_v25 = vadd.f32 %v7741_v58, %v7740_v29 }
 0x32c   : > { %3417 = vst [vmem:[#allocation5 + $0x11] sm:$0x1] %v3416_v26  ;;  %v3534_v5 = vcombine.high %v3533_v19, %v3533_v19  ;;  %v3706_v35 = vcombine.high %v7357_v43, %v7357_v43  ;;  %v7350_v20 = vld.sshfl [vmem:[#allocation4 + $0x14] sm:$0x10 pattern:$0x75316420]  ;;  %v3614_v28 = vrot.slane %v3607_v56, %v9453_v11 }
 0x32d   : > { %3489 = vrot.lane.b32.xlu0 %v3485_v27, %s8599_s27  ;;  %v3567_v57 = vshrl.u32 %v3565_v13, 16  ;;  %3466 = vst [vmem:[#allocation5 + $0x12] sm:$0x1] %v3465_v40  ;;  %v3586_v16 = vcombine.high %v7350_v20, %v7350_v20  ;;  %v2598_v39 = vmax.f32 %v2586_v41, 0.0  ;;  %v2524_v44 = vadd.f32 %v7742_v25, %v9433_v30  ;;  %v3727_v63 = vld [vmem:[#allocation5 + $0x18] sm:$0x1] }
 0x32e   : > { %v7353_v8 = vld.sshfl [vmem:[#allocation4 + $0x14] sm:$0x2 pattern:$0x75316420]  ;;  %v3536_v34 = vshrl.u32 %v3534_v5, 16  ;;  %v3713_v1 = vrot.slane %v3706_v35, %v9453_v11  ;;  %v3515_v54 = vsel %vm9462_vm0, %v3534_v5, %v3514_v55  ;;  %v3663_v9 = vcombine.high %v3662_v31, %v3662_v31 }
 0x32f   : > { %v7356_v47 = vld.sshfl [vmem:[#allocation4 + $0x14] sm:$0x20 pattern:$0x75316420]  ;;  %3516 = vst [vmem:[#allocation5 + $0x13] sm:$0x1] %v3515_v54  ;;  %v3593_v38 = vrot.slane %v3586_v16, %v9453_v11  ;;  %v3641_v60 = vrot.slane %v7353_v8, %v9453_v11  ;;  %v7655_v36 = vpack.c.bf16 %v2598_v39, %v2598_v39  ;;  %v2589_v6 = vadd.f32 %v9600_v48, %v2524_v44 }
 0x330   : > { %3540 = vrot.lane.b32.xlu1 %v3536_v34, %s8599_s27  ;;  %v3684_v52 = vcombine.high %v7356_v47, %v7356_v47  ;;  %v3616_v45 = vshrl.u32 %v3614_v28, 16  ;;  %v3714_v30 = vcombine.high %v3713_v1, %v3713_v1  ;;  %v3665_v53 = vshrl.u32 %v3663_v9, 16  ;;  %v3907_v10 = vld [vmem:[#allocation5 + $0x1c] sm:$0x1]  ;;  %v3775_v41 = vld [vmem:[#allocation5 + $0x19] sm:$0x1] }
 0x331   : > { %3571 = vrot.lane.b32.xlu0 %v3567_v57, %s8599_s27  ;;  %v3596_v23 = vsel %vm9462_vm0, %v3593_v38, %v3595_v37  ;;  %v3642_v49 = vcombine.high %v3641_v60, %v3641_v60  ;;  %2639 = vst.msk [vmem:[#allocation4 + $0x18] sm:$0xf] %vm2632_vm13, %v7655_v36  ;;  %v2599_v0 = vmax.f32 %v2589_v6, 0.0  ;;  %v3824_v8 = vld [vmem:[#allocation5 + $0x1a] sm:$0x1] }
 0x332   : > { %3597 = vst [vmem:[#allocation5 + $0x15] sm:$0x1] %v3596_v23  ;;  %v3691_v50 = vrot.slane %v3684_v52, %v9453_v11  ;;  %v3716_v51 = vshrl.u32 %v3714_v30, 16  ;;  %v3955_v36 = vld [vmem:[#allocation5 + $0x1d] sm:$0x1] }
 0x333   : > { %v3645_v48 = vsel %vm9462_vm0, %v3642_v49, %v3644_v21  ;;  %v7656_v61 = vpack.c.bf16 %v2599_v0, %v2599_v0 }
 0x334   : > { %3620 = vrot.lane.b32.xlu1 %v3616_v45, %s8599_s27  ;;  %v3692_v59 = vcombine.high %v3691_v50, %v3691_v50  ;;  %3646 = vst [vmem:[#allocation5 + $0x16] sm:$0x1] %v3645_v48  ;;  %v4004_v48 = vld [vmem:[#allocation5 + $0x1e] sm:$0x1] }
 0x335   : > { %3669 = vrot.lane.b32.xlu0 %v3665_v53, %s8599_s27  ;;  %2640 = vst.msk [vmem:[#allocation4 + $0x1c] sm:$0xf] %vm2632_vm13, %v7656_v61  ;;  %v3874_v53 = vld [vmem:[#allocation5 + $0x1b] sm:$0x1] }
 0x336   : > { %v3695_v62 = vsel %vm9462_vm0, %v3692_v59, %v3694_v42 }
 0x337   : > { %3696 = vst [vmem:[#allocation5 + $0x17] sm:$0x1] %v3695_v62 }
 0x338   : > { %3720 = vrot.lane.b32.xlu1 %v3716_v51, %s8599_s27  ;;  %v7359_v4 = vld.sshfl [vmem:[#allocation4 + $0x18] sm:$0x1 pattern:$0x75316420] }
 0x339   : > { %v3726_v18 = vld [vmem:[#allocation4 + $0x18] sm:$0x1]  ;;  %v3745_v32 = vrot.slane %v7359_v4, %v9453_v11  ;;  %v7362_v2 = vld.sshfl [vmem:[#allocation4 + $0x18] sm:$0x10 pattern:$0x75316420] }
 0x33a   : > { %v3728_v33 = vsel %vm9462_vm0, %v3726_v18, %v3727_v63  ;;  %v3787_v3 = vcombine.high %v7362_v2, %v7362_v2  ;;  %v7365_v7 = vld.sshfl [vmem:[#allocation4 + $0x18] sm:$0x2 pattern:$0x75316420]  ;;  %v4054_v2 = vld [vmem:[#allocation5 + $0x1f] sm:$0x1] }
 0x33b   : > { %3729 = vst [vmem:[#allocation5 + $0x18] sm:$0x1] %v3728_v33  ;;  %v3747_v12 = vshrl.u32 %v3745_v32, 16  ;;  %v3842_v13 = vrot.slane %v7365_v7, %v9453_v11 }
 0x33c   : > { %v7368_v15 = vld.sshfl [vmem:[#allocation4 + $0x18] sm:$0x20 pattern:$0x75316420]  ;;  %v3794_v55 = vrot.slane %v3787_v3, %v9453_v11  ;;  %v3906_v56 = vld [vmem:[#allocation4 + $0x1c] sm:$0x1] }
 0x33d   : > { %v3886_v22 = vcombine.high %v7368_v15, %v7368_v15  ;;  %v7370_v29 = vld.sshfl [vmem:[#allocation4 + $0x1c] sm:$0x1 pattern:$0x75316420]  ;;  %3751 = vrot.lane.b32.xlu0 %v3747_v12, %s8599_s27  ;;  %v3843_v17 = vcombine.high %v3842_v13, %v3842_v13  ;;  %v3908_v31 = vsel %vm9462_vm0, %v3906_v56, %v3907_v10  ;;  %v2674_v13 = vld [vmem:[#allocation5] sm:$0x1] }
 0x33e   : > { %v7373_v19 = vld.sshfl [vmem:[#allocation4 + $0x1c] sm:$0x10 pattern:$0x75316420]  ;;  %v3796_v24 = vshrl.u32 %v3794_v55, 16  ;;  %v3925_v58 = vrot.slane %v7370_v29, %v9453_v11  ;;  %v8361_v10 = vld [vmem:[%s10588_s5 + $0x200] sm:$0xff]  }
 0x33f   : > { %v3893_v26 = vrot.slane %v3886_v22, %v9453_v11  ;;  %v3967_v46 = vcombine.high %v7373_v19, %v7373_v19  ;;  %v7376_v27 = vld.sshfl [vmem:[#allocation4 + $0x1c] sm:$0x2 pattern:$0x75316420]  ;;  %v3845_v43 = vshrl.u32 %v3843_v17, 16 }
 0x340   : > { %v4022_v5 = vrot.slane %v7376_v27, %v9453_v11  ;;  %v7379_v35 = vld.sshfl [vmem:[#allocation4 + $0x1c] sm:$0x20 pattern:$0x75316420]  ;;  %3909 = vst [vmem:[#allocation5 + $0x1c] sm:$0x1] %v3908_v31  ;;  %3800 = vrot.lane.b32.xlu1 %v3796_v24, %s8599_s27 }
 0x341   : > { %v3894_v40 = vcombine.high %v3893_v26, %v3893_v26  ;;  %v4066_v20 = vcombine.high %v7379_v35, %v7379_v35  ;;  %v7361_v37 = vld.sshfl [vmem:[#allocation4 + $0x18] sm:$0x10 pattern:$0x75316420]  ;;  %3849 = vrot.lane.b32.xlu0 %v3845_v43, %s8599_s27  ;;  %v3974_v25 = vrot.slane %v3967_v46, %v9453_v11  ;;  %v3927_v47 = vshrl.u32 %v3925_v58, 16 }
 0x342   : > { %v3766_v57 = vcombine.high %v7361_v37, %v7361_v37  ;;  %v7364_v16 = vld.sshfl [vmem:[#allocation4 + $0x18] sm:$0x2 pattern:$0x75316420]  ;;  %v4023_v39 = vcombine.high %v4022_v5, %v4022_v5  ;;  %v2723_v22 = vld [vmem:[#allocation5 + $0x1] sm:$0x1] }
 0x343   : > { %v3896_v34 = vshrl.u32 %v3894_v40, 16  ;;  %v4073_v28 = vrot.slane %v4066_v20, %v9453_v11  ;;  %v3821_v1 = vrot.slane %v7364_v16, %v9453_v11  ;;  %v7367_v54 = vld.sshfl [vmem:[#allocation4 + $0x18] sm:$0x20 pattern:$0x75316420]  ;;  %v3976_v23 = vshrl.u32 %v3974_v25, 16 }
 0x344   : > { %v3773_v44 = vrot.slane %v3766_v57, %v9453_v11  ;;  %v3864_v9 = vcombine.high %v7367_v54, %v7367_v54  ;;  %v7372_v38 = vld.sshfl [vmem:[#allocation4 + $0x1c] sm:$0x10 pattern:$0x75316420]  ;;  %v4025_v61 = vshrl.u32 %v4023_v39, 16 }
 0x345   : > { %3900 = vrot.lane.b32.xlu1 %v3896_v34, %s8599_s27  ;;  %v3822_v60 = vcombine.high %v3821_v1, %v3821_v1  ;;  %v3946_v52 = vcombine.high %v7372_v38, %v7372_v38  ;;  %v7375_v6 = vld.sshfl [vmem:[#allocation4 + $0x1c] sm:$0x2 pattern:$0x75316420]  ;;  %3931 = vrot.lane.b32.xlu0 %v3927_v47, %s8599_s27  ;;  %v4074_v50 = vcombine.high %v4073_v28, %v4073_v28  ;;  %v2823_v56 = vld [vmem:[#allocation5 + $0x3] sm:$0x1] }
 0x346   : > { %v3776_v21 = vsel %vm9462_vm0, %v3773_v44, %v3775_v41  ;;  %v3871_v45 = vrot.slane %v3864_v9, %v9453_v11  ;;  %v4001_v30 = vrot.slane %v7375_v6, %v9453_v11  ;;  %v7378_v49 = vld.sshfl [vmem:[#allocation4 + $0x1c] sm:$0x20 pattern:$0x75316420]  ;;  %v2854_v46 = vld [vmem:[#allocation5 + $0x4] sm:$0x1] }
 0x347   : > { %3777 = vst [vmem:[#allocation5 + $0x19] sm:$0x1] %v3776_v21  ;;  %v3825_v0 = vsel %vm9462_vm0, %v3822_v60, %v3824_v8  ;;  %v3953_v42 = vrot.slane %v3946_v52, %v9453_v11  ;;  %v4044_v59 = vcombine.high %v7378_v49, %v7378_v49  ;;  %v4076_v33 = vshrl.u32 %v4074_v50, 16  ;;  %v2903_v43 = vld [vmem:[#allocation5 + $0x5] sm:$0x1] }
 0x348   : > { %3826 = vst [vmem:[#allocation5 + $0x1a] sm:$0x1] %v3825_v0  ;;  %v3872_v51 = vcombine.high %v3871_v45, %v3871_v45  ;;  %v4002_v62 = vcombine.high %v4001_v30, %v4001_v30  ;;  %v2952_v35 = vld [vmem:[#allocation5 + $0x6] sm:$0x1]  ;;  %v3003_v37 = vld [vmem:[#allocation5 + $0x7] sm:$0x1] }
 0x349   : > { %3980 = vrot.lane.b32.xlu1 %v3976_v23, %s8599_s27  ;;  %v3956_v63 = vsel %vm9462_vm0, %v3953_v42, %v3955_v36  ;;  %v4051_v4 = vrot.slane %v4044_v59, %v9453_v11  ;;  %4029 = vrot.lane.b32.xlu0 %v4025_v61, %s8599_s27  ;;  %v3034_v57 = vld [vmem:[#allocation5 + $0x8] sm:$0x1]  ;;  %v3083_v54 = vld [vmem:[#allocation5 + $0x9] sm:$0x1]  ;;  %v3132_v38 = vld [vmem:[#allocation5 + $0xa] sm:$0x1] }
 0x34a   : > { %v3875_v18 = vsel %vm9462_vm0, %v3872_v51, %v3874_v53  ;;  %3957 = vst [vmem:[#allocation5 + $0x1d] sm:$0x1] %v3956_v63  ;;  %v4005_v32 = vsel %vm9462_vm0, %v4002_v62, %v4004_v48  ;;  %v8300_v23 = vld [vmem:[%s10588_s5 + $0x138] sm:$0xff]   ;;  %v3183_v45 = vld [vmem:[#allocation5 + $0xb] sm:$0x1]  ;;  %v8304_v53 = vld [vmem:[%s10588_s5 + $0x170] sm:$0xff]  }
 0x34b   : > { %3876 = vst [vmem:[#allocation5 + $0x1b] sm:$0x1] %v3875_v18  ;;  %4006 = vst [vmem:[#allocation5 + $0x1e] sm:$0x1] %v4005_v32  ;;  %v4052_v3 = vcombine.high %v4051_v4, %v4051_v4  ;;  %v8303_v0 = vld [vmem:[%s10588_s5 + $0x1b8] sm:$0xff]   ;;  %v8306_v51 = vld [vmem:[%s10588_s5 + $0x1f0] sm:$0xff]  }
 0x34c   : > { %v3214_v48 = vld [vmem:[#allocation5 + $0xc] sm:$0x1]  ;;  %v8305_v4 = vld [vmem:[%s10588_s5 + $0x130] sm:$0xff]   ;;  %v3263_v32 = vld [vmem:[#allocation5 + $0xd] sm:$0x1] }
 0x34d   : > { %4080 = vrot.lane.b32.xlu1 %v4076_v33, %s8599_s27  ;;  %v4055_v7 = vsel %vm9462_vm0, %v4052_v3, %v4054_v2  ;;  %v8308_v18 = vld [vmem:[%s10588_s5 + $0x168] sm:$0xff]   ;;  %v8307_v33 = vld [vmem:[%s10588_s5 + $0x1b0] sm:$0xff]  }
 0x34e   : > { %4056 = vst [vmem:[#allocation5 + $0x1f] sm:$0x1] %v4055_v7  ;;  %v3312_v7 = vld [vmem:[#allocation5 + $0xe] sm:$0x1] }
 0x36a   : > { %v2670_v12 = vpop.permute.xlu0 %2669 }
 0x36b   : > { %v2675_v15 = vsel %vm9699_vm2, %v2670_v12, %v2674_v13  ;;  %v8310_v13 = vld [vmem:[%s10588_s5 + $0x1e8] sm:$0xff]  }
 0x36c   : > { %2676 = vst [vmem:[#allocation5] sm:$0x1] %v2675_v15 }
 0x36d   : > { %v2721_v55 = vpop.permute.xlu1 %2720 }
 0x36e   : > { %v2724_v29 = vsel %vm9699_vm2, %v2721_v55, %v2723_v22  ;;  %v8309_v55 = vld [vmem:[%s10588_s5 + $0x128] sm:$0xff]   ;;  %v8312_v22 = vld [vmem:[%s10588_s5 + $0x160] sm:$0xff]  }
 0x36f   : > { %v2770_v17 = vpop.permute.xlu0 %2769  ;;  %2725 = vst [vmem:[#allocation5 + $0x1] sm:$0x1] %v2724_v29  ;;  %v3363_v29 = vld [vmem:[#allocation5 + $0xf] sm:$0x1] }
 0x370   : > { %v2773_v19 = vsel %vm9699_vm2, %v2770_v17, %v2772_v14  ;;  %v8311_v17 = vld [vmem:[%s10588_s5 + $0x1a8] sm:$0xff]  }
 0x371   : > { %2774 = vst [vmem:[#allocation5 + $0x2] sm:$0x1] %v2773_v19 }
 0x372   : > { %v2821_v24 = vpop.permute.xlu1 %2820 }
 0x373   : > { %v2824_v26 = vsel %vm9699_vm2, %v2821_v24, %v2823_v56  ;;  %v2852_v27 = vpop.permute.xlu0 %2851  ;;  %v8314_v56 = vld [vmem:[%s10588_s5 + $0x1e0] sm:$0xff]  }
 0x374   : > { %2825 = vst [vmem:[#allocation5 + $0x3] sm:$0x1] %v2824_v26  ;;  %v2855_v31 = vsel %vm9699_vm2, %v2852_v27, %v2854_v46  ;;  %v8313_v24 = vld [vmem:[%s10588_s5 + $0x120] sm:$0xff]   ;;  %v8316_v26 = vld [vmem:[%s10588_s5 + $0x158] sm:$0xff]  }
 0x375   : > { %2856 = vst [vmem:[#allocation5 + $0x4] sm:$0x1] %v2855_v31  ;;  %v8315_v46 = vld [vmem:[%s10588_s5 + $0x1a0] sm:$0xff]   ;;  %v8318_v27 = vld [vmem:[%s10588_s5 + $0x1d8] sm:$0xff]  }
 0x376   : > { %v2901_v58 = vpop.permute.xlu1 %2900  ;;  %v8317_v31 = vld [vmem:[%s10588_s5 + $0x118] sm:$0xff]  }
 0x377   : > { %v2904_v5 = vsel %vm9699_vm2, %v2901_v58, %v2903_v43  ;;  %v2950_v40 = vpop.permute.xlu0 %2949  ;;  %v8320_v43 = vld [vmem:[%s10588_s5 + $0x150] sm:$0xff]   ;;  %v8319_v58 = vld [vmem:[%s10588_s5 + $0x198] sm:$0xff]  }
 0x378   : > { %2905 = vst [vmem:[#allocation5 + $0x5] sm:$0x1] %v2904_v5  ;;  %v2953_v20 = vsel %vm9699_vm2, %v2950_v40, %v2952_v35  ;;  %v3394_v5 = vld [vmem:[#allocation5 + $0x10] sm:$0x1] }
 0x379   : > { %2954 = vst [vmem:[#allocation5 + $0x6] sm:$0x1] %v2953_v20  ;;  %v8322_v40 = vld [vmem:[%s10588_s5 + $0x1d0] sm:$0xff]  }
 0x37a   : > { %v3001_v41 = vpop.permute.xlu1 %3000 }
 0x37b   : > { %v3004_v25 = vsel %vm9699_vm2, %v3001_v41, %v3003_v37  ;;  %v8321_v37 = vld [vmem:[%s10588_s5 + $0x110] sm:$0xff]   ;;  %v8324_v41 = vld [vmem:[%s10588_s5 + $0x148] sm:$0xff]  }
 0x37c   : > { %3005 = vst [vmem:[#allocation5 + $0x7] sm:$0x1] %v3004_v25 }
 0x383   : > { %v3032_v16 = vpop.permute.xlu0 %3031  ;;  %v4086_v8 = vld [vmem:[#allocation5] sm:$0xff] }
 0x384   : > { %v3035_v34 = vsel %vm9699_vm2, %v3032_v16, %v3034_v57  ;;  %v4614_v28 = vrot.slane %v4086_v8, %v9453_v11  ;;  %v4607_v1 = vcombine.high %v4086_v8, %v4086_v8  ;;  %v3443_v57 = vld [vmem:[#allocation5 + $0x11] sm:$0x1] }
 0x385   : > { %3036 = vst [vmem:[#allocation5 + $0x8] sm:$0x1] %v3035_v34  ;;  %v8323_v8 = vld [vmem:[%s10588_s5 + $0x190] sm:$0xff]  }
 0x386   : > { %v3081_v47 = vpop.permute.xlu1 %3080  ;;  %v4622_v39 = vcombine.high %v4614_v28, %v4614_v28  ;;  %v9723_v44 = vrot.slane %v4607_v1, %v9453_v11  ;;  %v4630_v52 = vrot.slane %v4614_v28, %v9453_v11  ;;  %v3492_v28 = vld [vmem:[#allocation5 + $0x12] sm:$0x1] }
 0x387   : > { %v3084_v9 = vsel %vm9699_vm2, %v3081_v47, %v3083_v54  ;;  %v8326_v54 = vld [vmem:[%s10588_s5 + $0x1c8] sm:$0xff]  }
 0x388   : > { %v3130_v60 = vpop.permute.xlu0 %3129  ;;  %3085 = vst [vmem:[#allocation5 + $0x9] sm:$0x1] %v3084_v9  ;;  %v4644_v6 = vrot.slane %v4622_v39, %v9453_v11  ;;  %v4623_v21 = vcombine.high %v9723_v44, %v9723_v44  ;;  %v4652_v61 = vcombine.high %v4630_v52, %v4630_v52  ;;  %v8325_v39 = vld [vmem:[%s10588_s5 + $0x108] sm:$0xff]  }
 0x389   : > { %v3133_v36 = vsel %vm9699_vm2, %v3130_v60, %v3132_v38  ;;  %v8328_v38 = vld [vmem:[%s10588_s5 + $0x140] sm:$0xff]   ;;  %v3543_v60 = vld [vmem:[#allocation5 + $0x13] sm:$0x1] }
 0x38a   : > { %3134 = vst [vmem:[#allocation5 + $0xa] sm:$0x1] %v3133_v36  ;;  %6403 = vmatprep.mubr.bf16.mxu1 %v4644_v6  ;;  %v4654_v49 = vcombine.high %v4644_v6, %v4644_v6  ;;  %v4651_v50 = vrot.slane %v4623_v21, %v9453_v11  ;;  %v8327_v36 = vld [vmem:[%s10588_s5 + $0x188] sm:$0xff]  }
 0x38b   : > { %v3181_v30 = vpop.permute.xlu1 %3180  ;;  %6404 = vmatmul.mubr.bf16.vlgmr.msra.gmra.mxu1 %v4630_v52 }
 0x38c   : > { %v3184_v42 = vsel %vm9699_vm2, %v3181_v30, %v3183_v45  ;;  %v3212_v59 = vpop.permute.xlu0 %3211  ;;  %7794 = vmatpush3.bf16.msra.mxu1 %v8300_v23  ;;  %6443 = vmatprep.mubr.bf16.mxu0 %v4654_v49  ;;  %v4655_v63 = vcombine.high %v4651_v50, %v4651_v50  ;;  %v3574_v23 = vld [vmem:[#allocation5 + $0x14] sm:$0x1]  ;;  %v8330_v45 = vld [vmem:[%s10588_s5 + $0x1c0] sm:$0xff]  }
 0x38d   : > { %3185 = vst [vmem:[#allocation5 + $0xb] sm:$0x1] %v3184_v42  ;;  %v3215_v62 = vsel %vm9699_vm2, %v3212_v59, %v3214_v48  ;;  %6483 = vmatprep.mubr.bf16.mxu1 %v4651_v50  ;;  %6444 = vmatmul.mubr.bf16.vlgmr.msra.gmra.mxu0 %v4652_v61  ;;  %v8329_v49 = vld [vmem:[%s10588_s5 + $0x100] sm:$0xff]   ;;  %v3672_v61 = vld [vmem:[#allocation5 + $0x16] sm:$0x1] }
 0x38e   : > { %3216 = vst [vmem:[#allocation5 + $0xc] sm:$0x1] %v3215_v62  ;;  %7816 = vmatpush3.bf16.msra.mxu0 %v8303_v0  ;;  %7795 = vmatprep.subr.bf16.mxu1 %v8304_v53  ;;  %v8332_v0 = vld [vmem:[%s10588_s5 + $0x278] sm:$0xff]   ;;  %v3623_v53 = vld [vmem:[#allocation5 + $0x15] sm:$0x1]  ;;  %v8331_v48 = vld [vmem:[%s10588_s5 + $0x180] sm:$0xff]   ;;  %v4637_v62 = vrot.slane %v9723_v44, %v9453_v11 }
 0x38f   : > { %v3261_v2 = vpop.permute.xlu1 %3260  ;;  %6523 = vmatprep.mubr.bf16.mxu0 %v4655_v63  ;;  %7817 = vmatprep.subr.bf16.mxu0 %v8306_v51  ;;  %v8334_v63 = vld [vmem:[%s10588_s5 + $0x2f8] sm:$0xff]   ;;  %v8336_v44 = vld [vmem:[%s10588_s5 + $0x270] sm:$0xff]  }
 0x390   : > { %v3264_v3 = vsel %vm9699_vm2, %v3261_v2, %v3263_v32  ;;  %v3310_v12 = vpop.permute.xlu0 %3309  ;;  %7796 = vmatpush3.bf16.msra.mxu1 %v8305_v4  ;;  %v3723_v2 = vld [vmem:[#allocation5 + $0x17] sm:$0x1] }
 0x391   : > { %3265 = vst [vmem:[#allocation5 + $0xd] sm:$0x1] %v3264_v3  ;;  %v3313_v15 = vsel %vm9699_vm2, %v3310_v12, %v3312_v7  ;;  %7797 = vmatprep.subr.bf16.mxu1 %v8308_v18  ;;  %v8333_v18 = vld [vmem:[%s10588_s5 + $0x238] sm:$0xff]   ;;  %v4653_v12 = vcombine.high %v4637_v62, %v4637_v62 }
 0x392   : > { %3314 = vst [vmem:[#allocation5 + $0xe] sm:$0x1] %v3313_v15  ;;  %7818 = vmatpush3.bf16.msra.mxu0 %v8307_v33  ;;  %v8335_v3 = vld [vmem:[%s10588_s5 + $0x2b8] sm:$0xff]  }
 0x393   : > { %v3361_v14 = vpop.permute.xlu1 %3360  ;;  %7819 = vmatprep.subr.bf16.mxu0 %v8310_v13  ;;  %v8338_v13 = vld [vmem:[%s10588_s5 + $0x2f0] sm:$0xff]  }
 0x394   : > { %v3364_v19 = vsel %vm9699_vm2, %v3361_v14, %v3363_v29  ;;  %7798 = vmatpush3.bf16.msra.mxu1 %v8309_v55  ;;  %v8337_v55 = vld [vmem:[%s10588_s5 + $0x230] sm:$0xff]   ;;  %v8342_v14 = vld [vmem:[%s10588_s5 + $0x2e8] sm:$0xff]  }
 0x395   : > { %3365 = vst [vmem:[#allocation5 + $0xf] sm:$0x1] %v3364_v19  ;;  %7799 = vmatprep.subr.bf16.mxu1 %v8312_v22  ;;  %v8340_v22 = vld [vmem:[%s10588_s5 + $0x268] sm:$0xff]   ;;  %v8339_v29 = vld [vmem:[%s10588_s5 + $0x2b0] sm:$0xff]   ;;  %v3754_v19 = vld [vmem:[#allocation5 + $0x18] sm:$0x1] }
 0x396   : > { %7820 = vmatpush3.bf16.msra.mxu0 %v8311_v17  ;;  %v8341_v17 = vld [vmem:[%s10588_s5 + $0x228] sm:$0xff]  }
 0x397   : > { %7821 = vmatprep.subr.bf16.mxu0 %v8314_v56 }
 0x398   : > { %7800 = vmatpush3.bf16.msra.mxu1 %v8313_v24  ;;  %v8344_v24 = vld [vmem:[%s10588_s5 + $0x260] sm:$0xff]  }
 0x399   : > { %7801 = vmatprep.subr.bf16.mxu1 %v8316_v26 }
 0x39a   : > { %7822 = vmatpush3.bf16.msra.mxu0 %v8315_v46  ;;  %v3392_v35 = vpop.permute.xlu0 %3391  ;;  %v8343_v46 = vld [vmem:[%s10588_s5 + $0x2a8] sm:$0xff]  }
 0x39b   : > { %7823 = vmatprep.subr.bf16.mxu0 %v8318_v27  ;;  %v3395_v20 = vsel %vm9699_vm2, %v3392_v35, %v3394_v5  ;;  %v8346_v27 = vld [vmem:[%s10588_s5 + $0x2e0] sm:$0xff]   ;;  %v3852_v35 = vld [vmem:[#allocation5 + $0x1a] sm:$0x1] }
 0x39c   : > { %7802 = vmatpush3.bf16.msra.mxu1 %v8317_v31  ;;  %3396 = vst [vmem:[#allocation5 + $0x10] sm:$0x1] %v3395_v20  ;;  %v9812_v25 = vld [vmem:[#allocation5 + $0x8] sm:$0xff]  ;;  %v3803_v31 = vld [vmem:[#allocation5 + $0x19] sm:$0x1] }
 0x39d   : > { %7803 = vmatprep.subr.bf16.mxu1 %v8320_v43  ;;  %v3441_v16 = vpop.permute.xlu1 %3440  ;;  %v9829_v9 = vrot.slane %v9812_v25, %v9453_v11  ;;  %v8348_v20 = vld [vmem:[%s10588_s5 + $0x258] sm:$0xff]  }
 0x39e   : > { %7824 = vmatpush3.bf16.msra.mxu0 %v8319_v58  ;;  %v3444_v34 = vsel %vm9699_vm2, %v3441_v16, %v3443_v57  ;;  %v8345_v58 = vld [vmem:[%s10588_s5 + $0x220] sm:$0xff]   ;;  %v8350_v57 = vld [vmem:[%s10588_s5 + $0x2d8] sm:$0xff]  }
 0x39f   : > { %v3490_v1 = vpop.permute.xlu0 %3489  ;;  %7825 = vmatprep.subr.bf16.mxu0 %v8322_v40  ;;  %3445 = vst [vmem:[#allocation5 + $0x11] sm:$0x1] %v3444_v34  ;;  %v4671_v50 = vcombine.high %v9829_v9, %v9829_v9  ;;  %v3903_v16 = vld [vmem:[#allocation5 + $0x1b] sm:$0x1] }
 0x3a0   : > { %7804 = vmatpush3.bf16.msra.mxu1 %v8321_v37  ;;  %v3493_v47 = vsel %vm9699_vm2, %v3490_v1, %v3492_v28  ;;  %v8349_v34 = vld [vmem:[%s10588_s5 + $0x218] sm:$0xff]  }
 0x3a1   : > { %3494 = vst [vmem:[#allocation5 + $0x12] sm:$0x1] %v3493_v47  ;;  %7805 = vmatprep.subr.bf16.mxu1 %v8324_v41  ;;  %v4693_v32 = vrot.slane %v4671_v50, %v9453_v11  ;;  %v8347_v41 = vld [vmem:[%s10588_s5 + $0x2a0] sm:$0xff]   ;;  %v3934_v1 = vld [vmem:[#allocation5 + $0x1c] sm:$0x1]  ;;  %v8352_v47 = vld [vmem:[%s10588_s5 + $0x250] sm:$0xff]  }
 0x3a2   : > { %7826 = vmatpush3.bf16.msra.mxu0 %v8323_v8  ;;  %v3541_v52 = vpop.permute.xlu1 %3540 }
 0x3a3   : > { %v3544_v6 = vsel %vm9699_vm2, %v3541_v52, %v3543_v60  ;;  %v3572_v21 = vpop.permute.xlu0 %3571  ;;  %7827 = vmatprep.subr.bf16.mxu0 %v8326_v54  ;;  %v4703_v15 = vcombine.high %v4693_v32, %v4693_v32  ;;  %v8354_v60 = vld [vmem:[%s10588_s5 + $0x2d0] sm:$0xff]   ;;  %v3983_v52 = vld [vmem:[#allocation5 + $0x1d] sm:$0x1] }
 0x3a4   : > { %3545 = vst [vmem:[#allocation5 + $0x13] sm:$0x1] %v3544_v6  ;;  %7806 = vmatpush3.bf16.msra.mxu1 %v8325_v39  ;;  %v3575_v30 = vsel %vm9699_vm2, %v3572_v21, %v3574_v23  ;;  %v8353_v6 = vld [vmem:[%s10588_s5 + $0x210] sm:$0xff]   ;;  %v4656_v23 = vcombine.high %v9812_v25, %v9812_v25  ;;  %v8358_v25 = vld [vmem:[%s10588_s5 + $0x2c8] sm:$0xff]  }
 0x3a5   : > { %3576 = vst [vmem:[#allocation5 + $0x14] sm:$0x1] %v3575_v30  ;;  %7807 = vmatprep.subr.bf16.mxu1 %v8328_v38  ;;  %v8351_v38 = vld [vmem:[%s10588_s5 + $0x298] sm:$0xff]  }
 0x3a6   : > { %7828 = vmatpush3.bf16.msra.mxu0 %v8327_v36  ;;  %v3621_v42 = vpop.permute.xlu1 %3620 }
 0x3a7   : > { %v3624_v59 = vsel %vm9699_vm2, %v3621_v42, %v3623_v53  ;;  %v3670_v51 = vpop.permute.xlu0 %3669  ;;  %7829 = vmatprep.subr.bf16.mxu0 %v8330_v45  ;;  %v4032_v45 = vld [vmem:[#allocation5 + $0x1e] sm:$0x1]  ;;  %v4083_v53 = vld [vmem:[#allocation5 + $0x1f] sm:$0x1] }
 0x3a8   : > { %3625 = vst [vmem:[#allocation5 + $0x15] sm:$0x1] %v3624_v59  ;;  %7808 = vmatpush3.bf16.msra.mxu1 %v8329_v49  ;;  %v3673_v4 = vsel %vm9699_vm2, %v3670_v51, %v3672_v61  ;;  %v8356_v49 = vld [vmem:[%s10588_s5 + $0x248] sm:$0xff]   ;;  %v9959_v59 = vrot.slane %v4656_v23, %v9453_v11  ;;  %v8360_v51 = vld [vmem:[%s10588_s5 + $0x240] sm:$0xff]   ;;  %v8401_v23 = vld [vmem:[%s10588_s5 + $0x470] sm:$0xff]  }
 0x3a9   : > { %3674 = vst [vmem:[#allocation5 + $0x16] sm:$0x1] %v3673_v4  ;;  %7837 = vmatprep.subr.bf16.mxu1 %v8332_v0  ;;  %v8355_v0 = vld [vmem:[%s10588_s5 + $0x290] sm:$0xff]  }
 0x3aa   : > { %7830 = vmatpush3.bf16.msra.mxu0 %v8331_v48  ;;  %v3721_v33 = vpop.permute.xlu1 %3720  ;;  %v8357_v48 = vld [vmem:[%s10588_s5 + $0x208] sm:$0xff]   ;;  %v4672_v4 = vcombine.high %v9959_v59, %v9959_v59 }
 0x3ab   : > { %v3724_v7 = vsel %vm9699_vm2, %v3721_v33, %v3723_v2  ;;  %6484 = vmatmul.mubr.bf16.vlgmr.msra.gmra.mxu1 %v4637_v62  ;;  %7859 = vmatprep.subr.bf16.mxu0 %v8334_v63  ;;  %v8359_v62 = vld [vmem:[%s10588_s5 + $0x288] sm:$0xff]   ;;  %v8362_v63 = vld [vmem:[%s10588_s5 + $0x2c0] sm:$0xff]   ;;  %v8367_v2 = vld [vmem:[%s10588_s5 + $0x3f8] sm:$0xff]  }
 0x3ac   : > { %3725 = vst [vmem:[#allocation5 + $0x17] sm:$0x1] %v3724_v7  ;;  %7838 = vmatpush3.bf16.msra.mxu1 %v8333_v18  ;;  %6563 = vmatprep.mubr.bf16.mxu1 %v4693_v32  ;;  %v8364_v18 = vld [vmem:[%s10588_s5 + $0x378] sm:$0xff]   ;;  %v8363_v32 = vld [vmem:[%s10588_s5 + $0x280] sm:$0xff]   ;;  %v8369_v7 = vld [vmem:[%s10588_s5 + $0x370] sm:$0xff]  }
 0x3ad   : > { %6524 = vmatmul.mubr.bf16.vlgmr.msra.gmra.mxu0 %v4653_v12  ;;  %7839 = vmatprep.subr.bf16.mxu1 %v8336_v44  ;;  %v4679_v44 = vrot.slane %v9829_v9, %v9453_v11  ;;  %v8365_v33 = vld [vmem:[%s10588_s5 + $0x338] sm:$0xff]  }
 0x3ae   : > { %7860 = vmatpush3.bf16.msra.mxu0 %v8335_v3  ;;  %6603 = vmatprep.mubr.bf16.mxu0 %v4703_v15  ;;  %v4700_v3 = vrot.slane %v4672_v4, %v9453_v11  ;;  %v8368_v9 = vld [vmem:[%s10588_s5 + $0x3b8] sm:$0xff]  }
 0x3af   : > { %7861 = vmatprep.subr.bf16.mxu0 %v8338_v13  ;;  %v3752_v56 = vpop.permute.xlu0 %3751  ;;  %v4701_v12 = vcombine.high %v4679_v44, %v4679_v44  ;;  %v8371_v13 = vld [vmem:[%s10588_s5 + $0x3f0] sm:$0xff]   ;;  %v8414_v4 = vld [vmem:[%s10588_s5 + $0x418] sm:$0xff]  }
 0x3b0   : > { %7840 = vmatpush3.bf16.msra.mxu1 %v8337_v55  ;;  %v3755_v26 = vsel %vm9699_vm2, %v3752_v56, %v3754_v19  ;;  %v4704_v15 = vcombine.high %v4700_v3, %v4700_v3  ;;  %v8370_v55 = vld [vmem:[%s10588_s5 + $0x330] sm:$0xff]   ;;  %v8377_v19 = vld [vmem:[%s10588_s5 + $0x360] sm:$0xff]   ;;  %v8376_v56 = vld [vmem:[%s10588_s5 + $0x3a8] sm:$0xff]  }
 0x3b1   : > { %7841 = vmatprep.subr.bf16.mxu1 %v8340_v22  ;;  %3756 = vst [vmem:[#allocation5 + $0x18] sm:$0x1] %v3755_v26  ;;  %v8373_v22 = vld [vmem:[%s10588_s5 + $0x368] sm:$0xff]   ;;  %v8378_v26 = vld [vmem:[%s10588_s5 + $0x320] sm:$0xff]  }
 0x3b2   : > { %7862 = vmatpush3.bf16.msra.mxu0 %v8339_v29  ;;  %v3801_v43 = vpop.permute.xlu1 %3800  ;;  %v8372_v29 = vld [vmem:[%s10588_s5 + $0x3b0] sm:$0xff]  }
 0x3b3   : > { %7863 = vmatprep.subr.bf16.mxu0 %v8342_v14  ;;  %v3804_v5 = vsel %vm9699_vm2, %v3801_v43, %v3803_v31  ;;  %v3850_v40 = vpop.permute.xlu0 %3849  ;;  %v8375_v14 = vld [vmem:[%s10588_s5 + $0x3e8] sm:$0xff]   ;;  %v8383_v31 = vld [vmem:[%s10588_s5 + $0x3d8] sm:$0xff]  }
 0x3b4   : > { %7842 = vmatpush3.bf16.msra.mxu1 %v8341_v17  ;;  %3805 = vst [vmem:[#allocation5 + $0x19] sm:$0x1] %v3804_v5  ;;  %v3853_v37 = vsel %vm9699_vm2, %v3850_v40, %v3852_v35  ;;  %v8374_v17 = vld [vmem:[%s10588_s5 + $0x328] sm:$0xff]   ;;  %v8382_v43 = vld [vmem:[%s10588_s5 + $0x318] sm:$0xff]   ;;  %v8387_v35 = vld [vmem:[%s10588_s5 + $0x3d0] sm:$0xff]  }
 0x3b5   : > { %7843 = vmatprep.subr.bf16.mxu1 %v8344_v24  ;;  %3854 = vst [vmem:[#allocation5 + $0x1a] sm:$0x1] %v3853_v37  ;;  %v8379_v24 = vld [vmem:[%s10588_s5 + $0x3e0] sm:$0xff]   ;;  %v8384_v5 = vld [vmem:[%s10588_s5 + $0x398] sm:$0xff]   ;;  %v8386_v40 = vld [vmem:[%s10588_s5 + $0x310] sm:$0xff]  }
 0x3b6   : > { %7864 = vmatpush3.bf16.msra.mxu0 %v8343_v46  ;;  %v8381_v46 = vld [vmem:[%s10588_s5 + $0x358] sm:$0xff]   ;;  %v10055_v37 = vld [vmem:[#allocation5 + $0x10] sm:$0xff] }
 0x3b7   : > { %7865 = vmatprep.subr.bf16.mxu0 %v8346_v27  ;;  %v3901_v8 = vpop.permute.xlu1 %3900  ;;  %v3932_v54 = vpop.permute.xlu0 %3931  ;;  %v8380_v27 = vld [vmem:[%s10588_s5 + $0x3a0] sm:$0xff]  }
 0x3b8   : > { %7844 = vmatpush3.bf16.msra.mxu1 %v8345_v58  ;;  %v3904_v28 = vsel %vm9699_vm2, %v3901_v8, %v3903_v16  ;;  %v3935_v39 = vsel %vm9699_vm2, %v3932_v54, %v3934_v1  ;;  %v8385_v58 = vld [vmem:[%s10588_s5 + $0x350] sm:$0xff]   ;;  %v8390_v16 = vld [vmem:[%s10588_s5 + $0x308] sm:$0xff]   ;;  %v10068_v8 = vrot.slane %v10055_v37, %v9453_v11  ;;  %v8395_v1 = vld [vmem:[%s10588_s5 + $0x3c0] sm:$0xff]  }
 0x3b9   : > { %7845 = vmatprep.subr.bf16.mxu1 %v8348_v20  ;;  %3905 = vst [vmem:[#allocation5 + $0x1b] sm:$0x1] %v3904_v28  ;;  %3936 = vst [vmem:[#allocation5 + $0x1c] sm:$0x1] %v3935_v39  ;;  %v8389_v20 = vld [vmem:[%s10588_s5 + $0x348] sm:$0xff]   ;;  %v8394_v54 = vld [vmem:[%s10588_s5 + $0x300] sm:$0xff]  }
 0x3ba   : > { %7866 = vmatpush3.bf16.msra.mxu0 %v8347_v41  ;;  %v8388_v41 = vld [vmem:[%s10588_s5 + $0x390] sm:$0xff]   ;;  %v8392_v28 = vld [vmem:[%s10588_s5 + $0x388] sm:$0xff]   ;;  %v8397_v39 = vld [vmem:[%s10588_s5 + $0x478] sm:$0xff]  }
 0x3bb   : > { %7867 = vmatprep.subr.bf16.mxu0 %v8350_v57  ;;  %v3981_v36 = vpop.permute.xlu1 %3980  ;;  %v4030_v30 = vpop.permute.xlu0 %4029  ;;  %v8391_v57 = vld [vmem:[%s10588_s5 + $0x3c8] sm:$0xff]  }
 0x3bc   : > { %7846 = vmatpush3.bf16.msra.mxu1 %v8349_v34  ;;  %v3984_v21 = vsel %vm9699_vm2, %v3981_v36, %v3983_v52  ;;  %v4033_v50 = vsel %vm9699_vm2, %v4030_v30, %v4032_v45  ;;  %v8393_v34 = vld [vmem:[%s10588_s5 + $0x340] sm:$0xff]   ;;  %v8399_v52 = vld [vmem:[%s10588_s5 + $0x4f8] sm:$0xff]   ;;  %v8403_v30 = vld [vmem:[%s10588_s5 + $0x4f0] sm:$0xff]  }
 0x3bd   : > { %7847 = vmatprep.subr.bf16.mxu1 %v8352_v47  ;;  %3985 = vst [vmem:[#allocation5 + $0x1d] sm:$0x1] %v3984_v21  ;;  %4034 = vst [vmem:[#allocation5 + $0x1e] sm:$0x1] %v4033_v50  ;;  %v4720_v47 = vcombine.high %v10068_v8, %v10068_v8  ;;  %v8398_v36 = vld [vmem:[%s10588_s5 + $0x438] sm:$0xff]   ;;  %v8402_v50 = vld [vmem:[%s10588_s5 + $0x430] sm:$0xff]  }
 0x3be   : > { %7868 = vmatpush3.bf16.msra.mxu0 %v8351_v38  ;;  %v8396_v38 = vld [vmem:[%s10588_s5 + $0x380] sm:$0xff]   ;;  %v8400_v21 = vld [vmem:[%s10588_s5 + $0x4b8] sm:$0xff]  }
 0x3bf   : > { %7869 = vmatprep.subr.bf16.mxu0 %v8354_v60  ;;  %v4081_v42 = vpop.permute.xlu1 %4080  ;;  %v4686_v60 = vrot.slane %v9959_v59, %v9453_v11  ;;  %v8408_v59 = vld [vmem:[%s10588_s5 + $0x4a8] sm:$0xff]  }
 0x3c0   : > { %7848 = vmatpush3.bf16.msra.mxu1 %v8353_v6  ;;  %v4084_v61 = vsel %vm9699_vm2, %v4081_v42, %v4083_v53  ;;  %v4742_v6 = vrot.slane %v4720_v47, %v9453_v11  ;;  %v8407_v53 = vld [vmem:[%s10588_s5 + $0x4e8] sm:$0xff]   ;;  %v8447_v47 = vld [vmem:[%s10588_s5 + $0x518] sm:$0xff]  }
 0x3c1   : > { %7849 = vmatprep.subr.bf16.mxu1 %v8356_v49  ;;  %4085 = vst [vmem:[#allocation5 + $0x1f] sm:$0x1] %v4084_v61  ;;  %v4702_v45 = vcombine.high %v4686_v60, %v4686_v60  ;;  %v8406_v42 = vld [vmem:[%s10588_s5 + $0x428] sm:$0xff]   ;;  %v8411_v61 = vld [vmem:[%s10588_s5 + $0x4e0] sm:$0xff]  }
 0x3c2   : > { %7870 = vmatpush3.bf16.msra.mxu0 %v8355_v0  ;;  %v4752_v49 = vcombine.high %v4742_v6, %v4742_v6  ;;  %v8405_v0 = vld [vmem:[%s10588_s5 + $0x468] sm:$0xff]  }
 0x3c3   : > { %7871 = vmatprep.subr.bf16.mxu0 %v8358_v25  ;;  %v8404_v25 = vld [vmem:[%s10588_s5 + $0x4b0] sm:$0xff]  }
 0x3c4   : > { %7850 = vmatpush3.bf16.msra.mxu1 %v8357_v48  ;;  %v8409_v48 = vld [vmem:[%s10588_s5 + $0x460] sm:$0xff]  }
 0x3c5   : > { %7851 = vmatprep.subr.bf16.mxu1 %v8360_v51  ;;  %v8410_v51 = vld [vmem:[%s10588_s5 + $0x420] sm:$0xff]  }
 0x3c6   : > { %7872 = vmatpush3.bf16.msra.mxu0 %v8359_v62  ;;  %v8413_v62 = vld [vmem:[%s10588_s5 + $0x458] sm:$0xff]  }
 0x3c7   : > { %7873 = vmatprep.subr.bf16.mxu0 %v8362_v63  ;;  %v8412_v63 = vld [vmem:[%s10588_s5 + $0x4a0] sm:$0xff]  }
 0x3c8   : > { %7852 = vmatpush3.bf16.msra.mxu1 %v8361_v10  ;;  %v8415_v10 = vld [vmem:[%s10588_s5 + $0x4d8] sm:$0xff]  }
 0x3c9   : > { %7881 = vmatprep.subr.bf16.mxu1 %v8364_v18  ;;  %v8417_v18 = vld [vmem:[%s10588_s5 + $0x450] sm:$0xff]  }
 0x3ca   : > { %7874 = vmatpush3.bf16.msra.mxu0 %v8363_v32  ;;  %v8416_v32 = vld [vmem:[%s10588_s5 + $0x498] sm:$0xff]  }
 0x3cb   : > { %6564 = vmatmul.mubr.bf16.vlgmr.msra.gmra.mxu1 %v4679_v44  ;;  %7903 = vmatprep.subr.bf16.mxu0 %v8367_v2  ;;  %v8419_v44 = vld [vmem:[%s10588_s5 + $0x4d0] sm:$0xff]  }
 0x3cc   : > { %7882 = vmatpush3.bf16.msra.mxu1 %v8365_v33  ;;  %6643 = vmatprep.mubr.bf16.mxu1 %v4700_v3  ;;  %v8418_v2 = vld [vmem:[%s10588_s5 + $0x410] sm:$0xff]   ;;  %v4705_v33 = vcombine.high %v10055_v37, %v10055_v37  ;;  %v8421_v3 = vld [vmem:[%s10588_s5 + $0x448] sm:$0xff]  }
 0x3cd   : > { %6604 = vmatmul.mubr.bf16.vlgmr.msra.gmra.mxu0 %v4701_v12  ;;  %7883 = vmatprep.subr.bf16.mxu1 %v8369_v7  ;;  %v8420_v7 = vld [vmem:[%s10588_s5 + $0x490] sm:$0xff]   ;;  %v8422_v12 = vld [vmem:[%s10588_s5 + $0x408] sm:$0xff]  }
 0x3ce   : > { %7904 = vmatpush3.bf16.msra.mxu0 %v8368_v9  ;;  %6683 = vmatprep.mubr.bf16.mxu0 %v4704_v15  ;;  %v8423_v9 = vld [vmem:[%s10588_s5 + $0x4c8] sm:$0xff]   ;;  %v8425_v15 = vld [vmem:[%s10588_s5 + $0x440] sm:$0xff]  }
 0x3cf   : > { %7905 = vmatprep.subr.bf16.mxu0 %v8371_v13  ;;  %v10174_v13 = vrot.slane %v4705_v33, %v9453_v11  ;;  %v8440_v37 = vld [vmem:[%s10588_s5 + $0x5e8] sm:$0xff]   ;;  %v8469_v33 = vld [vmem:[%s10588_s5 + $0x6b0] sm:$0xff]  }
 0x3d0   : > { %7884 = vmatpush3.bf16.msra.mxu1 %v8370_v55  ;;  %v8424_v55 = vld [vmem:[%s10588_s5 + $0x488] sm:$0xff]  }
 0x3d1   : > { %7885 = vmatprep.subr.bf16.mxu1 %v8373_v22  ;;  %v8427_v22 = vld [vmem:[%s10588_s5 + $0x4c0] sm:$0xff]  }
 0x3d2   : > { %7906 = vmatpush3.bf16.msra.mxu0 %v8372_v29  ;;  %v8426_v29 = vld [vmem:[%s10588_s5 + $0x400] sm:$0xff]  }
 0x3d3   : > { %7907 = vmatprep.subr.bf16.mxu0 %v8375_v14  ;;  %v4721_v14 = vcombine.high %v10174_v13, %v10174_v13 }
 0x3d4   : > { %7886 = vmatpush3.bf16.msra.mxu1 %v8374_v17  ;;  %v8429_v17 = vld [vmem:[%s10588_s5 + $0x578] sm:$0xff]  }
 0x3d5   : > { %7887 = vmatprep.subr.bf16.mxu1 %v8377_v19  ;;  %v8428_v19 = vld [vmem:[%s10588_s5 + $0x480] sm:$0xff]  }
 0x3d6   : > { %7908 = vmatpush3.bf16.msra.mxu0 %v8376_v56  ;;  %v4728_v56 = vrot.slane %v10068_v8, %v9453_v11  ;;  %v8444_v8 = vld [vmem:[%s10588_s5 + $0x5e0] sm:$0xff]  }
 0x3d7   : > { %7909 = vmatprep.subr.bf16.mxu0 %v8379_v24  ;;  %v8432_v24 = vld [vmem:[%s10588_s5 + $0x5f8] sm:$0xff]  }
 0x3d8   : > { %7888 = vmatpush3.bf16.msra.mxu1 %v8378_v26  ;;  %v8430_v26 = vld [vmem:[%s10588_s5 + $0x538] sm:$0xff]  }
 0x3d9   : > { %7889 = vmatprep.subr.bf16.mxu1 %v8381_v46  ;;  %v4749_v46 = vrot.slane %v4721_v14, %v9453_v11  ;;  %v8479_v14 = vld [vmem:[%s10588_s5 + $0x618] sm:$0xff]  }
 0x3da   : > { %7910 = vmatpush3.bf16.msra.mxu0 %v8380_v27  ;;  %v8434_v27 = vld [vmem:[%s10588_s5 + $0x570] sm:$0xff]  }
 0x3db   : > { %7911 = vmatprep.subr.bf16.mxu0 %v8383_v31  ;;  %v8433_v31 = vld [vmem:[%s10588_s5 + $0x5b8] sm:$0xff]  }
 0x3dc   : > { %7890 = vmatpush3.bf16.msra.mxu1 %v8382_v43  ;;  %v4750_v43 = vcombine.high %v4728_v56, %v4728_v56 }
 0x3dd   : > { %7891 = vmatprep.subr.bf16.mxu1 %v8385_v58  ;;  %v8436_v58 = vld [vmem:[%s10588_s5 + $0x5f0] sm:$0xff]  }
 0x3de   : > { %7912 = vmatpush3.bf16.msra.mxu0 %v8384_v5  ;;  %v4753_v5 = vcombine.high %v4749_v46, %v4749_v46 }
 0x3df   : > { %7913 = vmatprep.subr.bf16.mxu0 %v8387_v35  ;;  %v8435_v35 = vld [vmem:[%s10588_s5 + $0x530] sm:$0xff]  }
 0x3e0   : > { %7892 = vmatpush3.bf16.msra.mxu1 %v8386_v40  ;;  %v8438_v40 = vld [vmem:[%s10588_s5 + $0x568] sm:$0xff]  }
 0x3e1   : > { %7893 = vmatprep.subr.bf16.mxu1 %v8389_v20  ;;  %v8437_v20 = vld [vmem:[%s10588_s5 + $0x5b0] sm:$0xff]  }
 0x3e2   : > { %7914 = vmatpush3.bf16.msra.mxu0 %v8388_v41  ;;  %v8439_v41 = vld [vmem:[%s10588_s5 + $0x528] sm:$0xff]  }
 0x3e3   : > { %7915 = vmatprep.subr.bf16.mxu0 %v8391_v57  ;;  %v8442_v57 = vld [vmem:[%s10588_s5 + $0x560] sm:$0xff]  }
 0x3e4   : > { %7894 = vmatpush3.bf16.msra.mxu1 %v8390_v16  ;;  %v8441_v16 = vld [vmem:[%s10588_s5 + $0x5a8] sm:$0xff]  }
 0x3e5   : > { %7895 = vmatprep.subr.bf16.mxu1 %v8393_v34  ;;  %v8443_v34 = vld [vmem:[%s10588_s5 + $0x520] sm:$0xff]  }
 0x3e6   : > { %7916 = vmatpush3.bf16.msra.mxu0 %v8392_v28  ;;  %v8446_v28 = vld [vmem:[%s10588_s5 + $0x558] sm:$0xff]  }
 0x3e7   : > { %7917 = vmatprep.subr.bf16.mxu0 %v8395_v1  ;;  %v8445_v1 = vld [vmem:[%s10588_s5 + $0x5a0] sm:$0xff]  }
 0x3e8   : > { %7896 = vmatpush3.bf16.msra.mxu1 %v8394_v54  ;;  %v8448_v54 = vld [vmem:[%s10588_s5 + $0x5d8] sm:$0xff]  }
 0x3e9   : > { %7925 = vmatprep.subr.bf16.mxu1 %v8397_v39  ;;  %v8450_v39 = vld [vmem:[%s10588_s5 + $0x550] sm:$0xff]  }
 0x3ea   : > { %7918 = vmatpush3.bf16.msra.mxu0 %v8396_v38  ;;  %v8449_v38 = vld [vmem:[%s10588_s5 + $0x598] sm:$0xff]  }
 0x3eb   : > { %6644 = vmatmul.mubr.bf16.vlgmr.msra.gmra.mxu1 %v4686_v60  ;;  %7947 = vmatprep.subr.bf16.mxu0 %v8399_v52  ;;  %v8452_v60 = vld [vmem:[%s10588_s5 + $0x5d0] sm:$0xff]  }
 0x3ec   : > { %7926 = vmatpush3.bf16.msra.mxu1 %v8398_v36  ;;  %6723 = vmatprep.mubr.bf16.mxu1 %v4742_v6  ;;  %v8451_v52 = vld [vmem:[%s10588_s5 + $0x510] sm:$0xff]   ;;  %v8454_v36 = vld [vmem:[%s10588_s5 + $0x548] sm:$0xff]   ;;  %v10268_v6 = vld [vmem:[#allocation5 + $0x18] sm:$0xff] }
 0x3ed   : > { %6684 = vmatmul.mubr.bf16.vlgmr.msra.gmra.mxu0 %v4702_v45  ;;  %7927 = vmatprep.subr.bf16.mxu1 %v8401_v23  ;;  %v8453_v23 = vld [vmem:[%s10588_s5 + $0x590] sm:$0xff]   ;;  %v8455_v45 = vld [vmem:[%s10588_s5 + $0x508] sm:$0xff]  }
 0x3ee   : > { %7948 = vmatpush3.bf16.msra.mxu0 %v8400_v21  ;;  %6763 = vmatprep.mubr.bf16.mxu0 %v4752_v49  ;;  %v8456_v21 = vld [vmem:[%s10588_s5 + $0x5c8] sm:$0xff]   ;;  %v8458_v49 = vld [vmem:[%s10588_s5 + $0x540] sm:$0xff]  }
 0x3ef   : > { %7949 = vmatprep.subr.bf16.mxu0 %v8403_v30  ;;  %v10281_v30 = vrot.slane %v10268_v6, %v9453_v11 }
 0x3f0   : > { %7928 = vmatpush3.bf16.msra.mxu1 %v8402_v50  ;;  %v8457_v50 = vld [vmem:[%s10588_s5 + $0x588] sm:$0xff]  }
 0x3f1   : > { %7929 = vmatprep.subr.bf16.mxu1 %v8405_v0  ;;  %v8460_v0 = vld [vmem:[%s10588_s5 + $0x5c0] sm:$0xff]  }
 0x3f2   : > { %7950 = vmatpush3.bf16.msra.mxu0 %v8404_v25  ;;  %v8459_v25 = vld [vmem:[%s10588_s5 + $0x500] sm:$0xff]  }
 0x3f3   : > { %7951 = vmatprep.subr.bf16.mxu0 %v8407_v53  ;;  %v4769_v53 = vcombine.high %v10281_v30, %v10281_v30 }
 0x3f4   : > { %7930 = vmatpush3.bf16.msra.mxu1 %v8406_v42  ;;  %v8462_v42 = vld [vmem:[%s10588_s5 + $0x678] sm:$0xff]  }
 0x3f5   : > { %7931 = vmatprep.subr.bf16.mxu1 %v8409_v48  ;;  %v8461_v48 = vld [vmem:[%s10588_s5 + $0x580] sm:$0xff]  }
 0x3f6   : > { %7952 = vmatpush3.bf16.msra.mxu0 %v8408_v59  ;;  %v4735_v59 = vrot.slane %v10174_v13, %v9453_v11  ;;  %v8476_v13 = vld [vmem:[%s10588_s5 + $0x6e0] sm:$0xff]  }
 0x3f7   : > { %7953 = vmatprep.subr.bf16.mxu0 %v8411_v61  ;;  %v8464_v61 = vld [vmem:[%s10588_s5 + $0x6f8] sm:$0xff]  }
 0x3f8   : > { %7932 = vmatpush3.bf16.msra.mxu1 %v8410_v51  ;;  %v8463_v51 = vld [vmem:[%s10588_s5 + $0x638] sm:$0xff]  }
 0x3f9   : > { %7933 = vmatprep.subr.bf16.mxu1 %v8413_v62  ;;  %v4791_v62 = vrot.slane %v4769_v53, %v9453_v11 }
 0x3fa   : > { %7954 = vmatpush3.bf16.msra.mxu0 %v8412_v63  ;;  %v8466_v63 = vld [vmem:[%s10588_s5 + $0x670] sm:$0xff]  }
 0x3fb   : > { %7955 = vmatprep.subr.bf16.mxu0 %v8415_v10  ;;  %v8465_v10 = vld [vmem:[%s10588_s5 + $0x6b8] sm:$0xff]  }
 0x3fc   : > { %7934 = vmatpush3.bf16.msra.mxu1 %v8414_v4  ;;  %v4751_v4 = vcombine.high %v4735_v59, %v4735_v59 }
 0x3fd   : > { %7935 = vmatprep.subr.bf16.mxu1 %v8417_v18  ;;  %v8468_v18 = vld [vmem:[%s10588_s5 + $0x6f0] sm:$0xff]  }
 0x3fe   : > { %7956 = vmatpush3.bf16.msra.mxu0 %v8416_v32  ;;  %v4801_v32 = vcombine.high %v4791_v62, %v4791_v62 }
 0x3ff   : > { %7957 = vmatprep.subr.bf16.mxu0 %v8419_v44  ;;  %v8467_v44 = vld [vmem:[%s10588_s5 + $0x630] sm:$0xff]  }
 0x400   : > { %7936 = vmatpush3.bf16.msra.mxu1 %v8418_v2  ;;  %v8470_v2 = vld [vmem:[%s10588_s5 + $0x668] sm:$0xff]  }
 0x401   : > { %7937 = vmatprep.subr.bf16.mxu1 %v8421_v3  ;;  %v8472_v3 = vld [vmem:[%s10588_s5 + $0x6e8] sm:$0xff]  }
 0x402   : > { %7958 = vmatpush3.bf16.msra.mxu0 %v8420_v7  ;;  %v8471_v7 = vld [vmem:[%s10588_s5 + $0x628] sm:$0xff]  }
 0x403   : > { %7959 = vmatprep.subr.bf16.mxu0 %v8423_v9  ;;  %v8474_v9 = vld [vmem:[%s10588_s5 + $0x660] sm:$0xff]  }
 0x404   : > { %7938 = vmatpush3.bf16.msra.mxu1 %v8422_v12  ;;  %v8473_v12 = vld [vmem:[%s10588_s5 + $0x6a8] sm:$0xff]  }
 0x405   : > { %7939 = vmatprep.subr.bf16.mxu1 %v8425_v15  ;;  %v8475_v15 = vld [vmem:[%s10588_s5 + $0x620] sm:$0xff]  }
 0x406   : > { %7960 = vmatpush3.bf16.msra.mxu0 %v8424_v55  ;;  %v8478_v55 = vld [vmem:[%s10588_s5 + $0x658] sm:$0xff]  }
 0x407   : > { %7961 = vmatprep.subr.bf16.mxu0 %v8427_v22  ;;  %v8477_v22 = vld [vmem:[%s10588_s5 + $0x6a0] sm:$0xff]  }
 0x408   : > { %7940 = vmatpush3.bf16.msra.mxu1 %v8426_v29  ;;  %v8480_v29 = vld [vmem:[%s10588_s5 + $0x6d8] sm:$0xff]  }
 0x409   : > { %7969 = vmatprep.subr.bf16.mxu1 %v8429_v17  ;;  %v8482_v17 = vld [vmem:[%s10588_s5 + $0x650] sm:$0xff]  }
 0x40a   : > { %7962 = vmatpush3.bf16.msra.mxu0 %v8428_v19  ;;  %v8481_v19 = vld [vmem:[%s10588_s5 + $0x698] sm:$0xff]  }
 0x40b   : > { %6724 = vmatmul.mubr.bf16.vlgmr.msra.gmra.mxu1 %v4728_v56  ;;  %7991 = vmatprep.subr.bf16.mxu0 %v8432_v24  ;;  %v8484_v56 = vld [vmem:[%s10588_s5 + $0x6d0] sm:$0xff]  }
 0x40c   : > { %7970 = vmatpush3.bf16.msra.mxu1 %v8430_v26  ;;  %6803 = vmatprep.mubr.bf16.mxu1 %v4749_v46  ;;  %v8483_v24 = vld [vmem:[%s10588_s5 + $0x610] sm:$0xff]   ;;  %v4754_v26 = vcombine.high %v10268_v6, %v10268_v6  ;;  %v8486_v46 = vld [vmem:[%s10588_s5 + $0x648] sm:$0xff]  }
 0x40d   : > { %6764 = vmatmul.mubr.bf16.vlgmr.msra.gmra.mxu0 %v4750_v43  ;;  %7971 = vmatprep.subr.bf16.mxu1 %v8434_v27  ;;  %v8485_v27 = vld [vmem:[%s10588_s5 + $0x690] sm:$0xff]   ;;  %v8487_v43 = vld [vmem:[%s10588_s5 + $0x608] sm:$0xff]  }
 0x40e   : > { %7992 = vmatpush3.bf16.msra.mxu0 %v8433_v31  ;;  %6843 = vmatprep.mubr.bf16.mxu0 %v4753_v5  ;;  %v8488_v31 = vld [vmem:[%s10588_s5 + $0x6c8] sm:$0xff]   ;;  %v8490_v5 = vld [vmem:[%s10588_s5 + $0x640] sm:$0xff]  }
 0x40f   : > { %7993 = vmatprep.subr.bf16.mxu0 %v8436_v58  ;;  %v10387_v58 = vrot.slane %v4754_v26, %v9453_v11 }
 0x410   : > { %7972 = vmatpush3.bf16.msra.mxu1 %v8435_v35  ;;  %v8489_v35 = vld [vmem:[%s10588_s5 + $0x688] sm:$0xff]  }
 0x411   : > { %7973 = vmatprep.subr.bf16.mxu1 %v8438_v40  ;;  %v8492_v40 = vld [vmem:[%s10588_s5 + $0x6c0] sm:$0xff]  }
 0x412   : > { %7994 = vmatpush3.bf16.msra.mxu0 %v8437_v20  ;;  %v8491_v20 = vld [vmem:[%s10588_s5 + $0x600] sm:$0xff]  }
 0x413   : > { %7995 = vmatprep.subr.bf16.mxu0 %v8440_v37  ;;  %v4770_v37 = vcombine.high %v10387_v58, %v10387_v58 }
 0x414   : > { %7974 = vmatpush3.bf16.msra.mxu1 %v8439_v41  ;;  %v8494_v41 = vld [vmem:[%s10588_s5 + $0x778] sm:$0xff]  }
 0x415   : > { %7975 = vmatprep.subr.bf16.mxu1 %v8442_v57  ;;  %v8493_v57 = vld [vmem:[%s10588_s5 + $0x680] sm:$0xff]  }
 0x416   : > { %7996 = vmatpush3.bf16.msra.mxu0 %v8441_v16  ;;  %v4777_v16 = vrot.slane %v10281_v30, %v9453_v11  ;;  %v8502_v30 = vld [vmem:[%s10588_s5 + $0x7b0] sm:$0xff]  }
 0x417   : > { %7997 = vmatprep.subr.bf16.mxu0 %v8444_v8  ;;  %v8497_v8 = vld [vmem:[%s10588_s5 + $0x7f8] sm:$0xff]  }
 0x418   : > { %7976 = vmatpush3.bf16.msra.mxu1 %v8443_v34  ;;  %v8495_v34 = vld [vmem:[%s10588_s5 + $0x738] sm:$0xff]  }
 0x419   : > { %7977 = vmatprep.subr.bf16.mxu1 %v8446_v28  ;;  %v4798_v28 = vrot.slane %v4770_v37, %v9453_v11 }
 0x41a   : > { %7998 = vmatpush3.bf16.msra.mxu0 %v8445_v1  ;;  %v8499_v1 = vld [vmem:[%s10588_s5 + $0x770] sm:$0xff]  }
 0x41b   : > { %7999 = vmatprep.subr.bf16.mxu0 %v8448_v54  ;;  %v8498_v54 = vld [vmem:[%s10588_s5 + $0x7b8] sm:$0xff]  }
 0x41c   : > { %7978 = vmatpush3.bf16.msra.mxu1 %v8447_v47 }
 0x41d   : > { %7979 = vmatprep.subr.bf16.mxu1 %v8450_v39  ;;  %v4799_v39 = vcombine.high %v4777_v16, %v4777_v16 }
 0x41e   : > { %8000 = vmatpush3.bf16.msra.mxu0 %v8449_v38  ;;  %v8501_v38 = vld [vmem:[%s10588_s5 + $0x7f0] sm:$0xff]  }
 0x41f   : > { %8001 = vmatprep.subr.bf16.mxu0 %v8452_v60  ;;  %v4802_v60 = vcombine.high %v4798_v28, %v4798_v28 }
 0x420   : > { %7980 = vmatpush3.bf16.msra.mxu1 %v8451_v52  ;;  %v8500_v52 = vld [vmem:[%s10588_s5 + $0x730] sm:$0xff]  }
 0x421   : > { %7981 = vmatprep.subr.bf16.mxu1 %v8454_v36  ;;  %v4602_v36 = vld [vmem:[%s10589_s6] sm:$0x1] }
 0x422   : > { %8002 = vmatpush3.bf16.msra.mxu0 %v8453_v23 }
 0x423   : > { %8003 = vmatprep.subr.bf16.mxu0 %v8456_v21  ;;  %v8503_v21 = vld [vmem:[%s10588_s5 + $0x768] sm:$0xff]  }
 0x424   : > { %7982 = vmatpush3.bf16.msra.mxu1 %v8455_v45 }
 0x425   : > { %7983 = vmatprep.subr.bf16.mxu1 %v8458_v49 }
 0x426   : > { %8004 = vmatpush3.bf16.msra.mxu0 %v8457_v50 }
 0x427   : > { %8005 = vmatprep.subr.bf16.mxu0 %v8460_v0  ;;  %v8505_v0 = vld [vmem:[%s10588_s5 + $0x7e8] sm:$0xff]  }
 0x428   : > { %7984 = vmatpush3.bf16.msra.mxu1 %v8459_v25 }
 0x429   : > { %8013 = vmatprep.subr.bf16.mxu1 %v8462_v42  ;;  %v8504_v42 = vld [vmem:[%s10588_s5 + $0x728] sm:$0xff]  }
 0x42a   : > { %8006 = vmatpush3.bf16.msra.mxu0 %v8461_v48 }
 0x42b   : > { %6804 = vmatmul.mubr.bf16.vlgmr.msra.gmra.mxu1 %v4735_v59  ;;  %8035 = vmatprep.subr.bf16.mxu0 %v8464_v61  ;;  %v8507_v61 = vld [vmem:[%s10588_s5 + $0x760] sm:$0xff]  }
 0x42c   : > { %8014 = vmatpush3.bf16.msra.mxu1 %v8463_v51  ;;  %6883 = vmatprep.mubr.bf16.mxu1 %v4791_v62  ;;  %v8506_v62 = vld [vmem:[%s10588_s5 + $0x7a8] sm:$0xff]  }
 0x42d   : > { %6844 = vmatmul.mubr.bf16.vlgmr.msra.gmra.mxu0 %v4751_v4  ;;  %8015 = vmatprep.subr.bf16.mxu1 %v8466_v63  ;;  %v8508_v4 = vld [vmem:[%s10588_s5 + $0x720] sm:$0xff]  }
 0x42e   : > { %8036 = vmatpush3.bf16.msra.mxu0 %v8465_v10  ;;  %6923 = vmatprep.mubr.bf16.mxu0 %v4801_v32  ;;  %v8509_v10 = vld [vmem:[%s10588_s5 + $0x7e0] sm:$0xff]  }
 0x42f   : > { %8037 = vmatprep.subr.bf16.mxu0 %v8468_v18  ;;  %v8511_v18 = vld [vmem:[%s10588_s5 + $0x758] sm:$0xff]   ;;  %v8510_v32 = vld [vmem:[%s10588_s5 + $0x7a0] sm:$0xff]  }
 0x430   : > { %8016 = vmatpush3.bf16.msra.mxu1 %v8467_v44  ;;  %v8513_v44 = vld [vmem:[%s10588_s5 + $0x7d8] sm:$0xff]  }
 0x431   : > { %8017 = vmatprep.subr.bf16.mxu1 %v8470_v2  ;;  %v8512_v2 = vld [vmem:[%s10588_s5 + $0x718] sm:$0xff]  }
 0x432   : > { %8038 = vmatpush3.bf16.msra.mxu0 %v8469_v33  ;;  %v8515_v33 = vld [vmem:[%s10588_s5 + $0x750] sm:$0xff]  }
 0x433   : > { %8039 = vmatprep.subr.bf16.mxu0 %v8472_v3  ;;  %v8514_v3 = vld [vmem:[%s10588_s5 + $0x798] sm:$0xff]  }
 0x434   : > { %8018 = vmatpush3.bf16.msra.mxu1 %v8471_v7  ;;  %v8517_v7 = vld [vmem:[%s10588_s5 + $0x7d0] sm:$0xff]  }
 0x435   : > { %8019 = vmatprep.subr.bf16.mxu1 %v8474_v9  ;;  %v8516_v9 = vld [vmem:[%s10588_s5 + $0x710] sm:$0xff]  }
 0x436   : > { %8040 = vmatpush3.bf16.msra.mxu0 %v8473_v12  ;;  %v8519_v12 = vld [vmem:[%s10588_s5 + $0x748] sm:$0xff]  }
 0x437   : > { %8041 = vmatprep.subr.bf16.mxu0 %v8476_v13  ;;  %v8518_v13 = vld [vmem:[%s10588_s5 + $0x790] sm:$0xff]  }
 0x438   : > { %8020 = vmatpush3.bf16.msra.mxu1 %v8475_v15  ;;  %v8521_v15 = vld [vmem:[%s10588_s5 + $0x7c8] sm:$0xff]  }
 0x439   : > { %8021 = vmatprep.subr.bf16.mxu1 %v8478_v55  ;;  %v8520_v55 = vld [vmem:[%s10588_s5 + $0x708] sm:$0xff]  }
 0x43a   : > { %8042 = vmatpush3.bf16.msra.mxu0 %v8477_v22  ;;  %v8523_v22 = vld [vmem:[%s10588_s5 + $0x740] sm:$0xff]  }
 0x43b   : > { %8043 = vmatprep.subr.bf16.mxu0 %v8480_v29  ;;  %v8522_v29 = vld [vmem:[%s10588_s5 + $0x788] sm:$0xff]  }
 0x43c   : > { %8022 = vmatpush3.bf16.msra.mxu1 %v8479_v14  ;;  %v8525_v14 = vld [vmem:[%s10588_s5 + $0x7c0] sm:$0xff]  }
 0x43d   : > { %8023 = vmatprep.subr.bf16.mxu1 %v8482_v17  ;;  %v8524_v17 = vld [vmem:[%s10588_s5 + $0x700] sm:$0xff]  }
 0x43e   : > { %8044 = vmatpush3.bf16.msra.mxu0 %v8481_v19  ;;  %v8526_v19 = vld [vmem:[%s10588_s5 + $0x780] sm:$0xff]  }
 0x43f   : > { %8045 = vmatprep.subr.bf16.mxu0 %v8484_v56  ;;  %v4784_v56 = vrot.slane %v10387_v58, %v9453_v11 }
 0x440   : > { %8024 = vmatpush3.bf16.msra.mxu1 %v8483_v24 }
 0x441   : > { %8025 = vmatprep.subr.bf16.mxu1 %v8486_v46  ;;  %v4800_v26 = vcombine.high %v4784_v56, %v4784_v56 }
 0x442   : > { %8046 = vmatpush3.bf16.msra.mxu0 %v8485_v27 }
 0x443   : > { %8047 = vmatprep.subr.bf16.mxu0 %v8488_v31 }
 0x444   : > { %8026 = vmatpush3.bf16.msra.mxu1 %v8487_v43 }
 0x445   : > { %8027 = vmatprep.subr.bf16.mxu1 %v8490_v5 }
 0x446   : > { %8048 = vmatpush3.bf16.msra.mxu0 %v8489_v35 }
 0x447   : > { %8049 = vmatprep.subr.bf16.mxu0 %v8492_v40 }
 0x448   : > { %8028 = vmatpush3.bf16.msra.mxu1 %v8491_v20 }
 0x449   : > { %8057 = vmatprep.subr.bf16.mxu1 %v8494_v41 }
 0x44a   : > { %8050 = vmatpush3.bf16.msra.mxu0 %v8493_v57 }
 0x44b   : > { %6884 = vmatmul.mubr.bf16.vlgmr.msra.gmra.mxu1 %v4777_v16  ;;  %v7765_v47 = vpop.f32.mrf.mxu1  ;;  %8079 = vmatprep.subr.bf16.mxu0 %v8497_v8 }
 0x44c   : > { %8058 = vmatpush3.bf16.msra.mxu1 %v8495_v34  ;;  %6963 = vmatprep.mubr.bf16.mxu1 %v4798_v28 }
 0x44d   : > { %6924 = vmatmul.mubr.bf16.vlgmr.msra.gmra.mxu0 %v4799_v39  ;;  %v7766_v6 = vpop.f32.mrf.mxu1  ;;  %v7787_v23 = vpop.f32.mrf.mxu0  ;;  %8059 = vmatprep.subr.bf16.mxu1 %v8499_v1 }
 0x44e   : > { %v7767_v45 = vadd.f32 %v7766_v6, %v7765_v47  ;;  %8080 = vmatpush3.bf16.msra.mxu0 %v8498_v54  ;;  %7003 = vmatprep.mubr.bf16.mxu0 %v4802_v60  ;;  %v8528_v6 = vld [vmem:[%s10590_s7 + $0x30] sm:$0xff]  }
 0x44f   : > { %v7768_v49 = vpop.f32.mrf.mxu1  ;;  %v7788_v50 = vpop.f32.mrf.mxu0  ;;  %8081 = vmatprep.subr.bf16.mxu0 %v8501_v38 }
 0x450   : > { %v6406_v25 = vadd.f32 %v7767_v45, %v4602_v36  ;;  %v7789_v53 = vadd.f32 %v7788_v50, %v7787_v23  ;;  %8060 = vmatpush3.bf16.msra.mxu1 %v8500_v52  ;;  %v8527_v52 = vld [vmem:[%s10590_s7 + $0x38] sm:$0xff]   ;;  %v8602_v36 = vmov 0.0   ;;  %v8529_v23 = vld [vmem:[%s10590_s7 + $0x28] sm:$0xff]  }
 0x451   : > { %v7769_v48 = vpop.f32.mrf.mxu1  ;;  %v7790_v59 = vpop.f32.mrf.mxu0  ;;  %8061 = vmatprep.subr.bf16.mxu1 %v8503_v21  ;;  %v8530_v21 = vld [vmem:[%s10590_s7 + $0x20] sm:$0xff]   ;;  %v8531_v45 = vld [vmem:[%s10590_s7 + $0x18] sm:$0xff]  }
 0x452   : > { %v6446_v51 = vadd.f32 %v7789_v53, %v6406_v25  ;;  %8082 = vmatpush3.bf16.msra.mxu0 %v8502_v30  ;;  %v8532_v59 = vld [vmem:[%s10590_s7 + $0x10] sm:$0xff]  }
 0x453   : > { %v7791_v63 = vpop.f32.mrf.mxu0  ;;  %8083 = vmatprep.subr.bf16.mxu0 %v8505_v0 }
 0x454   : > { %8062 = vmatpush3.bf16.msra.mxu1 %v8504_v42 }
 0x455   : > { %8063 = vmatprep.subr.bf16.mxu1 %v8507_v61 }
 0x456   : > { %8084 = vmatpush3.bf16.msra.mxu0 %v8506_v62 }
 0x457   : > { %8085 = vmatprep.subr.bf16.mxu0 %v8509_v10  ;;  %v8533_v10 = vld [vmem:[%s10590_s7 + $0x8] sm:$0xff]  }
 0x458   : > { %8064 = vmatpush3.bf16.msra.mxu1 %v8508_v4  ;;  %v8534_v4 = vld [vmem:[%s10590_s7] sm:$0xff]  }
 0x459   : > { %8065 = vmatprep.subr.bf16.mxu1 %v8511_v18 }
 0x45a   : > { %8086 = vmatpush3.bf16.msra.mxu0 %v8510_v32 }
 0x45b   : > { %8087 = vmatprep.subr.bf16.mxu0 %v8513_v44 }
 0x45c   : > { %8066 = vmatpush3.bf16.msra.mxu1 %v8512_v2 }
 0x45d   : > { %8067 = vmatprep.subr.bf16.mxu1 %v8515_v33 }
 0x45e   : > { %8088 = vmatpush3.bf16.msra.mxu0 %v8514_v3 }
 0x45f   : > { %8089 = vmatprep.subr.bf16.mxu0 %v8517_v7 }
 0x460   : > { %8068 = vmatpush3.bf16.msra.mxu1 %v8516_v9 }
 0x461   : > { %8069 = vmatprep.subr.bf16.mxu1 %v8519_v12 }
 0x462   : > { %8090 = vmatpush3.bf16.msra.mxu0 %v8518_v13 }
 0x463   : > { %8091 = vmatprep.subr.bf16.mxu0 %v8521_v15 }
 0x464   : > { %8070 = vmatpush3.bf16.msra.mxu1 %v8520_v55 }
 0x465   : > { %8071 = vmatprep.subr.bf16.mxu1 %v8523_v22 }
 0x466   : > { %8092 = vmatpush3.bf16.msra.mxu0 %v8522_v29 }
 0x467   : > { %8093 = vmatprep.subr.bf16.mxu0 %v8525_v14 }
 0x468   : > { %8072 = vmatpush3.bf16.msra.mxu1 %v8524_v17 }
 0x469   : > { %8134 = vmatprep.subr.bf16.mxu1 %v8602_v36 }
 0x46a   : > { %8094 = vmatpush3.bf16.msra.mxu0 %v8526_v19 }
 0x46b   : > { %v7809_v24 = vpop.f32.mrf.mxu1  ;;  %6964 = vmatmul.mubr.bf16.vlgmr.msra.gmra.mxu1 %v4784_v56 }
 0x46c   : > { %8135 = vmatpush3.bf16.msra.mxu1 %v8527_v52  ;;  %8150 = vmatprep.mubr.msk.bf16.mxu1 %vm8603_vm3, %v8602_v36 }
 0x46d   : > { %v7810_v46 = vpop.f32.mrf.mxu1  ;;  %v7831_v27 = vpop.f32.mrf.mxu0  ;;  %7004 = vmatmul.mubr.bf16.vlgmr.msra.gmra.mxu0 %v4800_v26  ;;  %8136 = vmatprep.subr.bf16.mxu1 %v8602_v36 }
 0x46e   : > { %v7811_v31 = vadd.f32 %v7810_v46, %v7809_v24 }
 0x46f   : > { %v7812_v43 = vpop.f32.mrf.mxu1  ;;  %v7832_v5 = vpop.f32.mrf.mxu0 }
 0x470   : > { %v6486_v35 = vadd.f32 %v7811_v31, %v6446_v51  ;;  %v7833_v40 = vadd.f32 %v7832_v5, %v7831_v27  ;;  %8137 = vmatpush3.bf16.msra.mxu1 %v8528_v6 }
 0x471   : > { %v7813_v20 = vpop.f32.mrf.mxu1  ;;  %v7834_v37 = vpop.f32.mrf.mxu0  ;;  %8138 = vmatprep.subr.bf16.mxu1 %v8602_v36 }
 0x472   : > { %v6526_v41 = vadd.f32 %v7833_v40, %v6486_v35 }
 0x473   : > { %v7835_v57 = vpop.f32.mrf.mxu0 }
 0x474   : > { %8139 = vmatpush3.bf16.msra.mxu1 %v8529_v23 }
 0x475   : > { %8140 = vmatprep.subr.bf16.mxu1 %v8602_v36 }
 0x478   : > { %8141 = vmatpush3.bf16.msra.mxu1 %v8530_v21 }
 0x479   : > { %8142 = vmatprep.subr.bf16.mxu1 %v8602_v36 }
 0x47c   : > { %8143 = vmatpush3.bf16.msra.mxu1 %v8531_v45 }
 0x47d   : > { %8144 = vmatprep.subr.bf16.mxu1 %v8602_v36 }
 0x480   : > { %8145 = vmatpush3.bf16.msra.mxu1 %v8532_v59 }
 0x481   : > { %8146 = vmatprep.subr.bf16.mxu1 %v8602_v36 }
 0x484   : > { %8147 = vmatpush3.bf16.msra.mxu1 %v8533_v10 }
 0x485   : > { %8148 = vmatprep.subr.bf16.mxu1 %v8602_v36 }
 0x488   : > { %8149 = vmatpush3.bf16.msra.mxu1 %v8534_v4 }
 0x48b   : > { %v7853_v16 = vpop.f32.mrf.mxu1 }
 0x48d   : > { %v7854_v8 = vpop.f32.mrf.mxu1  ;;  %v7875_v11 = vpop.f32.mrf.mxu0 }
 0x48e   : > { %v7855_v58 = vadd.f32 %v7854_v8, %v7853_v16 }
 0x48f   : > { %v7856_v34 = vpop.f32.mrf.mxu1  ;;  %v7876_v28 = vpop.f32.mrf.mxu0 }
 0x490   : > { %v6566_v1 = vadd.f32 %v7855_v58, %v6526_v41  ;;  %v7877_v54 = vadd.f32 %v7876_v28, %v7875_v11 }
 0x491   : > { %v7857_v47 = vpop.f32.mrf.mxu1  ;;  %v7878_v39 = vpop.f32.mrf.mxu0 }
 0x492   : > { %v6606_v38 = vadd.f32 %v7877_v54, %v6566_v1 }
 0x493   : > { %v7879_v60 = vpop.f32.mrf.mxu0 }
 0x4ab   : > { %v7897_v30 = vpop.f32.mrf.mxu1 }
 0x4ad   : > { %v7898_v49 = vpop.f32.mrf.mxu1  ;;  %v7919_v50 = vpop.f32.mrf.mxu0 }
 0x4ae   : > { %v7899_v0 = vadd.f32 %v7898_v49, %v7897_v30  ;;  %v7029_v49 = vld [vmem:[%s10591_s8] sm:$0x1] }
 0x4af   : > { %v7900_v25 = vpop.f32.mrf.mxu1  ;;  %v7920_v53 = vpop.f32.mrf.mxu0 }
 0x4b0   : > { %v6646_v42 = vadd.f32 %v7899_v0, %v6606_v38  ;;  %v7921_v48 = vadd.f32 %v7920_v53, %v7919_v50 }
 0x4b1   : > { %v7901_v61 = vpop.f32.mrf.mxu1  ;;  %v7922_v51 = vpop.f32.mrf.mxu0 }
 0x4b2   : > { %v6686_v62 = vadd.f32 %v7921_v48, %v6646_v42 }
 0x4b3   : > { %v7923_v63 = vpop.f32.mrf.mxu0 }
 0x4cb   : > { %v7941_v18 = vpop.f32.mrf.mxu1 }
 0x4cd   : > { %v7942_v32 = vpop.f32.mrf.mxu1  ;;  %v7963_v44 = vpop.f32.mrf.mxu0 }
 0x4ce   : > { %v7943_v2 = vadd.f32 %v7942_v32, %v7941_v18 }
 0x4cf   : > { %v7944_v33 = vpop.f32.mrf.mxu1  ;;  %v7964_v3 = vpop.f32.mrf.mxu0 }
 0x4d0   : > { %v6726_v7 = vadd.f32 %v7943_v2, %v6686_v62  ;;  %v7965_v9 = vadd.f32 %v7964_v3, %v7963_v44 }
 0x4d1   : > { %v7945_v12 = vpop.f32.mrf.mxu1  ;;  %v7966_v13 = vpop.f32.mrf.mxu0 }
 0x4d2   : > { %v6766_v15 = vadd.f32 %v7965_v9, %v6726_v7 }
 0x4d3   : > { %v7967_v55 = vpop.f32.mrf.mxu0 }
 0x4eb   : > { %v7985_v22 = vpop.f32.mrf.mxu1 }
 0x4ed   : > { %v7986_v29 = vpop.f32.mrf.mxu1  ;;  %v8007_v14 = vpop.f32.mrf.mxu0 }
 0x4ee   : > { %v7987_v37 = vadd.f32 %v7986_v29, %v7985_v22 }
 0x4ef   : > { %v7988_v17 = vpop.f32.mrf.mxu1  ;;  %v8008_v19 = vpop.f32.mrf.mxu0 }
 0x4f0   : > { %v6806_v41 = vadd.f32 %v7987_v37, %v6766_v15  ;;  %v8009_v57 = vadd.f32 %v8008_v19, %v8007_v14 }
 0x4f1   : > { %v7989_v56 = vpop.f32.mrf.mxu1  ;;  %v8010_v24 = vpop.f32.mrf.mxu0 }
 0x4f2   : > { %v6846_v8 = vadd.f32 %v8009_v57, %v6806_v41 }
 0x4f3   : > { %v8011_v26 = vpop.f32.mrf.mxu0 }
 0x50b   : > { %v8029_v46 = vpop.f32.mrf.mxu1 }
 0x50d   : > { %v8030_v27 = vpop.f32.mrf.mxu1  ;;  %v8051_v31 = vpop.f32.mrf.mxu0 }
 0x50e   : > { %v8031_v16 = vadd.f32 %v8030_v27, %v8029_v46 }
 0x50f   : > { %v8032_v43 = vpop.f32.mrf.mxu1  ;;  %v8052_v5 = vpop.f32.mrf.mxu0 }
 0x510   : > { %v6886_v11 = vadd.f32 %v8031_v16, %v6846_v8  ;;  %v8053_v58 = vadd.f32 %v8052_v5, %v8051_v31 }
 0x511   : > { %v8033_v35 = vpop.f32.mrf.mxu1  ;;  %v8054_v40 = vpop.f32.mrf.mxu0 }
 0x512   : > { %v6926_v54 = vadd.f32 %v8053_v58, %v6886_v11 }
 0x513   : > { %v8055_v20 = vpop.f32.mrf.mxu0 }
 0x52b   : > { %v8073_v34 = vpop.f32.mrf.mxu1 }
 0x52d   : > { %v8074_v28 = vpop.f32.mrf.mxu1  ;;  %v8095_v1 = vpop.f32.mrf.mxu0 }
 0x52e   : > { %v8075_v47 = vadd.f32 %v8074_v28, %v8073_v34 }
 0x52f   : > { %v8076_v39 = vpop.f32.mrf.mxu1  ;;  %v8096_v38 = vpop.f32.mrf.mxu0 }
 0x530   : > { %v6966_v60 = vadd.f32 %v8075_v47, %v6926_v54  ;;  %v8097_v52 = vadd.f32 %v8096_v38, %v8095_v1 }
 0x531   : > { %v8077_v36 = vpop.f32.mrf.mxu1  ;;  %v8098_v6 = vpop.f32.mrf.mxu0 }
 0x532   : > { %v7006_v23 = vadd.f32 %v8097_v52, %v6966_v60 }
 0x533   : > { %v8099_v21 = vpop.f32.mrf.mxu0 }
 0x534   : > { %v7011_v45 = vmax.f32 %v7006_v23, 0.0 }
 0x536   : > { %v7012_v30 = vpack.c.bf16 %v7011_v45, %v7011_v45 }
 0x538   : > { %8151 = vmatmul.mubr.bf16.vlgmr.msra.gmra.mxu1 %v7012_v30 }
 0x5f8   : > { %v7112_v50 = vpop.f32.mrf.mxu1 }
 0x5f9   : > { %v7113_v0 = vadd.f32 %v7112_v50, %v7029_v49 }
 0x5fa   : > { %v8152_v25 = vpop.f32.mrf.mxu1 }
 0x5fb   : > { %7119 = vst.msk [vmem:[%s324_s28] sm:$0x1] %vm7118_vm4, %v7113_v0 }
 0x5fc   : > { %v7115_v53 = vpop.f32.mrf.mxu1 }
 0x5fd   : > { %8548 = shalt.err (!%p8545_p3)
}
 0x5fe   : > { %s8549_s24 = scalar_lea.hbm %s10542_s21, 16  ;;  %s8553_s28 = scalar_lea.hbm %s10592_s9, 32 }
 0x5ff   : > { %p8550_p4 = scmp.ne.s32.totalorder %s10542_s21, %s8549_s24  ;;  %p8554_p9 = scmp.lt.s32.totalorder %s10542_s21, %s10592_s9 }
 0x600   : > { %p8555_p10 = scmp.lt.s32.totalorder %s8553_s28, %s8549_s24 }
 0x601   : > { %p8551_p7 = pnand %p8550_p4, %p8693_p5 }
 0x602   : > { %p8556_p11 = por %p8555_p10, %p8554_p9 }
 0x603   : > { %p8552_p8 = pneg %p8551_p7 }
 0x605   : > { %p8557_p12 = pnand %p8556_p11, %p8552_p8 }
 0x607   : > { %8560 = shalt.err (!%p8557_p12)
}
 0x608   : > { %8154 = dma.vmem_to_hbm [thread:$0]  (%p8693_p5), %s10544_s14, 16, %s10542_s21, %s7121_s22   ;;  %v8153_v42 = vpop.f32.mrf.mxu1 }
 0x609 PF: > { %p8160_p13 = scmp.ge.s32.totalorder %s8595_s12, 2  ;;  %s7145_s13 = sand.u32 1, %s8583_s30  }
 0x60a   : > { %s7146_s23 = scalar_lea.sflag [#allocation7], %s7145_s13 }
 0x60b   : > { %p8157_p0 = pnand %p8160_p13, %p8697_p6 }
 0x60d   : > { %p8158_p1 = pneg %p8157_p0 }
 0x60f   : > { %8578 = dma.done.wait (%p8158_p1), %s7146_s23, 16  }
 0x610   : > { %8580 = vsyncadd (%p8158_p1), %s7146_s23, 4294967280  ;;  %p19_p2 = scmp.ge.s32.totalorder %s8680_s15, 4   ;;  %s10611_s30 = smov %s8587_s10 }
 0x611   : > { %s10612_s10 = smov %s8591_s11  ;;  %s10613_s11 = smov %s8691_s18 }
 0x612   : > { %s10614_s12 = smov %s8680_s15  ;;  %21 = sbr.rel (!%p19_p2) target bundleno = 3 (0x3), region = 94 }
 0x617   :  { %7150 = vsyncpa [#allocation7], 1 }
 0x618   :  { %7152 = vsyncpa [#allocation7 + $0x1], 1 }

</bundles_post_ra>
